<compile_context>
chip_gen: v6e
topology: v6e:2x2x1
jax: 0.10.0
libtpu: 0.0.40
codegen_flags: <defaults>
</compile_context>

<pallas_src>
import jax
import jax.numpy as jnp
from jax.experimental import pallas as pl
from jax.experimental.pallas import tpu as pltpu


def _round_up(x, m):
    return (x + m - 1) // m * m


def _chunks(total, chunk):
    out, c0 = [], 0
    while c0 < total:
        out.append((c0, min(chunk, total - c0)))
        c0 += chunk
    return out


def _make_double_conv_kernel(width, m1, m2, chunk):
    """Fused (conv3x3 valid + BN + ReLU) x 2 for one image row-strip."""
    taps = [(kh, kw) for kh in range(3) for kw in range(3)]

    def kernel(p_ref, w1_ref, s1_ref, b1_ref, w2_ref, s2_ref, b2_ref,
               o_ref, y1_ref):
        s1 = s1_ref[...]
        b1 = b1_ref[...]
        # ---- layer 1: one K-fused GEMM per M-chunk (taps folded along K) ----
        for c0, csz in _chunks(m1, chunk):
            acc = jnp.dot(p_ref[0, 0, c0:c0 + csz, :], w1_ref[...],
                          preferred_element_type=jnp.float32)
            y1_ref[c0:c0 + csz, :] = jnp.maximum(
                acc * s1 + b1, 0.0).astype(y1_ref.dtype)
        # Dropout2d(p=0.25) is identity in eval mode.

        s2 = s2_ref[...]
        b2 = b2_ref[...]
        # ---- layer 2: 9 tap-shifted GEMMs per M-chunk, summed in registers ----
        for c0, csz in _chunks(m2, chunk):
            acc = None
            for t, (kh, kw) in enumerate(taps):
                off = kh * width + kw
                d = jnp.dot(y1_ref[c0 + off:c0 + off + csz, :], w2_ref[t],
                            preferred_element_type=jnp.float32)
                acc = d if acc is None else acc + d
            o_ref[0, 0, c0:c0 + csz, :] = jnp.maximum(
                acc * s2 + b2, 0.0).astype(o_ref.dtype)

    return kernel


def _pick_strip_rows(W, K1, cp, Ho2, budget_bytes=12 * 1024 * 1024):
    """Output rows per strip so strip-scaled VMEM stays under budget."""
    per_row = W * (2 * 2 * K1      # im2col patch block, bf16, double buffered
                   + 2 * cp        # y1 VMEM scratch, bf16
                   + 2 * 2 * cp)   # output block, bf16, double buffered
    halo = (2 * W + 16) * (2 * 2 * K1 + 2 * cp)
    s = (budget_bytes - halo) // max(per_row, 1)
    s = min(s, max(1, 4096 // W))  # also bound the unrolled chunk-loop length
    return int(max(1, min(Ho2, s)))


def double_conv_pallas(x_nchw, params, *, eps=1e-5):
    """Conv-BN-ReLU-(Dropout=id) twice; NCHW in / NCHW out like PyTorch (eval)."""
    N, Cin, H, W = x_nchw.shape
    Cout = params["w1"].shape[0]
    k = 3
    assert H >= 5 and W >= 5, "double_conv needs at least 5x5 spatial"
    Ho1, Wo1 = H - 2, W - 2
    Ho2, Wo2 = H - 4, W - 4

    LANES = 128
    cp = _round_up(Cout, LANES)          # lane-dense output channels (>= 128)
    K1 = _round_up(k * k * Cin, 8)       # K-fused layer-1 contraction depth

    # ---- strip tiling over final-output rows (VMEM-size independent) ----
    S_out = _pick_strip_rows(W, K1, cp, Ho2)
    n_strips = -(-Ho2 // S_out)
    m2 = _round_up(S_out * W, 8)             # flat output rows per strip
    m1 = _round_up(m2 + 2 * W + 2, 8)        # flat intermediate rows per strip

    # ---- layer-1 im2col patch (row-stride-W flat trick), strip-gathered ----
    # TODO(synk): if this block sits inside a UNet, keep activations in this
    # flattened bf16 layout between blocks to avoid the extra HBM pass here.
    x_flat = jnp.transpose(x_nchw, (0, 2, 3, 1)).reshape(N, H * W, Cin)
    x_flat = x_flat.astype(jnp.bfloat16)
    offs = jnp.array([kh * W + kw for kh in range(k) for kw in range(k)],
                     dtype=jnp.int32)
    max_idx = (n_strips - 1) * S_out * W + (m1 - 1) + (2 * W + 2)
    pad_rows = max(0, max_idx + 1 - H * W)
    x_flat = jnp.pad(x_flat, ((0, 0), (0, pad_rows), (0, 0)))
    row_idx = (jnp.arange(n_strips, dtype=jnp.int32)[:, None, None] * (S_out * W)
               + jnp.arange(m1, dtype=jnp.int32)[None, :, None]
               + offs[None, None, :])                        # (ns, m1, 9)
    patch = x_flat[:, row_idx, :]                            # (N, ns, m1, 9, Cin)
    patch = patch.reshape(N, n_strips, m1, k * k * Cin)
    patch = jnp.pad(patch, ((0, 0), (0, 0), (0, 0), (0, K1 - k * k * Cin)))

    # ---- weights: layer 1 K-fused (K1, cp); layer 2 per-tap (9, cp, cp) ----
    w1f = jnp.transpose(params["w1"], (2, 3, 1, 0)).reshape(k * k * Cin, Cout)
    w1f = jnp.pad(w1f, ((0, K1 - k * k * Cin), (0, cp - Cout))).astype(jnp.bfloat16)
    w2p = jnp.transpose(params["w2"], (2, 3, 1, 0)).reshape(k * k, Cout, Cout)
    w2p = jnp.pad(w2p, ((0, 0), (0, cp - Cout), (0, cp - Cout))).astype(jnp.bfloat16)

    # ---- fold conv bias + BatchNorm(eval, running stats) into scale/bias ----
    def fold_bn(conv_b, bn):
        scale = bn["gamma"] / jnp.sqrt(bn["var"] + eps)
        bias = bn["beta"] + (conv_b - bn["mean"]) * scale
        scale = jnp.pad(scale, (0, cp - Cout)).reshape(1, cp).astype(jnp.float32)
        bias = jnp.pad(bias, (0, cp - Cout)).reshape(1, cp).astype(jnp.float32)
        return scale, bias

    s1, b1 = fold_bn(params["b1"], params["bn1"])
    s2, b2 = fold_bn(params["b2"], params["bn2"])

    chunk = 128
    kernel = _make_double_conv_kernel(W, m1, m2, chunk)

    blk_bytes = (2 * m1 * K1 * 2 + 2 * m2 * cp * 2 + m1 * cp * 2
                 + 2 * (w1f.size + w2p.size) * 2 + 4 * 4 * cp)
    vmem_limit = int(min(64 * 1024 * 1024,
                         max(16 * 1024 * 1024, blk_bytes * 3 // 2 + (2 << 20))))
    flops = 2 * N * n_strips * (m1 * K1 * cp + 9 * m2 * cp * cp)
    bytes_accessed = (patch.size * 2 + w1f.size * 2 + w2p.size * 2
                      + 4 * (s1.size + b1.size + s2.size + b2.size)
                      + N * n_strips * m2 * cp * 2)

    out = pl.pallas_call(
        kernel,
        out_shape=jax.ShapeDtypeStruct((N, n_strips, m2, cp), jnp.bfloat16),
        grid=(N, n_strips),
        in_specs=[
            pl.BlockSpec((1, 1, m1, K1), lambda n, s: (n, s, 0, 0)),  # patch
            pl.BlockSpec((K1, cp), lambda n, s: (0, 0)),              # conv1 w (K-fused)
            pl.BlockSpec((1, cp), lambda n, s: (0, 0)),               # bn1 scale
            pl.BlockSpec((1, cp), lambda n, s: (0, 0)),               # bn1 bias
            pl.BlockSpec((k * k, cp, cp), lambda n, s: (0, 0, 0)),    # conv2 w
            pl.BlockSpec((1, cp), lambda n, s: (0, 0)),               # bn2 scale
            pl.BlockSpec((1, cp), lambda n, s: (0, 0)),               # bn2 bias
        ],
        out_specs=pl.BlockSpec((1, 1, m2, cp), lambda n, s: (n, s, 0, 0)),
        scratch_shapes=[
            pltpu.VMEM((m1, cp), jnp.bfloat16),   # layer-1 activation, VMEM-resident
        ],
        compiler_params=pltpu.CompilerParams(
            dimension_semantics=("parallel", "parallel"),
            vmem_limit_bytes=vmem_limit),
        cost_estimate=pl.CostEstimate(flops=flops, transcendentals=0,
                                      bytes_accessed=bytes_accessed),
    )(patch, w1f, s1, b1, w2p, s2, b2)

    # strip the padding: row-straddle garbage cols, 8-row pad, strip overrun,
    # and the 128-lane channel pad
    out = out[:, :, :S_out * W, :Cout].reshape(N, n_strips * S_out, W, Cout)
    out = out[:, :Ho2, :Wo2, :]
    return jnp.transpose(out, (0, 3, 1, 2)).astype(jnp.float32)   # NHWC -> NCHW


def init_double_conv_params(key, in_channels, out_channels, k=3):
    """Deterministic init mirroring nn.Conv2d / nn.BatchNorm2d defaults."""
    k0, k1, k2, k3 = jax.random.split(key, 4)

    def conv_init(kw, kb, cin, cout):
        fan_in = cin * k * k
        bound = 1.0 / jnp.sqrt(jnp.float32(fan_in))
        w = jax.random.uniform(kw, (cout, cin, k, k), jnp.float32, -bound, bound)
        b = jax.random.uniform(kb, (cout,), jnp.float32, -bound, bound)
        return w, b

    w1, b1 = conv_init(k0, k1, in_channels, out_channels)
    w2, b2 = conv_init(k2, k3, out_channels, out_channels)

    def bn_init(c):
        return dict(gamma=jnp.ones((c,), jnp.float32),
                    beta=jnp.zeros((c,), jnp.float32),
                    mean=jnp.zeros((c,), jnp.float32),
                    var=jnp.ones((c,), jnp.float32))

    return dict(w1=w1, b1=b1, bn1=bn_init(out_channels),
                w2=w2, b2=b2, bn2=bn_init(out_channels))


def _reference_double_conv(x, params, eps=1e-5):
    """Pure-JAX f32 reference (eval-mode BN, identity dropout)."""
    def block(h, w, b, bn):
        y = jax.lax.conv_general_dilated(
            h, w, window_strides=(1, 1), padding="VALID",
            dimension_numbers=("NCHW", "OIHW", "NCHW"),
            precision=jax.lax.Precision.HIGHEST)
        y = y + b.reshape(1, -1, 1, 1)
        scale = (bn["gamma"] / jnp.sqrt(bn["var"] + eps)).reshape(1, -1, 1, 1)
        y = (y - bn["mean"].reshape(1, -1, 1, 1)) * scale \
            + bn["beta"].reshape(1, -1, 1, 1)
        return jnp.maximum(y, 0.0)

    h = block(x, params["w1"], params["b1"], params["bn1"])
    h = block(h, params["w2"], params["b2"], params["bn2"])
    return h


if __name__ == "__main__":
    key = jax.random.PRNGKey(0)
    k_x, k_p = jax.random.split(key)

    in_channels, out_channels = 4, 8
    x = jax.random.normal(k_x, (2, in_channels, 16, 16), dtype=jnp.float32)
    params = init_double_conv_params(k_p, in_channels, out_channels)

    out = jax.block_until_ready(jax.jit(double_conv_pallas)(x, params))

    # 16 -> 14 -> 12 spatial (two valid 3x3 convs), channels -> out_channels
    assert out.shape == (2, out_channels, 12, 12), out.shape
    assert bool(jnp.all(out >= 0.0))  # ReLU output is non-negative

    ref = _reference_double_conv(x, params)
    err = float(jnp.max(jnp.abs(out - ref)))
    assert err < 0.15, f"max abs diff vs f32 reference too large: {err}"

    print("KERNEL_OK")
</pallas_src>

<mosaic_0001>
module attributes {stable_mosaic.version = 11 : i64} {
  func.func @kernel(%arg0: i32, %arg1: i32, %arg2: memref<1x1x232x40xbf16, #tpu.memory_space<vmem>>, %arg3: memref<40x128xbf16, #tpu.memory_space<vmem>>, %arg4: memref<1x128xf32, #tpu.memory_space<vmem>>, %arg5: memref<1x128xf32, #tpu.memory_space<vmem>>, %arg6: memref<9x128x128xbf16, #tpu.memory_space<vmem>>, %arg7: memref<1x128xf32, #tpu.memory_space<vmem>>, %arg8: memref<1x128xf32, #tpu.memory_space<vmem>>, %arg9: memref<1x1x192x128xbf16, #tpu.memory_space<vmem>>, %arg10: memref<232x128xbf16, #tpu.memory_space<vmem>>) attributes {dimension_semantics = [#tpu.dimension_semantics<parallel>, #tpu.dimension_semantics<parallel>], iteration_bounds = array<i64: 2, 1>, scalar_prefetch = 0 : i64, scratch_operands = 1 : i64, tpu.core_type = #tpu.core_type<tc>, window_params = [{transform_indices = @transform_0, window_bounds = array<i64: 1, 1, 232, 40>}, {pipeline_mode = #tpu.pipeline_mode<synchronous>, transform_indices = @transform_1, window_bounds = array<i64: 40, 128>}, {pipeline_mode = #tpu.pipeline_mode<synchronous>, transform_indices = @transform_2, window_bounds = array<i64: 1, 128>}, {pipeline_mode = #tpu.pipeline_mode<synchronous>, transform_indices = @transform_3, window_bounds = array<i64: 1, 128>}, {pipeline_mode = #tpu.pipeline_mode<synchronous>, transform_indices = @transform_4, window_bounds = array<i64: 9, 128, 128>}, {pipeline_mode = #tpu.pipeline_mode<synchronous>, transform_indices = @transform_5, window_bounds = array<i64: 1, 128>}, {pipeline_mode = #tpu.pipeline_mode<synchronous>, transform_indices = @transform_6, window_bounds = array<i64: 1, 128>}, {transform_indices = @transform_7, window_bounds = array<i64: 1, 1, 192, 128>}]} {
    %c0 = arith.constant 0 : index
    %c0_0 = arith.constant 0 : index
    %0 = vector.load %arg4[%c0, %c0_0] : memref<1x128xf32, #tpu.memory_space<vmem>>, vector<1x128xf32>
    %c0_1 = arith.constant 0 : index
    %c0_2 = arith.constant 0 : index
    %1 = vector.load %arg5[%c0_1, %c0_2] : memref<1x128xf32, #tpu.memory_space<vmem>>, vector<1x128xf32>
    %c0_3 = arith.constant 0 : index
    %c0_4 = arith.constant 0 : index
    %c0_5 = arith.constant 0 : index
    %c0_6 = arith.constant 0 : index
    %2 = vector.load %arg2[%c0_3, %c0_4, %c0_5, %c0_6] : memref<1x1x232x40xbf16, #tpu.memory_space<vmem>>, vector<1x1x128x40xbf16>
    %3 = vector.shape_cast %2 : vector<1x1x128x40xbf16> to vector<128x40xbf16>
    %c0_7 = arith.constant 0 : index
    %c0_8 = arith.constant 0 : index
    %4 = vector.load %arg3[%c0_7, %c0_8] : memref<40x128xbf16, #tpu.memory_space<vmem>>, vector<40x128xbf16>
    %cst = arith.constant dense<0.000000e+00> : vector<128x128xf32>
    %5 = tpu.matmul %3, %4, %cst {dimension_numbers = #tpu.dot_dimension_numbers<[1], [0], [0], [1], [0, 0, 1, 1], [], []>} : vector<128x40xbf16>, vector<40x128xbf16>, vector<128x128xf32> -> vector<128x128xf32>
    %6 = vector.broadcast %0 : vector<1x128xf32> to vector<128x128xf32>
    %7 = arith.mulf %5, %6 : vector<128x128xf32>
    %8 = vector.broadcast %1 : vector<1x128xf32> to vector<128x128xf32>
    %9 = arith.addf %7, %8 : vector<128x128xf32>
    %cst_9 = arith.constant 0.000000e+00 : f32
    %10 = vector.broadcast %cst_9 : f32 to vector<128x128xf32>
    %11 = arith.maximumf %9, %10 : vector<128x128xf32>
    %12 = arith.truncf %11 : vector<128x128xf32> to vector<128x128xbf16>
    %c0_10 = arith.constant 0 : index
    %c0_11 = arith.constant 0 : index
    %13 = vector.load %arg10[%c0_10, %c0_11] : memref<232x128xbf16, #tpu.memory_space<vmem>>, vector<128x128xbf16>
    tpu.vector_store %arg10[%c0_10, %c0_11], %12 {strides = array<i32>} : memref<232x128xbf16, #tpu.memory_space<vmem>>, vector<128x128xbf16>,
    %c0_12 = arith.constant 0 : index
    %c0_13 = arith.constant 0 : index
    %c128 = arith.constant 128 : index
    %c0_14 = arith.constant 0 : index
    %14 = vector.load %arg2[%c0_12, %c0_13, %c128, %c0_14] : memref<1x1x232x40xbf16, #tpu.memory_space<vmem>>, vector<1x1x104x40xbf16>
    %15 = vector.shape_cast %14 : vector<1x1x104x40xbf16> to vector<104x40xbf16>
    %c0_15 = arith.constant 0 : index
    %c0_16 = arith.constant 0 : index
    %16 = vector.load %arg3[%c0_15, %c0_16] : memref<40x128xbf16, #tpu.memory_space<vmem>>, vector<40x128xbf16>
    %cst_17 = arith.constant dense<0.000000e+00> : vector<104x128xf32>
    %17 = tpu.matmul %15, %16, %cst_17 {dimension_numbers = #tpu.dot_dimension_numbers<[1], [0], [0], [1], [0, 0, 1, 1], [], []>} : vector<104x40xbf16>, vector<40x128xbf16>, vector<104x128xf32> -> vector<104x128xf32>
    %18 = vector.broadcast %0 : vector<1x128xf32> to vector<104x128xf32>
    %19 = arith.mulf %17, %18 : vector<104x128xf32>
    %20 = vector.broadcast %1 : vector<1x128xf32> to vector<104x128xf32>
    %21 = arith.addf %19, %20 : vector<104x128xf32>
    %cst_18 = arith.constant 0.000000e+00 : f32
    %22 = vector.broadcast %cst_18 : f32 to vector<104x128xf32>
    %23 = arith.maximumf %21, %22 : vector<104x128xf32>
    %24 = arith.truncf %23 : vector<104x128xf32> to vector<104x128xbf16>
    %c128_19 = arith.constant 128 : index
    %c0_20 = arith.constant 0 : index
    %25 = vector.load %arg10[%c128_19, %c0_20] : memref<232x128xbf16, #tpu.memory_space<vmem>>, vector<104x128xbf16>
    tpu.vector_store %arg10[%c128_19, %c0_20], %24 {strides = array<i32>} : memref<232x128xbf16, #tpu.memory_space<vmem>>, vector<104x128xbf16>,
    %c0_21 = arith.constant 0 : index
    %c0_22 = arith.constant 0 : index
    %26 = vector.load %arg7[%c0_21, %c0_22] : memref<1x128xf32, #tpu.memory_space<vmem>>, vector<1x128xf32>
    %c0_23 = arith.constant 0 : index
    %c0_24 = arith.constant 0 : index
    %27 = vector.load %arg8[%c0_23, %c0_24] : memref<1x128xf32, #tpu.memory_space<vmem>>, vector<1x128xf32>
    %c0_25 = arith.constant 0 : index
    %c0_26 = arith.constant 0 : index
    %28 = vector.load %arg10[%c0_25, %c0_26] : memref<232x128xbf16, #tpu.memory_space<vmem>>, vector<128x128xbf16>
    %c0_27 = arith.constant 0 : index
    %c0_28 = arith.constant 0 : index
    %c0_29 = arith.constant 0 : index
    %29 = vector.load %arg6[%c0_27, %c0_28, %c0_29] : memref<9x128x128xbf16, #tpu.memory_space<vmem>>, vector<1x128x128xbf16>
    %30 = vector.shape_cast %29 : vector<1x128x128xbf16> to vector<128x128xbf16>
    %cst_30 = arith.constant dense<0.000000e+00> : vector<128x128xf32>
    %31 = tpu.matmul %28, %30, %cst_30 {dimension_numbers = #tpu.dot_dimension_numbers<[1], [0], [0], [1], [0, 0, 1, 1], [], []>} : vector<128x128xbf16>, vector<128x128xbf16>, vector<128x128xf32> -> vector<128x128xf32>
    %c1 = arith.constant 1 : index
    %c0_31 = arith.constant 0 : index
    %32 = vector.load %arg10[%c1, %c0_31] : memref<232x128xbf16, #tpu.memory_space<vmem>>, vector<128x128xbf16>
    %c1_32 = arith.constant 1 : index
    %c0_33 = arith.constant 0 : index
    %c0_34 = arith.constant 0 : index
    %33 = vector.load %arg6[%c1_32, %c0_33, %c0_34] : memref<9x128x128xbf16, #tpu.memory_space<vmem>>, vector<1x128x128xbf16>
    %34 = vector.shape_cast %33 : vector<1x128x128xbf16> to vector<128x128xbf16>
    %cst_35 = arith.constant dense<0.000000e+00> : vector<128x128xf32>
    %35 = tpu.matmul %32, %34, %cst_35 {dimension_numbers = #tpu.dot_dimension_numbers<[1], [0], [0], [1], [0, 0, 1, 1], [], []>} : vector<128x128xbf16>, vector<128x128xbf16>, vector<128x128xf32> -> vector<128x128xf32>
    %36 = arith.addf %31, %35 : vector<128x128xf32>
    %c2 = arith.constant 2 : index
    %c0_36 = arith.constant 0 : index
    %37 = vector.load %arg10[%c2, %c0_36] : memref<232x128xbf16, #tpu.memory_space<vmem>>, vector<128x128xbf16>
    %c2_37 = arith.constant 2 : index
    %c0_38 = arith.constant 0 : index
    %c0_39 = arith.constant 0 : index
    %38 = vector.load %arg6[%c2_37, %c0_38, %c0_39] : memref<9x128x128xbf16, #tpu.memory_space<vmem>>, vector<1x128x128xbf16>
    %39 = vector.shape_cast %38 : vector<1x128x128xbf16> to vector<128x128xbf16>
    %cst_40 = arith.constant dense<0.000000e+00> : vector<128x128xf32>
    %40 = tpu.matmul %37, %39, %cst_40 {dimension_numbers = #tpu.dot_dimension_numbers<[1], [0], [0], [1], [0, 0, 1, 1], [], []>} : vector<128x128xbf16>, vector<128x128xbf16>, vector<128x128xf32> -> vector<128x128xf32>
    %41 = arith.addf %36, %40 : vector<128x128xf32>
    %c16 = arith.constant 16 : index
    %c0_41 = arith.constant 0 : index
    %42 = vector.load %arg10[%c16, %c0_41] : memref<232x128xbf16, #tpu.memory_space<vmem>>, vector<128x128xbf16>
    %c3 = arith.constant 3 : index
    %c0_42 = arith.constant 0 : index
    %c0_43 = arith.constant 0 : index
    %43 = vector.load %arg6[%c3, %c0_42, %c0_43] : memref<9x128x128xbf16, #tpu.memory_space<vmem>>, vector<1x128x128xbf16>
    %44 = vector.shape_cast %43 : vector<1x128x128xbf16> to vector<128x128xbf16>
    %cst_44 = arith.constant dense<0.000000e+00> : vector<128x128xf32>
    %45 = tpu.matmul %42, %44, %cst_44 {dimension_numbers = #tpu.dot_dimension_numbers<[1], [0], [0], [1], [0, 0, 1, 1], [], []>} : vector<128x128xbf16>, vector<128x128xbf16>, vector<128x128xf32> -> vector<128x128xf32>
    %46 = arith.addf %41, %45 : vector<128x128xf32>
    %c17 = arith.constant 17 : index
    %c0_45 = arith.constant 0 : index
    %47 = vector.load %arg10[%c17, %c0_45] : memref<232x128xbf16, #tpu.memory_space<vmem>>, vector<128x128xbf16>
    %c4 = arith.constant 4 : index
    %c0_46 = arith.constant 0 : index
    %c0_47 = arith.constant 0 : index
    %48 = vector.load %arg6[%c4, %c0_46, %c0_47] : memref<9x128x128xbf16, #tpu.memory_space<vmem>>, vector<1x128x128xbf16>
    %49 = vector.shape_cast %48 : vector<1x128x128xbf16> to vector<128x128xbf16>
    %cst_48 = arith.constant dense<0.000000e+00> : vector<128x128xf32>
    %50 = tpu.matmul %47, %49, %cst_48 {dimension_numbers = #tpu.dot_dimension_numbers<[1], [0], [0], [1], [0, 0, 1, 1], [], []>} : vector<128x128xbf16>, vector<128x128xbf16>, vector<128x128xf32> -> vector<128x128xf32>
    %51 = arith.addf %46, %50 : vector<128x128xf32>
    %c18 = arith.constant 18 : index
    %c0_49 = arith.constant 0 : index
    %52 = vector.load %arg10[%c18, %c0_49] : memref<232x128xbf16, #tpu.memory_space<vmem>>, vector<128x128xbf16>
    %c5 = arith.constant 5 : index
    %c0_50 = arith.constant 0 : index
    %c0_51 = arith.constant 0 : index
    %53 = vector.load %arg6[%c5, %c0_50, %c0_51] : memref<9x128x128xbf16, #tpu.memory_space<vmem>>, vector<1x128x128xbf16>
    %54 = vector.shape_cast %53 : vector<1x128x128xbf16> to vector<128x128xbf16>
    %cst_52 = arith.constant dense<0.000000e+00> : vector<128x128xf32>
    %55 = tpu.matmul %52, %54, %cst_52 {dimension_numbers = #tpu.dot_dimension_numbers<[1], [0], [0], [1], [0, 0, 1, 1], [], []>} : vector<128x128xbf16>, vector<128x128xbf16>, vector<128x128xf32> -> vector<128x128xf32>
    %56 = arith.addf %51, %55 : vector<128x128xf32>
    %c32 = arith.constant 32 : index
    %c0_53 = arith.constant 0 : index
    %57 = vector.load %arg10[%c32, %c0_53] : memref<232x128xbf16, #tpu.memory_space<vmem>>, vector<128x128xbf16>
    %c6 = arith.constant 6 : index
    %c0_54 = arith.constant 0 : index
    %c0_55 = arith.constant 0 : index
    %58 = vector.load %arg6[%c6, %c0_54, %c0_55] : memref<9x128x128xbf16, #tpu.memory_space<vmem>>, vector<1x128x128xbf16>
    %59 = vector.shape_cast %58 : vector<1x128x128xbf16> to vector<128x128xbf16>
    %cst_56 = arith.constant dense<0.000000e+00> : vector<128x128xf32>
    %60 = tpu.matmul %57, %59, %cst_56 {dimension_numbers = #tpu.dot_dimension_numbers<[1], [0], [0], [1], [0, 0, 1, 1], [], []>} : vector<128x128xbf16>, vector<128x128xbf16>, vector<128x128xf32> -> vector<128x128xf32>
    %61 = arith.addf %56, %60 : vector<128x128xf32>
    %c33 = arith.constant 33 : index
    %c0_57 = arith.constant 0 : index
    %62 = vector.load %arg10[%c33, %c0_57] : memref<232x128xbf16, #tpu.memory_space<vmem>>, vector<128x128xbf16>
    %c7 = arith.constant 7 : index
    %c0_58 = arith.constant 0 : index
    %c0_59 = arith.constant 0 : index
    %63 = vector.load %arg6[%c7, %c0_58, %c0_59] : memref<9x128x128xbf16, #tpu.memory_space<vmem>>, vector<1x128x128xbf16>
    %64 = vector.shape_cast %63 : vector<1x128x128xbf16> to vector<128x128xbf16>
    %cst_60 = arith.constant dense<0.000000e+00> : vector<128x128xf32>
    %65 = tpu.matmul %62, %64, %cst_60 {dimension_numbers = #tpu.dot_dimension_numbers<[1], [0], [0], [1], [0, 0, 1, 1], [], []>} : vector<128x128xbf16>, vector<128x128xbf16>, vector<128x128xf32> -> vector<128x128xf32>
    %66 = arith.addf %61, %65 : vector<128x128xf32>
    %c34 = arith.constant 34 : index
    %c0_61 = arith.constant 0 : index
    %67 = vector.load %arg10[%c34, %c0_61] : memref<232x128xbf16, #tpu.memory_space<vmem>>, vector<128x128xbf16>
    %c8 = arith.constant 8 : index
    %c0_62 = arith.constant 0 : index
    %c0_63 = arith.constant 0 : index
    %68 = vector.load %arg6[%c8, %c0_62, %c0_63] : memref<9x128x128xbf16, #tpu.memory_space<vmem>>, vector<1x128x128xbf16>
    %69 = vector.shape_cast %68 : vector<1x128x128xbf16> to vector<128x128xbf16>
    %cst_64 = arith.constant dense<0.000000e+00> : vector<128x128xf32>
    %70 = tpu.matmul %67, %69, %cst_64 {dimension_numbers = #tpu.dot_dimension_numbers<[1], [0], [0], [1], [0, 0, 1, 1], [], []>} : vector<128x128xbf16>, vector<128x128xbf16>, vector<128x128xf32> -> vector<128x128xf32>
    %71 = arith.addf %66, %70 : vector<128x128xf32>
    %72 = vector.broadcast %26 : vector<1x128xf32> to vector<128x128xf32>
    %73 = arith.mulf %71, %72 : vector<128x128xf32>
    %74 = vector.broadcast %27 : vector<1x128xf32> to vector<128x128xf32>
    %75 = arith.addf %73, %74 : vector<128x128xf32>
    %cst_65 = arith.constant 0.000000e+00 : f32
    %76 = vector.broadcast %cst_65 : f32 to vector<128x128xf32>
    %77 = arith.maximumf %75, %76 : vector<128x128xf32>
    %78 = arith.truncf %77 : vector<128x128xf32> to vector<128x128xbf16>
    %c0_66 = arith.constant 0 : index
    %c0_67 = arith.constant 0 : index
    %c0_68 = arith.constant 0 : index
    %c0_69 = arith.constant 0 : index
    %79 = vector.load %arg9[%c0_66, %c0_67, %c0_68, %c0_69] : memref<1x1x192x128xbf16, #tpu.memory_space<vmem>>, vector<1x1x128x128xbf16>
    %80 = vector.shape_cast %79 : vector<1x1x128x128xbf16> to vector<128x128xbf16>
    %81 = vector.shape_cast %78 : vector<128x128xbf16> to vector<1x1x128x128xbf16>
    tpu.vector_store %arg9[%c0_66, %c0_67, %c0_68, %c0_69], %81 {strides = array<i32>} : memref<1x1x192x128xbf16, #tpu.memory_space<vmem>>, vector<1x1x128x128xbf16>,
    %c128_70 = arith.constant 128 : index
    %c0_71 = arith.constant 0 : index
    %82 = vector.load %arg10[%c128_70, %c0_71] : memref<232x128xbf16, #tpu.memory_space<vmem>>, vector<64x128xbf16>
    %c0_72 = arith.constant 0 : index
    %c0_73 = arith.constant 0 : index
    %c0_74 = arith.constant 0 : index
    %83 = vector.load %arg6[%c0_72, %c0_73, %c0_74] : memref<9x128x128xbf16, #tpu.memory_space<vmem>>, vector<1x128x128xbf16>
    %84 = vector.shape_cast %83 : vector<1x128x128xbf16> to vector<128x128xbf16>
    %cst_75 = arith.constant dense<0.000000e+00> : vector<64x128xf32>
    %85 = tpu.matmul %82, %84, %cst_75 {dimension_numbers = #tpu.dot_dimension_numbers<[1], [0], [0], [1], [0, 0, 1, 1], [], []>} : vector<64x128xbf16>, vector<128x128xbf16>, vector<64x128xf32> -> vector<64x128xf32>
    %c129 = arith.constant 129 : index
    %c0_76 = arith.constant 0 : index
    %86 = vector.load %arg10[%c129, %c0_76] : memref<232x128xbf16, #tpu.memory_space<vmem>>, vector<64x128xbf16>
    %c1_77 = arith.constant 1 : index
    %c0_78 = arith.constant 0 : index
    %c0_79 = arith.constant 0 : index
    %87 = vector.load %arg6[%c1_77, %c0_78, %c0_79] : memref<9x128x128xbf16, #tpu.memory_space<vmem>>, vector<1x128x128xbf16>
    %88 = vector.shape_cast %87 : vector<1x128x128xbf16> to vector<128x128xbf16>
    %cst_80 = arith.constant dense<0.000000e+00> : vector<64x128xf32>
    %89 = tpu.matmul %86, %88, %cst_80 {dimension_numbers = #tpu.dot_dimension_numbers<[1], [0], [0], [1], [0, 0, 1, 1], [], []>} : vector<64x128xbf16>, vector<128x128xbf16>, vector<64x128xf32> -> vector<64x128xf32>
    %90 = arith.addf %85, %89 : vector<64x128xf32>
    %c130 = arith.constant 130 : index
    %c0_81 = arith.constant 0 : index
    %91 = vector.load %arg10[%c130, %c0_81] : memref<232x128xbf16, #tpu.memory_space<vmem>>, vector<64x128xbf16>
    %c2_82 = arith.constant 2 : index
    %c0_83 = arith.constant 0 : index
    %c0_84 = arith.constant 0 : index
    %92 = vector.load %arg6[%c2_82, %c0_83, %c0_84] : memref<9x128x128xbf16, #tpu.memory_space<vmem>>, vector<1x128x128xbf16>
    %93 = vector.shape_cast %92 : vector<1x128x128xbf16> to vector<128x128xbf16>
    %cst_85 = arith.constant dense<0.000000e+00> : vector<64x128xf32>
    %94 = tpu.matmul %91, %93, %cst_85 {dimension_numbers = #tpu.dot_dimension_numbers<[1], [0], [0], [1], [0, 0, 1, 1], [], []>} : vector<64x128xbf16>, vector<128x128xbf16>, vector<64x128xf32> -> vector<64x128xf32>
    %95 = arith.addf %90, %94 : vector<64x128xf32>
    %c144 = arith.constant 144 : index
    %c0_86 = arith.constant 0 : index
    %96 = vector.load %arg10[%c144, %c0_86] : memref<232x128xbf16, #tpu.memory_space<vmem>>, vector<64x128xbf16>
    %c3_87 = arith.constant 3 : index
    %c0_88 = arith.constant 0 : index
    %c0_89 = arith.constant 0 : index
    %97 = vector.load %arg6[%c3_87, %c0_88, %c0_89] : memref<9x128x128xbf16, #tpu.memory_space<vmem>>, vector<1x128x128xbf16>
    %98 = vector.shape_cast %97 : vector<1x128x128xbf16> to vector<128x128xbf16>
    %cst_90 = arith.constant dense<0.000000e+00> : vector<64x128xf32>
    %99 = tpu.matmul %96, %98, %cst_90 {dimension_numbers = #tpu.dot_dimension_numbers<[1], [0], [0], [1], [0, 0, 1, 1], [], []>} : vector<64x128xbf16>, vector<128x128xbf16>, vector<64x128xf32> -> vector<64x128xf32>
    %100 = arith.addf %95, %99 : vector<64x128xf32>
    %c145 = arith.constant 145 : index
    %c0_91 = arith.constant 0 : index
    %101 = vector.load %arg10[%c145, %c0_91] : memref<232x128xbf16, #tpu.memory_space<vmem>>, vector<64x128xbf16>
    %c4_92 = arith.constant 4 : index
    %c0_93 = arith.constant 0 : index
    %c0_94 = arith.constant 0 : index
    %102 = vector.load %arg6[%c4_92, %c0_93, %c0_94] : memref<9x128x128xbf16, #tpu.memory_space<vmem>>, vector<1x128x128xbf16>
    %103 = vector.shape_cast %102 : vector<1x128x128xbf16> to vector<128x128xbf16>
    %cst_95 = arith.constant dense<0.000000e+00> : vector<64x128xf32>
    %104 = tpu.matmul %101, %103, %cst_95 {dimension_numbers = #tpu.dot_dimension_numbers<[1], [0], [0], [1], [0, 0, 1, 1], [], []>} : vector<64x128xbf16>, vector<128x128xbf16>, vector<64x128xf32> -> vector<64x128xf32>
    %105 = arith.addf %100, %104 : vector<64x128xf32>
    %c146 = arith.constant 146 : index
    %c0_96 = arith.constant 0 : index
    %106 = vector.load %arg10[%c146, %c0_96] : memref<232x128xbf16, #tpu.memory_space<vmem>>, vector<64x128xbf16>
    %c5_97 = arith.constant 5 : index
    %c0_98 = arith.constant 0 : index
    %c0_99 = arith.constant 0 : index
    %107 = vector.load %arg6[%c5_97, %c0_98, %c0_99] : memref<9x128x128xbf16, #tpu.memory_space<vmem>>, vector<1x128x128xbf16>
    %108 = vector.shape_cast %107 : vector<1x128x128xbf16> to vector<128x128xbf16>
    %cst_100 = arith.constant dense<0.000000e+00> : vector<64x128xf32>
    %109 = tpu.matmul %106, %108, %cst_100 {dimension_numbers = #tpu.dot_dimension_numbers<[1], [0], [0], [1], [0, 0, 1, 1], [], []>} : vector<64x128xbf16>, vector<128x128xbf16>, vector<64x128xf32> -> vector<64x128xf32>
    %110 = arith.addf %105, %109 : vector<64x128xf32>
    %c160 = arith.constant 160 : index
    %c0_101 = arith.constant 0 : index
    %111 = vector.load %arg10[%c160, %c0_101] : memref<232x128xbf16, #tpu.memory_space<vmem>>, vector<64x128xbf16>
    %c6_102 = arith.constant 6 : index
    %c0_103 = arith.constant 0 : index
    %c0_104 = arith.constant 0 : index
    %112 = vector.load %arg6[%c6_102, %c0_103, %c0_104] : memref<9x128x128xbf16, #tpu.memory_space<vmem>>, vector<1x128x128xbf16>
    %113 = vector.shape_cast %112 : vector<1x128x128xbf16> to vector<128x128xbf16>
    %cst_105 = arith.constant dense<0.000000e+00> : vector<64x128xf32>
    %114 = tpu.matmul %111, %113, %cst_105 {dimension_numbers = #tpu.dot_dimension_numbers<[1], [0], [0], [1], [0, 0, 1, 1], [], []>} : vector<64x128xbf16>, vector<128x128xbf16>, vector<64x128xf32> -> vector<64x128xf32>
    %115 = arith.addf %110, %114 : vector<64x128xf32>
    %c161 = arith.constant 161 : index
    %c0_106 = arith.constant 0 : index
    %116 = vector.load %arg10[%c161, %c0_106] : memref<232x128xbf16, #tpu.memory_space<vmem>>, vector<64x128xbf16>
    %c7_107 = arith.constant 7 : index
    %c0_108 = arith.constant 0 : index
    %c0_109 = arith.constant 0 : index
    %117 = vector.load %arg6[%c7_107, %c0_108, %c0_109] : memref<9x128x128xbf16, #tpu.memory_space<vmem>>, vector<1x128x128xbf16>
    %118 = vector.shape_cast %117 : vector<1x128x128xbf16> to vector<128x128xbf16>
    %cst_110 = arith.constant dense<0.000000e+00> : vector<64x128xf32>
    %119 = tpu.matmul %116, %118, %cst_110 {dimension_numbers = #tpu.dot_dimension_numbers<[1], [0], [0], [1], [0, 0, 1, 1], [], []>} : vector<64x128xbf16>, vector<128x128xbf16>, vector<64x128xf32> -> vector<64x128xf32>
    %120 = arith.addf %115, %119 : vector<64x128xf32>
    %c162 = arith.constant 162 : index
    %c0_111 = arith.constant 0 : index
    %121 = vector.load %arg10[%c162, %c0_111] : memref<232x128xbf16, #tpu.memory_space<vmem>>, vector<64x128xbf16>
    %c8_112 = arith.constant 8 : index
    %c0_113 = arith.constant 0 : index
    %c0_114 = arith.constant 0 : index
    %122 = vector.load %arg6[%c8_112, %c0_113, %c0_114] : memref<9x128x128xbf16, #tpu.memory_space<vmem>>, vector<1x128x128xbf16>
    %123 = vector.shape_cast %122 : vector<1x128x128xbf16> to vector<128x128xbf16>
    %cst_115 = arith.constant dense<0.000000e+00> : vector<64x128xf32>
    %124 = tpu.matmul %121, %123, %cst_115 {dimension_numbers = #tpu.dot_dimension_numbers<[1], [0], [0], [1], [0, 0, 1, 1], [], []>} : vector<64x128xbf16>, vector<128x128xbf16>, vector<64x128xf32> -> vector<64x128xf32>
    %125 = arith.addf %120, %124 : vector<64x128xf32>
    %126 = vector.broadcast %26 : vector<1x128xf32> to vector<64x128xf32>
    %127 = arith.mulf %125, %126 : vector<64x128xf32>
    %128 = vector.broadcast %27 : vector<1x128xf32> to vector<64x128xf32>
    %129 = arith.addf %127, %128 : vector<64x128xf32>
    %cst_116 = arith.constant 0.000000e+00 : f32
    %130 = vector.broadcast %cst_116 : f32 to vector<64x128xf32>
    %131 = arith.maximumf %129, %130 : vector<64x128xf32>
    %132 = arith.truncf %131 : vector<64x128xf32> to vector<64x128xbf16>
    %c0_117 = arith.constant 0 : index
    %c0_118 = arith.constant 0 : index
    %c128_119 = arith.constant 128 : index
    %c0_120 = arith.constant 0 : index
    %133 = vector.load %arg9[%c0_117, %c0_118, %c128_119, %c0_120] : memref<1x1x192x128xbf16, #tpu.memory_space<vmem>>, vector<1x1x64x128xbf16>
    %134 = vector.shape_cast %133 : vector<1x1x64x128xbf16> to vector<64x128xbf16>
    %135 = vector.shape_cast %132 : vector<64x128xbf16> to vector<1x1x64x128xbf16>
    tpu.vector_store %arg9[%c0_117, %c0_118, %c128_119, %c0_120], %135 {strides = array<i32>} : memref<1x1x192x128xbf16, #tpu.memory_space<vmem>>, vector<1x1x64x128xbf16>,
    return
  }
  func.func @transform_0(%arg0: i32, %arg1: i32) -> (i32, i32, i32, i32) {
    %c0_i32 = arith.constant 0 : i32
    %c0_i32_0 = arith.constant 0 : i32
    %c0_i32_1 = arith.constant 0 : i32
    return %arg0, %arg1, %c0_i32, %c0_i32_0 : i32, i32, i32, i32
  }
  func.func @transform_1(%arg0: i32, %arg1: i32) -> (i32, i32) {
    %c0_i32 = arith.constant 0 : i32
    %c0_i32_0 = arith.constant 0 : i32
    %c0_i32_1 = arith.constant 0 : i32
    return %c0_i32, %c0_i32_0 : i32, i32
  }
  func.func @transform_2(%arg0: i32, %arg1: i32) -> (i32, i32) {
    %c0_i32 = arith.constant 0 : i32
    %c0_i32_0 = arith.constant 0 : i32
    %c0_i32_1 = arith.constant 0 : i32
    return %c0_i32, %c0_i32_0 : i32, i32
  }
  func.func @transform_3(%arg0: i32, %arg1: i32) -> (i32, i32) {
    %c0_i32 = arith.constant 0 : i32
    %c0_i32_0 = arith.constant 0 : i32
    %c0_i32_1 = arith.constant 0 : i32
    return %c0_i32, %c0_i32_0 : i32, i32
  }
  func.func @transform_4(%arg0: i32, %arg1: i32) -> (i32, i32, i32) {
    %c0_i32 = arith.constant 0 : i32
    %c0_i32_0 = arith.constant 0 : i32
    %c0_i32_1 = arith.constant 0 : i32
    %c0_i32_2 = arith.constant 0 : i32
    return %c0_i32, %c0_i32_0, %c0_i32_1 : i32, i32, i32
  }
  func.func @transform_5(%arg0: i32, %arg1: i32) -> (i32, i32) {
    %c0_i32 = arith.constant 0 : i32
    %c0_i32_0 = arith.constant 0 : i32
    %c0_i32_1 = arith.constant 0 : i32
    return %c0_i32, %c0_i32_0 : i32, i32
  }
  func.func @transform_6(%arg0: i32, %arg1: i32) -> (i32, i32) {
    %c0_i32 = arith.constant 0 : i32
    %c0_i32_0 = arith.constant 0 : i32
    %c0_i32_1 = arith.constant 0 : i32
    return %c0_i32, %c0_i32_0 : i32, i32
  }
  func.func @transform_7(%arg0: i32, %arg1: i32) -> (i32, i32, i32, i32) {
    %c0_i32 = arith.constant 0 : i32
    %c0_i32_0 = arith.constant 0 : i32
    %c0_i32_1 = arith.constant 0 : i32
    return %arg0, %arg1, %c0_i32, %c0_i32_0 : i32, i32, i32, i32
  }
}

</mosaic_0001>

<bundles_post_ra>
// kernel: double_conv_pallas.1
= control target key start
LH: loop header
LB: loop body
LE: loop exit
PB: predicated region body
PF: predicated region fallthrough
CT: control target
= control target key end

     0   :  { %s6941_s24 = smov 0   ;;  %s6943_s25 = smov 0   ;;  %s8286_s0 = inlined_call_operand.vmem [shape: bf16[2,1,232,40], index: 0, kind: input, shape index: {}]   ;;  %s8287_s1 = inlined_call_operand.vmem [shape: bf16[40,128], index: 1, kind: input, shape index: {}]   ;;  %s8288_s2 = inlined_call_operand.vmem [shape: f32[1,128], index: 2, kind: input, shape index: {}]   ;;  %s8289_s3 = inlined_call_operand.vmem [shape: f32[1,128], index: 3, kind: input, shape index: {}]   ;;  %s8290_s4 = inlined_call_operand.vmem [shape: bf16[9,128,128], index: 4, kind: input, shape index: {}]   ;;  %s8291_s5 = inlined_call_operand.vmem [shape: f32[1,128], index: 5, kind: input, shape index: {}]   ;;  %s8292_s6 = inlined_call_operand.vmem [shape: f32[1,128], index: 6, kind: input, shape index: {}]   ;;  %s8293_s7 = inlined_call_operand.vmem [shape: bf16[2,1,192,128], index: 7, kind: output, shape index: {}]  }
   0x1   :  { %s6945_s26 = smov 0  }
   0x2 LB: > { %s29_s27 = sadd.s32 1, %s6893_s25  ;;  %p4999_p0 = scmp.ge.s32.totalorder %s6897_s26, 1  ;;  %s6897_s26 = sphi %s6945_s26, %s17_s26   ;;  %s6893_s25 = sphi %s6943_s25, %s8369_s25   ;;  %s6889_s24 = sphi %s6941_s24, %s8368_s24  }
   0x3   : > { %p31_p1 = scmp.ge.s32.totalorder %s29_s27, 2  ;;  %p257_p2 = scmp.lt.s32.totalorder %s6897_s26, 3 }
   0x5   : > { %s8371_s27 = smov (%p31_p1, %s29_s27), 0  ;;  %p258_p3 = pnand %p4999_p0, %p257_p2 }
   0x7   : > { %261 = sbr.rel (%p258_p3) target bundleno = 730 (0x2da), region = 48 }
   0xc   : > { %v6638_v0 = vld [vmem:[%s8287_s1 + $0x10] ss:$0 sps:$4 sm:$0xff]   ;;  %vm419_vm0 = vcmask 1043456   ;;  %v6639_v1 = vld [vmem:[%s8287_s1 + $0x8] sm:$0xff]   ;;  %p297_p4 = scmp.lt.s32.totalorder %s6889_s24, 1  ;;  %v6640_v4 = vld [vmem:[%s8287_s1] sm:$0xff]  }
   0xd   : > { %6609 = vmatprep.subr.msk.bf16.mxu0 %vm419_vm0, %v6638_v0  ;;  %v421_v2 = vsel %vm419_vm0, %v6638_v0, 0  ;;  %v6645_v3 = vld [vmem:[%s8287_s1 + $0x10] ss:$0 sps:$4 sm:$0xff]   ;;  %v6899_v5 = vmov 0.0   ;;  %v6647_v7 = vld [vmem:[%s8287_s1 + $0x8] sm:$0xff]   ;;  %vm6900_vm1 = vmmov 0  }
   0xe   : > { %6050 = vmatpush3.bf16.msra.mxu0 %v421_v2  ;;  %s8373_s24 = smov (!%p297_p4, %s6889_s24), 1  ;;  %6071 = vmatprep.subr.bf16.mxu1 %v6899_v5  ;;  %v748_v6 = vsel %vm419_vm0, %v6645_v3, 0  ;;  %vm394_vm2 = vcmask 326656   ;;  %v6649_v8 = vld [vmem:[%s8287_s1] sm:$0xff]   ;;  %v6658_v10 = vld [vmem:[%s8290_s4 + $0x38] sm:$0xff]   ;;  %v6659_v13 = vld [vmem:[%s8290_s4 + $0x30] sm:$0xff]  }
   0xf   : > { %6051 = vmatprep.subr.bf16.mxu0 %v6639_v1  ;;  %s6610_s13 = smul.u32 116, %s8373_s24  ;;  %6072 = vmatpush3.bf16.msra.mxu1 %v748_v6  ;;  %v6660_v15 = vld [vmem:[%s8290_s4 + $0x28] sm:$0xff]   ;;  %v6662_v26 = vld [vmem:[%s8290_s4 + $0x78] sm:$0xff]   ;;  %v6661_v27 = vld [vmem:[%s8290_s4 + $0x20] sm:$0xff]   ;;  %vm1038_vm3 = vsmask.f32 7424 }
  0x10   : > { %6077 = vmatprep.mubr.msk.bf16.mxu1 %vm6900_vm1, %v6899_v5  ;;  %6073 = vmatprep.subr.bf16.mxu1 %v6899_v5  ;;  %v6663_v28 = vld [vmem:[%s8290_s4 + $0x70] sm:$0xff]   ;;  %v6664_v29 = vld [vmem:[%s8290_s4 + $0x18] sm:$0xff]   ;;  %v6665_v30 = vld [vmem:[%s8290_s4 + $0x68] sm:$0xff]   ;;  %vm1434_vm4 = vcmask 1046528  }
  0x11   : > { %s6981_s18 = scalar_lea.vmem %s8286_s0, %s6610_s13  ;;  %v6666_v31 = vld [vmem:[%s8290_s4 + $0x10] sm:$0xff]   ;;  %v6667_v32 = vld [vmem:[%s8290_s4 + $0x60] sm:$0xff]   ;;  %v6668_v33 = vld [vmem:[%s8290_s4 + $0x8] sm:$0xff]   ;;  %s6611_s13 = smul.u32 96, %s8373_s24 }
  0x12   : > { %6052 = vmatpush3.bf16.msra.mxu0 %v6639_v1  ;;  %v6641_v9 = vld [vmem:[%s6981_s18] sm:$0xff]   ;;  %v6642_v11 = vld [vmem:[%s6981_s18 + $0x8] sm:$0xff]   ;;  %v6643_v12 = vld [vmem:[%s6981_s18 + $0x10] sm:$0xff]  }
  0x13   : > { %6053 = vmatprep.subr.bf16.mxu0 %v6640_v4  ;;  %6074 = vmatpush3.bf16.msra.mxu1 %v6647_v7  ;;  %v6650_v14 = vld [vmem:[%s6981_s18 + $0x40] sm:$0xff]   ;;  %v6644_v16 = vld [vmem:[%s6981_s18 + $0x18] sm:$0xff]   ;;  %v6653_v18 = vld [vmem:[%s6981_s18 + $0x48] sm:$0xff]   ;;  %s8147_s15 = scalar_lea.vmem %s8293_s7, %s6611_s13 }
  0x14   : > { %6055 = vmatprep.mubr.msk.bf16.mxu0 %vm394_vm2, %v6641_v9  ;;  %6075 = vmatprep.subr.bf16.mxu1 %v6899_v5  ;;  %v6646_v17 = vld [vmem:[%s6981_s18 + $0x20] sm:$0xff]   ;;  %v6648_v19 = vld [vmem:[%s6981_s18 + $0x28] sm:$0xff]   ;;  %v6651_v20 = vld [vmem:[%s6981_s18 + $0x30] sm:$0xff]  }
  0x15   : > { %v6654_v21 = vld [vmem:[%s6981_s18 + $0x50] sm:$0xff]   ;;  %v6652_v22 = vld [vmem:[%s6981_s18 + $0x38] sm:$0xff]   ;;  %v6656_v24 = vld [vmem:[%s6981_s18 + $0x60] sm:$0xff]  }
  0x16   : > { %6054 = vmatpush3.bf16.msra.mxu0 %v6640_v4  ;;  %v6655_v23 = vld [vmem:[%s6981_s18 + $0x58] sm:$0xff]   ;;  %v6657_v25 = vld [vmem:[%s6981_s18 + $0x68] sm:$0xff]   ;;  %v6669_v34 = vld [vmem:[%s6981_s18 + $0x70] ss:$0 sps:$4 sm:$0xff]  }
  0x17   : > { %6076 = vmatpush3.bf16.msra.mxu1 %v6649_v8  ;;  %6105 = vmatprep.subr.bf16.mxu0 %v6662_v26  ;;  %v6670_v35 = vld [vmem:[%s8290_s4 + $0x58] sm:$0xff]   ;;  %v6671_v36 = vld [vmem:[%s8290_s4] sm:$0xff]   ;;  %v6672_v37 = vld [vmem:[%s8290_s4 + $0x50] sm:$0xff]  }
  0x18   : > { %6137 = vmatprep.subr.bf16.mxu1 %v6658_v10  ;;  %v7067_v38 = vld [vmem:[%s8290_s4 + $0xf8] sm:$0xff]   ;;  %v6677_v39 = vld [vmem:[%s8290_s4 + $0x48] sm:$0xff]   ;;  %v6679_v40 = vld [vmem:[%s8290_s4 + $0x40] sm:$0xff]  }
  0x19   : > { %6056 = vmatmul.mubr.msk.bf16.vlgmr.msra.gmra.mxu0 %vm394_vm2, %v6642_v11  ;;  %v7079_v41 = vld [vmem:[%s8290_s4 + $0xb8] sm:$0xff]   ;;  %v7085_v42 = vld [vmem:[%s8288_s2] ss:$0 sm:$0xff] }
  0x1a   : > { %6059 = vmatprep.mubr.msk.bf16.mxu0 %vm394_vm2, %v6643_v12  ;;  %6078 = vmatmul.mubr.msk.bf16.vlgmr.msra.gmra.mxu1 %vm394_vm2, %v6650_v14  ;;  %v7091_v45 = vld [vmem:[%s8289_s3] ss:$0 sm:$0xff] }
  0x1b   : > { %6081 = vmatprep.mubr.msk.bf16.mxu1 %vm6900_vm1, %v6899_v5  ;;  %6138 = vmatpush3.bf16.msra.mxu1 %v6658_v10 }
  0x1c   : > { %6139 = vmatprep.subr.bf16.mxu1 %v6659_v13  ;;  %6106 = vmatpush3.bf16.msra.mxu0 %v6662_v26 }
  0x1d   : > { %6107 = vmatprep.subr.bf16.mxu0 %v6663_v28 }
  0x1f   : > { %6140 = vmatpush3.bf16.msra.mxu1 %v6659_v13 }
  0x20   : > { %6141 = vmatprep.subr.bf16.mxu1 %v6660_v15  ;;  %6108 = vmatpush3.bf16.msra.mxu0 %v6663_v28 }
  0x21   : > { %6060 = vmatmul.mubr.msk.bf16.gmra.mxu0 %vm394_vm2, %v6644_v16  ;;  %6109 = vmatprep.subr.bf16.mxu0 %v6665_v30 }
  0x22   : > { %6063 = vmatprep.mubr.msk.bf16.mxu0 %vm394_vm2, %v6646_v17  ;;  %6082 = vmatmul.mubr.msk.bf16.gmra.mxu1 %vm394_vm2, %v6653_v18 }
  0x23   : > { %6085 = vmatprep.mubr.msk.bf16.mxu1 %vm6900_vm1, %v6899_v5  ;;  %6142 = vmatpush3.bf16.msra.mxu1 %v6660_v15 }
  0x24   : > { %6143 = vmatprep.subr.bf16.mxu1 %v6661_v27  ;;  %6110 = vmatpush3.bf16.msra.mxu0 %v6665_v30 }
  0x25   : > { %6111 = vmatprep.subr.bf16.mxu0 %v6667_v32 }
  0x27   : > { %6144 = vmatpush3.bf16.msra.mxu1 %v6661_v27 }
  0x28   : > { %6145 = vmatprep.subr.bf16.mxu1 %v6664_v29  ;;  %6112 = vmatpush3.bf16.msra.mxu0 %v6667_v32 }
  0x29   : > { %6064 = vmatmul.mubr.msk.bf16.gmra.mxu0 %vm394_vm2, %v6648_v19  ;;  %6113 = vmatprep.subr.bf16.mxu0 %v6670_v35 }
  0x2a   : > { %6067 = vmatprep.mubr.msk.bf16.mxu0 %vm394_vm2, %v6651_v20  ;;  %6086 = vmatmul.mubr.msk.bf16.gmra.mxu1 %vm394_vm2, %v6654_v21 }
  0x2b   : > { %6089 = vmatprep.mubr.msk.bf16.mxu1 %vm6900_vm1, %v6899_v5  ;;  %6146 = vmatpush3.bf16.msra.mxu1 %v6664_v29 }
  0x2c   : > { %6147 = vmatprep.subr.bf16.mxu1 %v6666_v31  ;;  %6114 = vmatpush3.bf16.msra.mxu0 %v6670_v35 }
  0x2d   : > { %6115 = vmatprep.subr.bf16.mxu0 %v6672_v37 }
  0x2f   : > { %6148 = vmatpush3.bf16.msra.mxu1 %v6666_v31 }
  0x30   : > { %6149 = vmatprep.subr.bf16.mxu1 %v6668_v33  ;;  %6116 = vmatpush3.bf16.msra.mxu0 %v6672_v37 }
  0x31   : > { %6068 = vmatmul.mubr.msk.bf16.gmra.mxu0 %vm394_vm2, %v6652_v22  ;;  %6117 = vmatprep.subr.bf16.mxu0 %v6677_v39 }
  0x32   : > { %6090 = vmatmul.mubr.msk.bf16.gmra.mxu1 %vm394_vm2, %v6655_v23 }
  0x33   : > { %6093 = vmatprep.mubr.msk.bf16.mxu1 %vm6900_vm1, %v6899_v5  ;;  %6150 = vmatpush3.bf16.msra.mxu1 %v6668_v33 }
  0x34   : > { %6151 = vmatprep.subr.bf16.mxu1 %v6671_v36  ;;  %6118 = vmatpush3.bf16.msra.mxu0 %v6677_v39 }
  0x35   : > { %6119 = vmatprep.subr.bf16.mxu0 %v6679_v40 }
  0x37   : > { %6152 = vmatpush3.bf16.msra.mxu1 %v6671_v36 }
  0x38   : > { %6201 = vmatprep.subr.bf16.mxu1 %v7067_v38  ;;  %6120 = vmatpush3.bf16.msra.mxu0 %v6679_v40 }
  0x39   : > { %6169 = vmatprep.subr.bf16.mxu0 %v7079_v41 }
  0x3a   : > { %6094 = vmatmul.mubr.msk.bf16.gmra.mxu1 %vm394_vm2, %v6656_v24 }
  0x3b   : > { %6097 = vmatprep.mubr.msk.bf16.mxu1 %vm6900_vm1, %v6899_v5 }
  0x42   : > { %6098 = vmatmul.mubr.msk.bf16.gmra.mxu1 %vm394_vm2, %v6657_v25 }
  0x43   : > { %6101 = vmatprep.mubr.msk.bf16.mxu1 %vm6900_vm1, %v6899_v5 }
  0x4a   : > { %6102 = vmatmul.mubr.msk.bf16.gmra.mxu1 %vm394_vm2, %v6669_v34 }
  0xd9   : > { %v6057_v43 = vpop.f32.mrf.mxu0 }
  0xda   : > { %v528_v44 = vmul.f32 %v6057_v43, %v7085_v42  ;;  %v784_v48 = vpop.f32.mrf.mxu1 }
  0xdb   : > { %v457_v46 = vpop.f32.mrf.mxu0  ;;  %v838_v50 = vmul.f32 %v7085_v42, %v784_v48 }
  0xdc   : > { %v526_v47 = vmul.f32 %v7085_v42, %v457_v46  ;;  %v550_v51 = vadd.f32 %v7091_v45, %v528_v44  ;;  %v6079_v53 = vpop.f32.mrf.mxu1 }
  0xdd   : > { %v6058_v49 = vpop.f32.mrf.mxu0  ;;  %v851_v55 = vadd.f32 %v7091_v45, %v838_v50 }
  0xde   : > { %v529_v52 = vmul.f32 %v6058_v49, %v7085_v42  ;;  %v548_v56 = vadd.f32 %v7091_v45, %v526_v47  ;;  %v787_v59 = vpop.f32.mrf.mxu1  ;;  %v566_v62 = vmax.f32 %v550_v51, 0.0 }
  0xdf   : > { %v460_v54 = vpop.f32.mrf.mxu0  ;;  %v839_v61 = vmul.f32 %v7085_v42, %v787_v59  ;;  %v864_v4 = vmax.f32 %v851_v55, 0.0 }
  0xe0   : > { %v551_v57 = vadd.f32 %v7091_v45, %v529_v52  ;;  %v527_v58 = vmul.f32 %v7085_v42, %v460_v54  ;;  %v6080_v2 = vpop.f32.mrf.mxu1  ;;  %v564_v6 = vmax.f32 %v548_v56, 0.0 }
  0xe1   : > { %v6061_v60 = vpop.f32.mrf.mxu0  ;;  %v852_v5 = vadd.f32 %v7091_v45, %v839_v61 }
  0xe2   : > { %v567_v63 = vmax.f32 %v551_v57, 0.0  ;;  %v549_v0 = vadd.f32 %v7091_v45, %v527_v58  ;;  %v532_v1 = vmul.f32 %v6061_v60, %v7085_v42  ;;  %v792_v10 = vpop.f32.mrf.mxu1 }
  0xe3   : > { %v473_v3 = vpop.f32.mrf.mxu0  ;;  %v865_v12 = vmax.f32 %v852_v5, 0.0  ;;  %v840_v13 = vmul.f32 %v7085_v42, %v792_v10 }
  0xe4   : > { %v5630_v7 = vpack.c.bf16 %v567_v63, %v566_v62  ;;  %v565_v8 = vmax.f32 %v549_v0, 0.0  ;;  %v530_v9 = vmul.f32 %v7085_v42, %v473_v3  ;;  %v554_v15 = vadd.f32 %v7091_v45, %v532_v1  ;;  %v6083_v17 = vpop.f32.mrf.mxu1  ;;  %v6678_v62 = vld [vmem:[%s8290_s4 + $0xf0] sm:$0xff]  }
  0xe5   : > { %v6062_v11 = vpop.f32.mrf.mxu0  ;;  %v5665_v19 = vpack.c.bf16 %v865_v12, %v864_v4  ;;  %v853_v20 = vadd.f32 %v7091_v45, %v840_v13 }
  0xe6   : > { %5752 = vst [vmem:[#allocation2 + $0x8] sm:$0xff] %v5630_v7   ;;  %v5625_v14 = vpack.c.bf16 %v565_v8, %v564_v6  ;;  %v533_v16 = vmul.f32 %v6062_v11, %v7085_v42  ;;  %v552_v21 = vadd.f32 %v7091_v45, %v530_v9  ;;  %v795_v24 = vpop.f32.mrf.mxu1  ;;  %v570_v27 = vmax.f32 %v554_v15, 0.0  ;;  %v6681_v11 = vld [vmem:[%s8290_s4 + $0xe8] sm:$0xff]  }
  0xe7   : > { %v476_v18 = vpop.f32.mrf.mxu0  ;;  %5759 = vst [vmem:[#allocation2 + $0x40] sm:$0xff] %v5665_v19   ;;  %v841_v26 = vmul.f32 %v7085_v42, %v795_v24  ;;  %v866_v33 = vmax.f32 %v853_v20, 0.0 }
  0xe8   : > { %5626 = vst [vmem:[#allocation2] sm:$0xff] %v5625_v14   ;;  %v555_v22 = vadd.f32 %v7091_v45, %v533_v16  ;;  %v531_v23 = vmul.f32 %v7085_v42, %v476_v18  ;;  %v6084_v31 = vpop.f32.mrf.mxu1  ;;  %v568_v35 = vmax.f32 %v552_v21, 0.0 }
  0xe9   : > { %v6065_v25 = vpop.f32.mrf.mxu0  ;;  %v854_v34 = vadd.f32 %v7091_v45, %v841_v26 }
  0xea   : > { %v571_v28 = vmax.f32 %v555_v22, 0.0  ;;  %v553_v29 = vadd.f32 %v7091_v45, %v531_v23  ;;  %v536_v30 = vmul.f32 %v6065_v25, %v7085_v42  ;;  %v7118_v40 = vpop.f32.mrf.mxu1 }
  0xeb   : > { %v489_v32 = vpop.f32.mrf.mxu0  ;;  %v867_v46 = vmax.f32 %v854_v34, 0.0 }
  0xec   : > { %v5640_v36 = vpack.c.bf16 %v571_v28, %v570_v27  ;;  %v569_v37 = vmax.f32 %v553_v29, 0.0  ;;  %v534_v39 = vmul.f32 %v7085_v42, %v489_v32  ;;  %v558_v43 = vadd.f32 %v7091_v45, %v536_v30  ;;  %v6087_v49 = vpop.f32.mrf.mxu1  ;;  %v6684_v29 = vld [vmem:[%s8290_s4 + $0xe0] sm:$0xff]  }
  0xed   : > { %v6066_v44 = vpop.f32.mrf.mxu0  ;;  %v7125_v54 = vld [vmem:[#allocation2 + $0x8] sm:$0xff]   ;;  %v5670_v55 = vpack.c.bf16 %v867_v46, %v866_v33 }
  0xee   : > { %5754 = vst [vmem:[#allocation2 + $0x18] sm:$0xff] %v5640_v36   ;;  %v5635_v47 = vpack.c.bf16 %v569_v37, %v568_v35  ;;  %v537_v48 = vmul.f32 %v6066_v44, %v7085_v42  ;;  %v556_v50 = vadd.f32 %v7091_v45, %v534_v39  ;;  %v7130_v59 = vpop.f32.mrf.mxu1  ;;  %v574_v60 = vmax.f32 %v558_v43, 0.0  ;;  %v6686_v43 = vld [vmem:[%s8290_s4 + $0xb0] sm:$0xff]  }
  0xef   : > { %v492_v51 = vpop.f32.mrf.mxu0  ;;  %v945_v52 = vld [vmem:[#allocation2] sm:$0xf]  ;;  %v7123_v53 = vld [vmem:[#allocation2 + $0x4] sm:$0xf]  ;;  %5760 = vst [vmem:[#allocation2 + $0x48] sm:$0xff] %v5670_v55   ;;  %v1047_v6 = vshll.u32 %v7125_v54, 16 }
  0xf0   : > { %5753 = vst [vmem:[#allocation2 + $0x10] sm:$0xff] %v5635_v47   ;;  %v559_v56 = vadd.f32 %v7091_v45, %v537_v48  ;;  %v535_v57 = vmul.f32 %v7085_v42, %v492_v51  ;;  %v5085_v58 = vcombine.low %v945_v52, %v7123_v53  ;;  %v6088_v3 = vpop.f32.mrf.mxu1  ;;  %v572_v4 = vmax.f32 %v556_v50, 0.0 }
  0xf1   : > { %v6069_v61 = vpop.f32.mrf.mxu0  ;;  %v1049_v21 = vrot.slane %v1047_v6, 1  ;;  %v1051_v28 = vshrl.u32 %v7125_v54, 16  ;;  %v843_v3 = vmul.f32 %v7085_v42, %v7130_v59 }
  0xf2   : > { %v575_v63 = vmax.f32 %v559_v56, 0.0  ;;  %v557_v0 = vadd.f32 %v7091_v45, %v535_v57  ;;  %v540_v1 = vmul.f32 %v6069_v61, %v7085_v42  ;;  %v1042_v2 = vshll.u32 %v5085_v58, 16  ;;  %6153 = vmatprep.mubr.bf16.mxu1 %v5085_v58  ;;  %v7144_v12 = vpop.f32.mrf.mxu1  ;;  %v6687_v56 = vld [vmem:[%s8290_s4 + $0xd8] sm:$0xff]   ;;  %v6689_v61 = vld [vmem:[%s8290_s4 + $0xa8] sm:$0xff]  }
  0xf3   : > { %v505_v5 = vpop.f32.mrf.mxu0  ;;  %6154 = vmatmul.mubr.bf16.vlgmr.msra.gmra.mxu1 %v7125_v54  ;;  %v1040_v10 = vshrl.u32 %v5085_v58, 16  ;;  %v1053_v36 = vor.u32 %v1051_v28, %v1049_v21 }
  0xf4   : > { %v5650_v7 = vpack.c.bf16 %v575_v63, %v574_v60  ;;  %v573_v8 = vmax.f32 %v557_v0, 0.0  ;;  %v538_v9 = vmul.f32 %v7085_v42, %v505_v5  ;;  %6202 = vmatpush3.bf16.msra.mxu1 %v7067_v38  ;;  %v1044_v14 = vrot.slane %v1042_v2, 1  ;;  %v6091_v38 = vpop.f32.mrf.mxu1 }
  0xf5   : > { %v6070_v13 = vpop.f32.mrf.mxu0  ;;  %6203 = vmatprep.subr.bf16.mxu1 %v6678_v62  ;;  %v7146_v15 = vld [vmem:[#allocation2 + $0x18] sm:$0xff]   ;;  %v562_v17 = vadd.f32 %v7091_v45, %v540_v1 }
  0xf6   : > { %5756 = vst [vmem:[#allocation2 + $0x28] sm:$0xff] %v5650_v7   ;;  %v5645_v16 = vpack.c.bf16 %v573_v8, %v572_v4  ;;  %v541_v18 = vmul.f32 %v6070_v13, %v7085_v42  ;;  %v1045_v20 = vor.u32 %v1044_v14, %v1040_v10  ;;  %v560_v23 = vadd.f32 %v7091_v45, %v538_v9  ;;  %v7155_v26 = vpop.f32.mrf.mxu1  ;;  %v6692_v7 = vld [vmem:[%s8290_s4 + $0xa0] sm:$0xff]   ;;  %v6693_v14 = vld [vmem:[%s8290_s4 + $0xc8] sm:$0xff]  }
  0xf7   : > { %v508_v19 = vpop.f32.mrf.mxu0  ;;  %v7150_v22 = vld [vmem:[#allocation2 + $0x10] sm:$0xff]   ;;  %v1063_v31 = vshll.u32 %v7146_v15, 16  ;;  %v578_v32 = vmax.f32 %v562_v17, 0.0  ;;  %v1067_v0 = vshrl.u32 %v7146_v15, 16 }
  0xf8   : > { %5755 = vst [vmem:[#allocation2 + $0x20] sm:$0xff] %v5645_v16   ;;  %v563_v24 = vadd.f32 %v7091_v45, %v541_v18  ;;  %v539_v25 = vmul.f32 %v7085_v42, %v508_v19  ;;  %6204 = vmatpush3.bf16.msra.mxu1 %v6678_v62  ;;  %v1050_v27 = vsel %vm1038_vm3, %v1045_v20, %v1049_v21  ;;  %v1055_v30 = vshll.u32 %v7150_v22, 16  ;;  %v6092_v35 = vpop.f32.mrf.mxu1  ;;  %v6696_v19 = vld [vmem:[%s8290_s4 + $0x98] sm:$0xff]   ;;  %v6697_v20 = vld [vmem:[%s8290_s4 + $0xc0] sm:$0xff]  }
  0xf9   : > { %6157 = vmatprep.mubr.bf16.mxu1 %v7150_v22  ;;  %6205 = vmatprep.subr.bf16.mxu1 %v6681_v11  ;;  %v1059_v39 = vshrl.u32 %v7150_v22, 16  ;;  %v576_v44 = vmax.f32 %v560_v23, 0.0  ;;  %v1065_v51 = vrot.slane %v1063_v31, 1  ;;  %v842_v62 = vmul.f32 %v7085_v42, %v7118_v40 }
  0xfa   : > { %v579_v33 = vmax.f32 %v563_v24, 0.0  ;;  %v561_v34 = vadd.f32 %v7091_v45, %v539_v25  ;;  %6121 = vmatprep.mubr.bf16.mxu0 %v1050_v27  ;;  %v1057_v37 = vrot.slane %v1055_v30, 1  ;;  %v7171_v48 = vpop.f32.mrf.mxu1  ;;  %v856_v16 = vadd.f32 %v7091_v45, %v843_v3  ;;  %v1413_v24 = vld [vmem:[#allocation2] sm:$0xe]  ;;  %v6695_v25 = vld [vmem:[#allocation2 + $0x8] sm:$0xff]  }
  0xfb   : > { %6158 = vmatmul.mubr.bf16.gmra.mxu1 %v7146_v15  ;;  %v1069_v4 = vor.u32 %v1067_v0, %v1065_v51  ;;  %v855_v8 = vadd.f32 %v7091_v45, %v842_v62  ;;  %v7229_v30 = vld [vmem:[#allocation2 + $0x40] ss:$0 sps:$4 sm:$0x11]   ;;  %v6701_v62 = vld [vmem:[#allocation2 + $0x18] sm:$0xff]   ;;  %v845_v0 = vmul.f32 %v7085_v42, %v7155_v26  ;;  %v6706_v26 = vld [vmem:[%s8290_s4 + $0x168] sm:$0xff]  }
  0xfc   : > { %v5660_v46 = vpack.c.bf16 %v579_v33, %v578_v32  ;;  %v577_v47 = vmax.f32 %v561_v34, 0.0  ;;  %6206 = vmatpush3.bf16.msra.mxu1 %v6681_v11  ;;  %v1058_v49 = vsel %vm1038_vm3, %v1053_v36, %v1057_v37  ;;  %v1061_v50 = vor.u32 %v1059_v39, %v1057_v37  ;;  %v6095_v57 = vpop.f32.mrf.mxu1 }
  0xfd   : > { %6207 = vmatprep.subr.bf16.mxu1 %v6684_v29  ;;  %v7174_v52 = vld [vmem:[#allocation2 + $0x28] sm:$0xff]   ;;  %6122 = vmatmul.mubr.bf16.vlgmr.msra.gmra.mxu0 %v1058_v49  ;;  %v868_v21 = vmax.f32 %v855_v8, 0.0  ;;  %v869_v31 = vmax.f32 %v856_v16, 0.0  ;;  %v5126_v49 = vcombine.low %v1413_v24, %v7123_v53  ;;  %v844_v53 = vmul.f32 %v7085_v42, %v7144_v12  ;;  %v6700_v57 = vld [vmem:[#allocation2 + $0x10] sm:$0xff]   ;;  %v6705_v12 = vld [vmem:[%s8290_s4 + $0x80] sm:$0xff]  }
  0xfe   : > { %5758 = vst [vmem:[#allocation2 + $0x38] sm:$0xff] %v5660_v46   ;;  %v5655_v55 = vpack.c.bf16 %v577_v47, %v576_v44  ;;  %6170 = vmatpush3.bf16.msra.mxu0 %v7079_v41  ;;  %v1066_v58 = vsel %vm1038_vm3, %v1061_v50, %v1065_v51  ;;  %v7188_v63 = vpop.f32.mrf.mxu1  ;;  %v6690_v41 = vld [vmem:[%s8290_s4 + $0xd0] sm:$0xff]   ;;  %v1079_v2 = vshll.u32 %v7174_v52, 16  ;;  %v1083_v27 = vshrl.u32 %v7174_v52, 16  ;;  %v6699_v46 = vld [vmem:[%s8290_s4 + $0x178] sm:$0xff]  }
  0xff   : > { %v7181_v60 = vld [vmem:[#allocation2 + $0x20] sm:$0xff]   ;;  %6125 = vmatprep.mubr.bf16.mxu0 %v1066_v58  ;;  %6171 = vmatprep.subr.bf16.mxu0 %v6686_v43  ;;  %v5675_v36 = vpack.c.bf16 %v869_v31, %v868_v21  ;;  %v6698_v44 = vld [vmem:[%s8290_s4 + $0x90] sm:$0xff]   ;;  %v1103_v47 = vshll.u32 %v7229_v30, 16  ;;  %v1440_v16 = vrot.slane %v7146_v15, 1  ;;  %v6715_v15 = vld [vmem:[%s8290_s4 + $0x128] sm:$0xff]  }
 0x100   : > { %5757 = vst [vmem:[#allocation2 + $0x30] sm:$0xff] %v5655_v55   ;;  %6208 = vmatpush3.bf16.msra.mxu1 %v6684_v29  ;;  %6161 = vmatprep.mubr.bf16.mxu1 %v7181_v60  ;;  %v1071_v1 = vshll.u32 %v7181_v60, 16  ;;  %v6096_v40 = vpop.f32.mrf.mxu1  ;;  %v1075_v6 = vshrl.u32 %v7181_v60, 16  ;;  %v1081_v11 = vrot.slane %v1079_v2, 1  ;;  %v6702_v55 = vld [vmem:[%s8290_s4 + $0x88] sm:$0xff]   ;;  %v857_v2 = vadd.f32 %v7091_v45, %v844_v53 }
 0x101   : > { %6209 = vmatprep.subr.bf16.mxu1 %v6687_v56  ;;  %5761 = vst [vmem:[#allocation2 + $0x50] sm:$0xff] %v5675_v36   ;;  %v1442_v31 = vrot.slane %v7181_v60, 1  ;;  %v1444_v36 = vrot.slane %v7174_v52, 1 }
 0x102   : > { %6172 = vmatpush3.bf16.msra.mxu0 %v6686_v43  ;;  %v1073_v5 = vrot.slane %v1071_v1, 1  ;;  %v7205_v9 = vpop.f32.mrf.mxu1  ;;  %v1085_v33 = vor.u32 %v1083_v27, %v1081_v11  ;;  %v1436_v1 = vrot.slane %v7125_v54, 1  ;;  %v846_v54 = vmul.f32 %v7085_v42, %v7171_v48  ;;  %v1864_v27 = vld [vmem:[#allocation2 + $0xc] sm:$0xf] }
 0x103   : > { %6162 = vmatmul.mubr.bf16.gmra.mxu1 %v7174_v52  ;;  %6173 = vmatprep.subr.bf16.mxu0 %v6689_v61  ;;  %v870_v8 = vmax.f32 %v857_v2, 0.0  ;;  %v1438_v48 = vrot.slane %v7150_v22, 1  ;;  %v1443_v60 = vsel %vm1434_vm4, %v1440_v16, %v1442_v31  ;;  %v1445_v52 = vsel %vm1434_vm4, %v1442_v31, %v1444_v36  ;;  %v2626_v31 = vld [vmem:[#allocation2 + $0x10] sm:$0xf] }
 0x104   : > { %6210 = vmatpush3.bf16.msra.mxu1 %v6687_v56  ;;  %v1074_v59 = vsel %vm1038_vm3, %v1069_v4, %v1073_v5  ;;  %v1077_v10 = vor.u32 %v1075_v6, %v1073_v5  ;;  %v6099_v17 = vpop.f32.mrf.mxu1  ;;  %v6703_v56 = vld [vmem:[%s8290_s4 + $0x170] sm:$0xff]   ;;  %v858_v4 = vadd.f32 %v7091_v45, %v845_v0  ;;  %v847_v5 = vmul.f32 %v7085_v42, %v7188_v63  ;;  %v6709_v6 = vld [vmem:[%s8290_s4 + $0x138] sm:$0xff]  }
 0x105   : > { %6211 = vmatprep.subr.bf16.mxu1 %v6690_v41  ;;  %v7208_v13 = vld [vmem:[#allocation2 + $0x38] sm:$0xff]   ;;  %6126 = vmatmul.mubr.bf16.gmra.mxu0 %v1074_v59  ;;  %v6707_v59 = vld [vmem:[#allocation2 + $0x20] sm:$0xff]   ;;  %v859_v63 = vadd.f32 %v7091_v45, %v846_v54  ;;  %v6711_v17 = vld [vmem:[%s8290_s4 + $0x130] sm:$0xff]   ;;  %v1439_v22 = vsel %vm1434_vm4, %v1436_v1, %v1438_v48 }
 0x106   : > { %6174 = vmatpush3.bf16.msra.mxu0 %v6689_v61  ;;  %v1082_v18 = vsel %vm1038_vm3, %v1077_v10, %v1081_v11  ;;  %v7223_v23 = vpop.f32.mrf.mxu1  ;;  %v1095_v29 = vshll.u32 %v7208_v13, 16  ;;  %v1099_v51 = vshrl.u32 %v7208_v13, 16  ;;  %v1105_v61 = vrot.slane %v1103_v47, 1  ;;  %v6708_v10 = vld [vmem:[#allocation2 + $0x28] sm:$0xff]   ;;  %v6725_v0 = vld [vmem:[%s8290_s4 + $0x110] sm:$0xff]  }
 0x107   : > { %v7215_v38 = vld [vmem:[#allocation2 + $0x30] sm:$0xff]   ;;  %6129 = vmatprep.mubr.bf16.mxu0 %v1082_v18  ;;  %6175 = vmatprep.subr.bf16.mxu0 %v6692_v7  ;;  %v871_v11 = vmax.f32 %v858_v4, 0.0  ;;  %v872_v21 = vmax.f32 %v859_v63, 0.0 }
 0x108   : > { %6212 = vmatpush3.bf16.msra.mxu1 %v6690_v41  ;;  %6165 = vmatprep.mubr.bf16.mxu1 %v7215_v38  ;;  %v1087_v28 = vshll.u32 %v7215_v38, 16  ;;  %v6100_v32 = vpop.f32.mrf.mxu1  ;;  %v1091_v35 = vshrl.u32 %v7215_v38, 16  ;;  %v1097_v43 = vrot.slane %v1095_v29, 1  ;;  %v1435_v41 = vrot.slane %v5126_v49, 1  ;;  %v6713_v29 = vld [vmem:[#allocation2 + $0x30] sm:$0xff]  }
 0x109   : > { %6213 = vmatprep.subr.bf16.mxu1 %v6693_v14  ;;  %v5680_v18 = vpack.c.bf16 %v871_v11, %v870_v8  ;;  %v6714_v32 = vld [vmem:[#allocation2 + $0x38] sm:$0xff]   ;;  %v1446_v53 = vrot.slane %v7215_v38, 1  ;;  %v6729_v8 = vld [vmem:[%s8290_s4 + $0x108] sm:$0xff]  }
 0x10a   : > { %6176 = vmatpush3.bf16.msra.mxu0 %v6692_v7  ;;  %v1089_v34 = vrot.slane %v1087_v28, 1  ;;  %v1101_v58 = vor.u32 %v1099_v51, %v1097_v43  ;;  %v1437_v40 = vsel %vm1434_vm4, %v1435_v41, %v1436_v1  ;;  %v6710_v7 = vld [vmem:[%s8290_s4 + $0x160] sm:$0xff]   ;;  %v1448_v41 = vrot.slane %v7208_v13, 1  ;;  %v7326_v1 = vld [vmem:[#allocation2 + $0x18] sm:$0xff]  }
 0x10b   : > { %6166 = vmatmul.mubr.bf16.gmra.mxu1 %v7208_v13  ;;  %6177 = vmatprep.subr.bf16.mxu0 %v6696_v19  ;;  %5762 = vst [vmem:[#allocation2 + $0x58] sm:$0xff] %v5680_v18   ;;  %v6719_v51 = vld [vmem:[#allocation2 + $0x40] sm:$0xff]   ;;  %v1447_v2 = vsel %vm1434_vm4, %v1444_v36, %v1446_v53  ;;  %v7347_v18 = vld [vmem:[#allocation2 + $0x30] sm:$0xff]  }
 0x10c   : > { %6214 = vmatpush3.bf16.msra.mxu1 %v6693_v14  ;;  %6217 = vmatprep.mubr.bf16.mxu1 %v6695_v25  ;;  %v1090_v37 = vsel %vm1038_vm3, %v1085_v33, %v1089_v34  ;;  %v1093_v39 = vor.u32 %v1091_v35, %v1089_v34  ;;  %v1106_v3 = vsel %vm1038_vm3, %v1101_v58, %v1105_v61  ;;  %v6716_v25 = vld [vmem:[%s8290_s4 + $0x150] sm:$0xff]   ;;  %v2177_v33 = vld [vmem:[#allocation2 + $0x8] sm:$0xe]  ;;  %v7320_v61 = vld [vmem:[#allocation2 + $0x20] sm:$0xff]  }
 0x10d   : > { %6215 = vmatprep.subr.bf16.mxu1 %v6697_v20  ;;  %6130 = vmatmul.mubr.bf16.gmra.mxu0 %v1090_v37  ;;  %v860_v14 = vadd.f32 %v7091_v45, %v847_v5  ;;  %v848_v34 = vmul.f32 %v7085_v42, %v7205_v9  ;;  %v7296_v35 = vld [vmem:[#allocation2 + $0x10] sm:$0xff]   ;;  %v6717_v37 = vld [vmem:[%s8290_s4 + $0x120] sm:$0xff]   ;;  %v6718_v9 = vld [vmem:[%s8290_s4 + $0x148] sm:$0xff]   ;;  %v1449_v13 = vsel %vm1434_vm4, %v1446_v53, %v1448_v41  ;;  %v2203_v54 = vrot.slane %v7320_v61, 1 }
 0x10e   : > { %6178 = vmatpush3.bf16.msra.mxu0 %v6696_v19  ;;  %v1098_v50 = vsel %vm1038_vm3, %v1093_v39, %v1097_v43  ;;  %v6712_v19 = vld [vmem:[%s8290_s4 + $0x158] sm:$0xff]   ;;  %v1863_v39 = vld [vmem:[#allocation2 + $0x8] sm:$0xf]  ;;  %v5216_v43 = vcombine.low %v2177_v33, %v1864_v27  ;;  %v2199_v47 = vrot.slane %v7296_v35, 1 }
 0x10f   : > { %6133 = vmatprep.mubr.bf16.mxu0 %v1098_v50  ;;  %6179 = vmatprep.subr.bf16.mxu0 %v6698_v44  ;;  %v873_v24 = vmax.f32 %v860_v14, 0.0  ;;  %v5183_v49 = vcombine.low %v1863_v39, %v1864_v27  ;;  %v1964_v27 = vshll.u32 %v7320_v61, 16 }
 0x110   : > { %6216 = vmatpush3.bf16.msra.mxu1 %v6697_v20  ;;  %v1441_v20 = vsel %vm1434_vm4, %v1438_v48, %v1440_v16  ;;  %v1450_v48 = vrot.slane %v7229_v30, 1  ;;  %v6731_v30 = vld [vmem:[%s8290_s4 + $0x100] sm:$0xff]  }
 0x111   : > { %6265 = vmatprep.subr.bf16.mxu1 %v6699_v46  ;;  %v5685_v28 = vpack.c.bf16 %v873_v24, %v872_v21  ;;  %v1941_v63 = vshrl.u32 %v5183_v49, 16  ;;  %v6732_v24 = vld [vmem:[%s8290_s4 + $0x1e8] sm:$0xff]  }
 0x112   : > { %6180 = vmatpush3.bf16.msra.mxu0 %v6698_v44  ;;  %v849_v44 = vmul.f32 %v7085_v42, %v7223_v23  ;;  %v6723_v23 = vld [vmem:[%s8290_s4 + $0x118] sm:$0xff]   ;;  %v1451_v21 = vsel %vm1434_vm4, %v1448_v41, %v1450_v48 }
 0x113   : > { %6218 = vmatmul.mubr.bf16.vlgmr.msra.gmra.mxu1 %v6700_v57  ;;  %6181 = vmatprep.subr.bf16.mxu0 %v6702_v55  ;;  %5763 = vst [vmem:[#allocation2 + $0x60] sm:$0xff] %v5685_v28  }
 0x114   : > { %6266 = vmatpush3.bf16.msra.mxu1 %v6699_v46  ;;  %6221 = vmatprep.mubr.bf16.mxu1 %v6701_v62  ;;  %v861_v46 = vadd.f32 %v7091_v45, %v848_v34  ;;  %v862_v50 = vadd.f32 %v7091_v45, %v849_v44  ;;  %v832_v62 = vpop.f32.mrf.mxu1  ;;  %v7375_v44 = vld [vmem:[#allocation2 + $0x38] sm:$0xff]  }
 0x115   : > { %6267 = vmatprep.subr.bf16.mxu1 %v6703_v56  ;;  %6134 = vmatmul.mubr.bf16.gmra.mxu0 %v1106_v3  ;;  %v6726_v3 = vld [vmem:[%s8290_s4 + $0x1f8] sm:$0xff]   ;;  %v2209_v53 = vrot.slane %v7375_v44, 1 }
 0x116   : > { %6182 = vmatpush3.bf16.msra.mxu0 %v6702_v55  ;;  %6185 = vmatprep.mubr.bf16.mxu0 %v1437_v40  ;;  %v2198_v55 = vrot.slane %v5216_v43, 1  ;;  %v874_v57 = vmax.f32 %v861_v46, 0.0  ;;  %v875_v38 = vmax.f32 %v862_v50, 0.0  ;;  %v1948_v40 = vshll.u32 %v7296_v35, 16 }
 0x117   : > { %6183 = vmatprep.subr.bf16.mxu0 %v6705_v12 }
 0x118   : > { %6268 = vmatpush3.bf16.msra.mxu1 %v6703_v56  ;;  %v6724_v56 = vld [vmem:[%s8290_s4 + $0x140] sm:$0xff]   ;;  %v2200_v58 = vsel %vm1434_vm4, %v2198_v55, %v2199_v47  ;;  %v5690_v4 = vpack.c.bf16 %v875_v38, %v874_v57  ;;  %v1950_v14 = vrot.slane %v1948_v40, 1  ;;  %v6738_v55 = vld [vmem:[%s8290_s4 + $0x1d8] sm:$0xff]   ;;  %v7399_v38 = vld [vmem:[#allocation2 + $0x48] ss:$0 sps:$4 sm:$0x11]  }
 0x119   : > { %6269 = vmatprep.subr.bf16.mxu1 %v6706_v26  ;;  %v1988_v40 = vshll.u32 %v7375_v44, 16 }
 0x11a   : > { %6184 = vmatpush3.bf16.msra.mxu0 %v6705_v12  ;;  %v1943_v12 = vshll.u32 %v5183_v49, 16  ;;  %5764 = vst [vmem:[#allocation2 + $0x68] sm:$0xff] %v5690_v4   ;;  %v6737_v49 = vld [vmem:[%s8290_s4 + $0x1b0] sm:$0xff]  }
 0x11b   : > { %6222 = vmatmul.mubr.bf16.gmra.mxu1 %v6707_v59  ;;  %6233 = vmatprep.subr.bf16.mxu0 %v6709_v6  ;;  %v6730_v59 = vld [vmem:[%s8290_s4 + $0x1f0] sm:$0xff]  }
 0x11c   : > { %6270 = vmatpush3.bf16.msra.mxu1 %v6706_v26  ;;  %6225 = vmatprep.mubr.bf16.mxu1 %v6708_v10  ;;  %v6103_v26 = vpop.f32.mrf.mxu1 }
 0x11d   : > { %6271 = vmatprep.subr.bf16.mxu1 %v6710_v7  ;;  %6186 = vmatmul.mubr.bf16.vlgmr.msra.gmra.mxu0 %v1439_v22 }
 0x11e   : > { %6234 = vmatpush3.bf16.msra.mxu0 %v6709_v6  ;;  %6189 = vmatprep.mubr.bf16.mxu0 %v1441_v20  ;;  %v835_v5 = vpop.f32.mrf.mxu1  ;;  %v2201_v6 = vrot.slane %v7326_v1, 1  ;;  %v850_v20 = vmul.f32 %v7085_v42, %v832_v62  ;;  %v1968_v62 = vshrl.u32 %v7320_v61, 16  ;;  %v6743_v61 = vld [vmem:[%s8290_s4 + $0x1a0] sm:$0xff]  }
 0x11f   : > { %6235 = vmatprep.subr.bf16.mxu0 %v6711_v17  ;;  %v7410_v5 = vld [vmem:[#allocation2 + $0x20] sm:$0xff]  }
 0x120   : > { %6272 = vmatpush3.bf16.msra.mxu1 %v6710_v7  ;;  %v1945_v7 = vrot.slane %v1943_v12, 1  ;;  %v6104_v10 = vpop.f32.mrf.mxu1  ;;  %v2202_v11 = vsel %vm1434_vm4, %v2199_v47, %v2201_v6  ;;  %v2204_v16 = vsel %vm1434_vm4, %v2201_v6, %v2203_v54  ;;  %v863_v28 = vadd.f32 %v7091_v45, %v850_v20  ;;  %v6736_v45 = vld [vmem:[%s8290_s4 + $0x1e0] sm:$0xff]  }
 0x121   : > { %6273 = vmatprep.subr.bf16.mxu1 %v6712_v19 }
 0x122   : > { %6236 = vmatpush3.bf16.msra.mxu0 %v6711_v17  ;;  %v7345_v17 = vld [vmem:[#allocation2 + $0x28] sm:$0xff]   ;;  %v1946_v22 = vor.u32 %v1945_v7, %v1941_v63  ;;  %v876_v34 = vmax.f32 %v863_v28, 0.0  ;;  %v1990_v63 = vrot.slane %v1988_v40, 1 }
 0x123   : > { %6226 = vmatmul.mubr.bf16.gmra.mxu1 %v6713_v29  ;;  %6237 = vmatprep.subr.bf16.mxu0 %v6715_v15  ;;  %v2205_v42 = vrot.slane %v7345_v17, 1  ;;  %v2207_v29 = vrot.slane %v7347_v18, 1  ;;  %v1972_v50 = vshll.u32 %v7345_v17, 16  ;;  %v1976_v26 = vshrl.u32 %v7345_v17, 16  ;;  %v6744_v7 = vld [vmem:[%s8290_s4 + $0x1c8] sm:$0xff]  }
 0x124   : > { %6274 = vmatpush3.bf16.msra.mxu1 %v6712_v19  ;;  %6229 = vmatprep.mubr.bf16.mxu1 %v6714_v32  ;;  %v1956_v19 = vshll.u32 %v7326_v1, 16  ;;  %v7364_v32 = vld [vmem:[#allocation2 + $0x14] sm:$0xf]  ;;  %v5597_v39 = vpack.c.bf16 %v876_v34, %v876_v34  ;;  %v1984_v17 = vshrl.u32 %v7347_v18, 16 }
 0x125   : > { %6275 = vmatprep.subr.bf16.mxu1 %v6716_v25  ;;  %6190 = vmatmul.mubr.bf16.gmra.mxu0 %v1443_v60  ;;  %v1960_v60 = vshrl.u32 %v7326_v1, 16  ;;  %v2208_v43 = vsel %vm1434_vm4, %v2205_v42, %v2207_v29  ;;  %v5273_v46 = vcombine.low %v2626_v31, %v7364_v32  ;;  %v1974_v1 = vrot.slane %v1972_v50, 1  ;;  %v6750_v31 = vld [vmem:[%s8290_s4 + $0x190] sm:$0xff]  }
 0x126   : > { %6238 = vmatpush3.bf16.msra.mxu0 %v6715_v15  ;;  %6193 = vmatprep.mubr.bf16.mxu0 %v1445_v52  ;;  %v1951_v15 = vsel %vm1038_vm3, %v1946_v22, %v1950_v14  ;;  %v1958_v33 = vrot.slane %v1956_v19, 1  ;;  %v7377_v52 = vld [vmem:[#allocation2 + $0x40] sm:$0xff]   ;;  %942 = vst [vmem:[#allocation2 + $0x70] sm:$0xf] %v5597_v39  ;;  %v2719_v22 = vshll.u32 %v7410_v5, 16  ;;  %v1992_v19 = vshrl.u32 %v7375_v44, 16 }
 0x127   : > { %6239 = vmatprep.subr.bf16.mxu0 %v6717_v37  ;;  %v2211_v57 = vrot.slane %v7377_v52, 1  ;;  %v2706_v41 = vshll.u32 %v5273_v46, 16  ;;  %v1978_v6 = vor.u32 %v1976_v26, %v1974_v1 }
 0x128   : > { %6276 = vmatpush3.bf16.msra.mxu1 %v6716_v25  ;;  %v1952_v25 = vshrl.u32 %v7296_v35, 16  ;;  %v6735_v35 = vld [vmem:[%s8290_s4 + $0x1b8] sm:$0xff]   ;;  %v1962_v47 = vor.u32 %v1960_v60, %v1958_v33 }
 0x129   : > { %6277 = vmatprep.subr.bf16.mxu1 %v6718_v9  ;;  %v2212_v4 = vsel %vm1434_vm4, %v2209_v53, %v2211_v57 }
 0x12a   : > { %6240 = vmatpush3.bf16.msra.mxu0 %v6717_v37  ;;  %v1954_v36 = vor.u32 %v1952_v25, %v1950_v14  ;;  %v2206_v37 = vsel %vm1434_vm4, %v2203_v54, %v2205_v42  ;;  %v2708_v54 = vrot.slane %v2706_v41, 1  ;;  %v1996_v14 = vshll.u32 %v7377_v52, 16 }
 0x12b   : > { %6230 = vmatmul.mubr.bf16.gmra.mxu1 %v6719_v51  ;;  %6241 = vmatprep.subr.bf16.mxu0 %v6723_v23  ;;  %v1994_v25 = vor.u32 %v1992_v19, %v1990_v63  ;;  %v2721_v42 = vrot.slane %v2719_v22, 1  ;;  %v7496_v19 = vld [vmem:[#allocation2 + $0x50] ss:$0 sps:$4 sm:$0x11]  }
 0x12c   : > { %6278 = vmatpush3.bf16.msra.mxu1 %v6718_v9  ;;  %6281 = vmatprep.mubr.bf16.mxu1 %v2200_v58  ;;  %v1966_v9 = vrot.slane %v1964_v27, 1  ;;  %v1959_v51 = vsel %vm1038_vm3, %v1954_v36, %v1958_v33  ;;  %v6741_v58 = vld [vmem:[%s8290_s4 + $0x1a8] sm:$0xff]   ;;  %v1998_v27 = vrot.slane %v1996_v14, 1  ;;  %v2723_v33 = vshrl.u32 %v7410_v5, 16  ;;  %v6751_v36 = vld [vmem:[%s8290_s4 + $0x78] sm:$0xff]  }
 0x12d   : > { %6279 = vmatprep.subr.bf16.mxu1 %v6724_v56  ;;  %6194 = vmatmul.mubr.bf16.gmra.mxu0 %v1447_v2  ;;  %v7401_v2 = vld [vmem:[#allocation2 + $0x18] sm:$0xff]  }
 0x12e   : > { %6242 = vmatpush3.bf16.msra.mxu0 %v6723_v23  ;;  %6197 = vmatprep.mubr.bf16.mxu0 %v1449_v13  ;;  %v1967_v23 = vsel %vm1038_vm3, %v1962_v47, %v1966_v9  ;;  %v1970_v12 = vor.u32 %v1968_v62, %v1966_v9  ;;  %v2711_v48 = vshll.u32 %v7401_v2, 16  ;;  %v2715_v60 = vshrl.u32 %v7401_v2, 16  ;;  %v6755_v47 = vld [vmem:[%s8290_s4 + $0x70] sm:$0xff]   ;;  %v6758_v62 = vld [vmem:[%s8290_s4 + $0x68] sm:$0xff]  }
 0x12f   : > { %6243 = vmatprep.subr.bf16.mxu0 %v6725_v0  ;;  %v1999_v9 = vsel %vm1038_vm3, %v1994_v25, %v1998_v27  ;;  %v2725_v39 = vor.u32 %v2723_v33, %v2721_v42  ;;  %v6769_v25 = vld [vmem:[%s8290_s4 + $0x228] sm:$0xff]  }
 0x130   : > { %6280 = vmatpush3.bf16.msra.mxu1 %v6724_v56  ;;  %v1980_v56 = vshll.u32 %v7347_v18, 16  ;;  %v2713_v20 = vrot.slane %v2711_v48, 1 }
 0x131   : > { %6329 = vmatprep.subr.bf16.mxu1 %v6726_v3 }
 0x132   : > { %6244 = vmatpush3.bf16.msra.mxu0 %v6725_v0  ;;  %v6742_v0 = vld [vmem:[%s8290_s4 + $0x1d0] sm:$0xff]   ;;  %v1982_v13 = vrot.slane %v1980_v56, 1  ;;  %v2717_v44 = vor.u32 %v2715_v60, %v2713_v20  ;;  %v6773_v60 = vld [vmem:[%s8290_s4 + $0x220] sm:$0xff]  }
 0x133   : > { %6282 = vmatmul.mubr.bf16.vlgmr.msra.gmra.mxu1 %v2202_v11  ;;  %6245 = vmatprep.subr.bf16.mxu0 %v6729_v8  ;;  %v2213_v11 = vrot.slane %v7399_v38, 1 }
 0x134   : > { %6330 = vmatpush3.bf16.msra.mxu1 %v6726_v3  ;;  %6285 = vmatprep.mubr.bf16.mxu1 %v2204_v16  ;;  %v2210_v3 = vsel %vm1434_vm4, %v2207_v29, %v2209_v53  ;;  %v1983_v10 = vsel %vm1038_vm3, %v1978_v6, %v1982_v13  ;;  %v7433_v29 = vld [vmem:[#allocation2 + $0x30] sm:$0xff]   ;;  %v6757_v53 = vld [vmem:[%s8290_s4 + $0x180] sm:$0xff]  }
 0x135   : > { %6331 = vmatprep.subr.bf16.mxu1 %v6730_v59  ;;  %6198 = vmatmul.mubr.bf16.gmra.mxu0 %v1451_v21  ;;  %v6749_v21 = vld [vmem:[%s8290_s4 + $0x1c0] sm:$0xff]   ;;  %v2214_v18 = vsel %vm1434_vm4, %v2211_v57, %v2213_v11  ;;  %v2739_v41 = vshrl.u32 %v7433_v29, 16  ;;  %v6763_v11 = vld [vmem:[#allocation2 + $0x18] sm:$0xff]  }
 0x136   : > { %6246 = vmatpush3.bf16.msra.mxu0 %v6729_v8  ;;  %6249 = vmatprep.mubr.bf16.mxu0 %v1951_v15  ;;  %v1975_v8 = vsel %vm1038_vm3, %v1970_v12, %v1974_v1  ;;  %v7429_v15 = vld [vmem:[#allocation2 + $0x28] sm:$0xff]  }
 0x137   : > { %6247 = vmatprep.subr.bf16.mxu0 %v6731_v30  ;;  %v2731_v1 = vshrl.u32 %v7429_v15, 16 }
 0x138   : > { %6332 = vmatpush3.bf16.msra.mxu1 %v6730_v59  ;;  %v2704_v59 = vshrl.u32 %v5273_v46, 16 }
 0x139   : > { %6333 = vmatprep.subr.bf16.mxu1 %v6732_v24 }
 0x13a   : > { %6248 = vmatpush3.bf16.msra.mxu0 %v6731_v30  ;;  %v2709_v16 = vor.u32 %v2708_v54, %v2704_v59  ;;  %v6748_v30 = vld [vmem:[%s8290_s4 + $0x198] sm:$0xff]   ;;  %v6762_v54 = vld [vmem:[%s8290_s4 + $0x60] sm:$0xff]  }
 0x13b   : > { %6286 = vmatmul.mubr.bf16.gmra.mxu1 %v2206_v37  ;;  %6297 = vmatprep.subr.bf16.mxu0 %v6735_v35  ;;  %v2004_v37 = vshll.u32 %v7399_v38, 16  ;;  %v7469_v38 = vld [vmem:[#allocation2 + $0x40] sm:$0xff]  }
 0x13c   : > { %6334 = vmatpush3.bf16.msra.mxu1 %v6732_v24  ;;  %6289 = vmatprep.mubr.bf16.mxu1 %v2208_v43  ;;  %v1986_v24 = vor.u32 %v1984_v17, %v1982_v13  ;;  %v2714_v28 = vsel %vm1038_vm3, %v2709_v16, %v2713_v20  ;;  %v2735_v43 = vshll.u32 %v7433_v29, 16  ;;  %v3287_v13 = vld [vmem:[#allocation2 + $0x40] sm:$0xf]  ;;  %v2751_v6 = vshll.u32 %v7469_v38, 16  ;;  %v6766_v17 = vld [vmem:[%s8290_s4 + $0x58] sm:$0xff]  }
 0x13d   : > { %6335 = vmatprep.subr.bf16.mxu1 %v6736_v45  ;;  %6250 = vmatmul.mubr.bf16.vlgmr.msra.gmra.mxu0 %v1959_v51  ;;  %v2006_v50 = vrot.slane %v2004_v37, 1  ;;  %v7455_v51 = vld [vmem:[#allocation2 + $0x38] sm:$0xff]   ;;  %v2755_v59 = vshrl.u32 %v7469_v38, 16  ;;  %v6764_v16 = vld [vmem:[#allocation2 + $0x20] sm:$0xff]   ;;  %v6771_v37 = vld [vmem:[#allocation2 + $0x28] sm:$0xff]  }
 0x13e   : > { %6298 = vmatpush3.bf16.msra.mxu0 %v6735_v35  ;;  %6253 = vmatprep.mubr.bf16.mxu0 %v1967_v23  ;;  %v1991_v34 = vsel %vm1038_vm3, %v1986_v24, %v1990_v63  ;;  %v2727_v35 = vshll.u32 %v7429_v15, 16  ;;  %v2737_v56 = vrot.slane %v2735_v43, 1  ;;  %v6765_v63 = vld [vmem:[%s8290_s4 + $0x230] sm:$0xff]   ;;  %v2747_v14 = vshrl.u32 %v7455_v51, 16  ;;  %v7498_v24 = vld [vmem:[#allocation2 + $0x48] sm:$0xff]   ;;  %v7521_v43 = vld [vmem:[#allocation2 + $0x58] sm:$0xff]  }
 0x13f   : > { %6299 = vmatprep.subr.bf16.mxu0 %v6737_v49  ;;  %v2753_v22 = vrot.slane %v2751_v6, 1 }
 0x140   : > { %6336 = vmatpush3.bf16.msra.mxu1 %v6736_v45  ;;  %v2000_v45 = vshrl.u32 %v7377_v52, 16  ;;  %v2729_v46 = vrot.slane %v2727_v35, 1  ;;  %v6754_v52 = vld [vmem:[%s8290_s4 + $0x188] sm:$0xff]   ;;  %v2741_v12 = vor.u32 %v2739_v41, %v2737_v56  ;;  %v3359_v35 = vshll.u32 %v7498_v24, 16  ;;  %v2940_v41 = vld [vmem:[#allocation2 + $0x10] sm:$0xe] }
 0x141   : > { %6337 = vmatprep.subr.bf16.mxu1 %v6738_v55  ;;  %v2757_v20 = vor.u32 %v2755_v59, %v2753_v22  ;;  %v5306_v6 = vcombine.low %v2940_v41, %v7364_v32  ;;  %v3621_v59 = vld [vmem:[#allocation2 + $0x40] sm:$0xe]  ;;  %v6787_v32 = vld [vmem:[%s8290_s4 + $0xb0] sm:$0xff]  }
 0x142   : > { %6300 = vmatpush3.bf16.msra.mxu0 %v6737_v49  ;;  %v2002_v49 = vor.u32 %v2000_v45, %v1998_v27  ;;  %v2730_v23 = vsel %vm1038_vm3, %v2725_v39, %v2729_v46  ;;  %v2733_v26 = vor.u32 %v2731_v1, %v2729_v46  ;;  %v6770_v27 = vld [vmem:[%s8290_s4 + $0x50] sm:$0xff]   ;;  %v6774_v39 = vld [vmem:[%s8290_s4 + $0x48] sm:$0xff]  }
 0x143   : > { %6290 = vmatmul.mubr.bf16.gmra.mxu1 %v2210_v3  ;;  %6301 = vmatprep.subr.bf16.mxu0 %v6741_v58  ;;  %v7471_v3 = vld [vmem:[#allocation2 + $0x48] sm:$0xff]   ;;  %v7513_v45 = vld [vmem:[#allocation2 + $0x50] sm:$0xff]  }
 0x144   : > { %6338 = vmatpush3.bf16.msra.mxu1 %v6738_v55  ;;  %6293 = vmatprep.mubr.bf16.mxu1 %v2212_v4  ;;  %v2722_v55 = vsel %vm1038_vm3, %v2717_v44, %v2721_v42  ;;  %v2007_v57 = vsel %vm1038_vm3, %v2002_v49, %v2006_v50  ;;  %v6761_v4 = vld [vmem:[%s8290_s4 + $0x238] sm:$0xff]   ;;  %v2759_v48 = vshll.u32 %v7471_v3, 16  ;;  %v2763_v42 = vshrl.u32 %v7471_v3, 16  ;;  %v6782_v1 = vld [vmem:[%s8290_s4 + $0x210] sm:$0xff]  }
 0x145   : > { %6339 = vmatprep.subr.bf16.mxu1 %v6742_v0  ;;  %6254 = vmatmul.mubr.bf16.gmra.mxu0 %v1975_v8  ;;  %v3367_v49 = vshll.u32 %v7513_v45, 16  ;;  %v6778_v50 = vld [vmem:[%s8290_s4 + $0x218] sm:$0xff]   ;;  %v7621_v41 = vld [vmem:[#allocation2 + $0x50] sm:$0xff]  }
 0x146   : > { %6302 = vmatpush3.bf16.msra.mxu0 %v6741_v58  ;;  %6257 = vmatprep.mubr.bf16.mxu0 %v1983_v10  ;;  %v6756_v58 = vld [vmem:[#allocation2 + $0x10] sm:$0xff]  }
 0x147   : > { %6303 = vmatprep.subr.bf16.mxu0 %v6743_v61 }
 0x148   : > { %6340 = vmatpush3.bf16.msra.mxu1 %v6742_v0  ;;  %v2743_v0 = vshll.u32 %v7455_v51, 16 }
 0x149   : > { %6341 = vmatprep.subr.bf16.mxu1 %v6744_v7 }
 0x14a   : > { %6304 = vmatpush3.bf16.msra.mxu0 %v6743_v61  ;;  %v7473_v61 = vld [vmem:[#allocation2 + $0x44] sm:$0xf]  ;;  %v2745_v40 = vrot.slane %v2743_v0, 1  ;;  %v6780_v0 = vld [vmem:[#allocation2 + $0x38] sm:$0xff]  }
 0x14b   : > { %6294 = vmatmul.mubr.bf16.gmra.mxu1 %v2214_v18  ;;  %6305 = vmatprep.subr.bf16.mxu0 %v6748_v30  ;;  %v7487_v10 = vcombine.low %v3287_v13, %v7473_v61  ;;  %v6783_v13 = vld [vmem:[%s8290_s4 + $0xb8] sm:$0xff]  }
 0x14c   : > { %6342 = vmatpush3.bf16.msra.mxu1 %v6744_v7  ;;  %6345 = vmatprep.mubr.bf16.mxu1 %v2714_v28  ;;  %v2738_v7 = vsel %vm1038_vm3, %v2733_v26, %v2737_v56  ;;  %v2746_v8 = vsel %vm1038_vm3, %v2741_v12, %v2745_v40  ;;  %v3375_v56 = vshll.u32 %v7521_v43, 16  ;;  %v7538_v12 = vld [vmem:[#allocation2 + $0x60] ss:$0 sps:$4 sm:$0x11]  }
 0x14d   : > { %6343 = vmatprep.subr.bf16.mxu1 %v6749_v21  ;;  %6258 = vmatmul.mubr.bf16.gmra.mxu0 %v1991_v34  ;;  %v3354_v18 = vshll.u32 %v7487_v10, 16  ;;  %v3352_v34 = vshrl.u32 %v7487_v10, 16  ;;  %v6781_v26 = vld [vmem:[#allocation2 + $0x40] sm:$0xff]  }
 0x14e   : > { %6306 = vmatpush3.bf16.msra.mxu0 %v6748_v30  ;;  %6261 = vmatprep.mubr.bf16.mxu0 %v1999_v9  ;;  %v2749_v30 = vor.u32 %v2747_v14, %v2745_v40  ;;  %v6772_v9 = vld [vmem:[#allocation2 + $0x30] sm:$0xff]   ;;  %v2961_v14 = vrot.slane %v5306_v6, 1 }
 0x14f   : > { %6307 = vmatprep.subr.bf16.mxu0 %v6750_v31 }
 0x150   : > { %6344 = vmatpush3.bf16.msra.mxu1 %v6749_v21  ;;  %v2761_v21 = vrot.slane %v2759_v48, 1  ;;  %v2754_v28 = vsel %vm1038_vm3, %v2749_v30, %v2753_v22  ;;  %v2962_v22 = vrot.slane %v7401_v2, 1  ;;  %v6790_v30 = vld [vmem:[%s8290_s4 + $0x200] sm:$0xff]   ;;  %v3642_v2 = vrot.slane %v7498_v24, 1 }
 0x151   : > { %6393 = vmatprep.subr.bf16.mxu1 %v6751_v36 }
 0x152   : > { %6308 = vmatpush3.bf16.msra.mxu0 %v6750_v31  ;;  %v2767_v31 = vshll.u32 %v7496_v19, 16  ;;  %v2762_v33 = vsel %vm1038_vm3, %v2757_v20, %v2761_v21  ;;  %v2765_v44 = vor.u32 %v2763_v42, %v2761_v21  ;;  %v6795_v42 = vld [vmem:[%s8290_s4 + $0xa0] sm:$0xff]  }
 0x153   : > { %6346 = vmatmul.mubr.bf16.vlgmr.msra.gmra.mxu1 %v2722_v55  ;;  %6309 = vmatprep.subr.bf16.mxu0 %v6754_v52  ;;  %v6779_v55 = vld [vmem:[%s8290_s4 + $0x40] sm:$0xff]  }
 0x154   : > { %6394 = vmatpush3.bf16.msra.mxu1 %v6751_v36  ;;  %6349 = vmatprep.mubr.bf16.mxu1 %v2730_v23  ;;  %v3356_v36 = vrot.slane %v3354_v18, 1  ;;  %v2769_v46 = vrot.slane %v2767_v31, 1  ;;  %v3371_v23 = vshrl.u32 %v7513_v45, 16  ;;  %v6791_v18 = vld [vmem:[%s8290_s4 + $0xa8] sm:$0xff]   ;;  %v2964_v31 = vrot.slane %v7410_v5, 1  ;;  %v6797_v5 = vld [vmem:[%s8290_s4 + $0x98] sm:$0xff]  }
 0x155   : > { %6395 = vmatprep.subr.bf16.mxu1 %v6755_v47  ;;  %6262 = vmatmul.mubr.bf16.gmra.mxu0 %v2007_v57  ;;  %v3363_v57 = vshrl.u32 %v7498_v24, 16 }
 0x156   : > { %6310 = vmatpush3.bf16.msra.mxu0 %v6754_v52  ;;  %6313 = vmatprep.mubr.bf16.mxu0 %v6756_v58  ;;  %v3357_v52 = vor.u32 %v3356_v36, %v3352_v34  ;;  %v2966_v34 = vrot.slane %v7429_v15, 1  ;;  %v6796_v36 = vld [vmem:[%s8290_s4 + $0x30] sm:$0xff]   ;;  %v6798_v15 = vld [vmem:[%s8290_s4 + $0x28] sm:$0xff]  }
 0x157   : > { %6311 = vmatprep.subr.bf16.mxu0 %v6757_v53 }
 0x158   : > { %6396 = vmatpush3.bf16.msra.mxu1 %v6755_v47  ;;  %v3361_v47 = vrot.slane %v3359_v35, 1  ;;  %v2965_v35 = vsel %vm1434_vm4, %v2962_v22, %v2964_v31 }
 0x159   : > { %6397 = vmatprep.subr.bf16.mxu1 %v6758_v62 }
 0x15a   : > { %6312 = vmatpush3.bf16.msra.mxu0 %v6757_v53  ;;  %v2770_v53 = vsel %vm1038_vm3, %v2765_v44, %v2769_v46  ;;  %v3362_v58 = vsel %vm1038_vm3, %v3357_v52, %v3361_v47  ;;  %v6800_v44 = vld [vmem:[%s8290_s4 + $0x20] sm:$0xff]   ;;  %v6801_v52 = vld [vmem:[%s8290_s4 + $0x88] sm:$0xff]  }
 0x15b   : > { %6350 = vmatmul.mubr.bf16.gmra.mxu1 %v2738_v7  ;;  %6361 = vmatprep.subr.bf16.mxu0 %v6761_v4  ;;  %v3379_v7 = vshrl.u32 %v7521_v43, 16 }
 0x15c   : > { %6398 = vmatpush3.bf16.msra.mxu1 %v6758_v62  ;;  %6353 = vmatprep.mubr.bf16.mxu1 %v2746_v8  ;;  %v3369_v62 = vrot.slane %v3367_v49, 1  ;;  %v3383_v8 = vshll.u32 %v7538_v12, 16  ;;  %v7603_v49 = vld [vmem:[#allocation2 + $0x4c] sm:$0xf] }
 0x15d   : > { %6399 = vmatprep.subr.bf16.mxu1 %v6762_v54  ;;  %6314 = vmatmul.mubr.bf16.vlgmr.msra.gmra.mxu0 %v6763_v11  ;;  %v6786_v11 = vld [vmem:[%s8290_s4 + $0x208] sm:$0xff]  }
 0x15e   : > { %6362 = vmatpush3.bf16.msra.mxu0 %v6761_v4  ;;  %6317 = vmatprep.mubr.bf16.mxu0 %v6764_v16  ;;  %v3373_v40 = vor.u32 %v3371_v23, %v3369_v62  ;;  %v3377_v4 = vrot.slane %v3375_v56, 1  ;;  %v5386_v16 = vcombine.low %v3621_v59, %v7473_v61  ;;  %v3385_v21 = vrot.slane %v3383_v8, 1  ;;  %v6808_v8 = vld [vmem:[%s8290_s4] sm:$0xff]   ;;  %v6809_v59 = vld [vmem:[%s8290_s4 + $0x128] sm:$0xff]  }
 0x15f   : > { %6363 = vmatprep.subr.bf16.mxu0 %v6765_v63  ;;  %v2963_v61 = vsel %vm1434_vm4, %v2961_v14, %v2962_v22  ;;  %v2974_v23 = vrot.slane %v7471_v3, 1  ;;  %v3644_v3 = vrot.slane %v7513_v45, 1  ;;  %v6813_v14 = vld [vmem:[%s8290_s4 + $0x120] sm:$0xff]   ;;  %v6816_v22 = vld [vmem:[%s8290_s4 + $0xe8] sm:$0xff]  }
 0x160   : > { %6400 = vmatpush3.bf16.msra.mxu1 %v6762_v54  ;;  %v3365_v54 = vor.u32 %v3363_v57, %v3361_v47  ;;  %v3378_v48 = vsel %vm1038_vm3, %v3373_v40, %v3377_v4  ;;  %v3381_v20 = vor.u32 %v3379_v7, %v3377_v4  ;;  %v4000_v7 = vshll.u32 %v7621_v41, 16 }
 0x161   : > { %6401 = vmatprep.subr.bf16.mxu1 %v6766_v17  ;;  %v3645_v40 = vsel %vm1434_vm4, %v3642_v2, %v3644_v3 }
 0x162   : > { %6364 = vmatpush3.bf16.msra.mxu0 %v6765_v63  ;;  %v3370_v63 = vsel %vm1038_vm3, %v3365_v54, %v3369_v62  ;;  %v3646_v62 = vrot.slane %v7521_v43, 1 }
 0x163   : > { %6354 = vmatmul.mubr.bf16.gmra.mxu1 %v2754_v28  ;;  %6365 = vmatprep.subr.bf16.mxu0 %v6769_v25  ;;  %v6794_v28 = vld [vmem:[%s8290_s4 + $0x38] sm:$0xff]  }
 0x164   : > { %6402 = vmatpush3.bf16.msra.mxu1 %v6766_v17  ;;  %6357 = vmatprep.mubr.bf16.mxu1 %v2762_v33  ;;  %v6788_v17 = vld [vmem:[#allocation2 + $0x48] sm:$0xff]   ;;  %v3647_v4 = vsel %vm1434_vm4, %v3644_v3, %v3646_v62 }
 0x165   : > { %6403 = vmatprep.subr.bf16.mxu1 %v6770_v27  ;;  %6318 = vmatmul.mubr.bf16.gmra.mxu0 %v6771_v37  ;;  %v2967_v37 = vsel %vm1434_vm4, %v2964_v31, %v2966_v34  ;;  %v4153_v3 = vld [vmem:[#allocation2 + $0x48] sm:$0xe] }
 0x166   : > { %6366 = vmatpush3.bf16.msra.mxu0 %v6769_v25  ;;  %6321 = vmatprep.mubr.bf16.mxu0 %v6772_v9  ;;  %v3641_v25 = vrot.slane %v5386_v16, 1  ;;  %v2968_v9 = vrot.slane %v7433_v29, 1  ;;  %v6802_v29 = vld [vmem:[%s8290_s4 + $0x18] sm:$0xff]  }
 0x167   : > { %6367 = vmatprep.subr.bf16.mxu0 %v6773_v60 }
 0x168   : > { %6404 = vmatpush3.bf16.msra.mxu1 %v6770_v27  ;;  %v3386_v27 = vsel %vm1038_vm3, %v3381_v20, %v3385_v21  ;;  %v3643_v33 = vsel %vm1434_vm4, %v3641_v25, %v3642_v2  ;;  %v2969_v46 = vsel %vm1434_vm4, %v2966_v34, %v2968_v9  ;;  %v6820_v20 = vld [vmem:[%s8290_s4 + $0x108] sm:$0xff]   ;;  %v7672_v21 = vld [vmem:[#allocation2 + $0x58] sm:$0xff]   ;;  %v6822_v25 = vld [vmem:[%s8290_s4 + $0x100] sm:$0xff]  }
 0x169   : > { %6405 = vmatprep.subr.bf16.mxu1 %v6774_v39  ;;  %v4008_v2 = vshll.u32 %v7672_v21, 16 }
 0x16a   : > { %6368 = vmatpush3.bf16.msra.mxu0 %v6773_v60  ;;  %v6799_v60 = vld [vmem:[%s8290_s4 + $0x90] sm:$0xff]  }
 0x16b   : > { %6358 = vmatmul.mubr.bf16.gmra.mxu1 %v2770_v53  ;;  %6369 = vmatprep.subr.bf16.mxu0 %v6778_v50  ;;  %v6804_v53 = vld [vmem:[%s8290_s4 + $0x10] sm:$0xff]   ;;  %v4010_v31 = vrot.slane %v4008_v2, 1  ;;  %v6845_v2 = vld [vmem:[%s8290_s4 + $0x158] sm:$0xff]  }
 0x16c   : > { %6406 = vmatpush3.bf16.msra.mxu1 %v6774_v39  ;;  %6409 = vmatprep.mubr.bf16.mxu1 %v3362_v58  ;;  %v2970_v39 = vrot.slane %v7455_v51, 1  ;;  %v3944_v51 = vld [vmem:[#allocation2 + $0x48] sm:$0xf]  ;;  %v6805_v58 = vld [vmem:[%s8290_s4 + $0x138] sm:$0xff]  }
 0x16d   : > { %6407 = vmatprep.subr.bf16.mxu1 %v6779_v55  ;;  %6322 = vmatmul.mubr.bf16.gmra.mxu0 %v6780_v0  ;;  %v5439_v56 = vcombine.low %v3944_v51, %v7603_v49 }
 0x16e   : > { %6370 = vmatpush3.bf16.msra.mxu0 %v6778_v50  ;;  %6325 = vmatprep.mubr.bf16.mxu0 %v6781_v26  ;;  %v2971_v47 = vsel %vm1434_vm4, %v2968_v9, %v2970_v39  ;;  %v6803_v50 = vld [vmem:[%s8290_s4 + $0x80] sm:$0xff]   ;;  %v6807_v26 = vld [vmem:[%s8290_s4 + $0x130] sm:$0xff]  }
 0x16f   : > { %6371 = vmatprep.subr.bf16.mxu0 %v6782_v1  ;;  %v3995_v0 = vshll.u32 %v5439_v56, 16  ;;  %v3993_v54 = vshrl.u32 %v5439_v56, 16  ;;  %v6834_v56 = vld [vmem:[%s8290_s4 + $0x178] sm:$0xff]  }
 0x170   : > { %6408 = vmatpush3.bf16.msra.mxu1 %v6779_v55  ;;  %v2972_v55 = vrot.slane %v7469_v38, 1 }
 0x171   : > { %6441 = vmatprep.subr.bf16.mxu1 %v6783_v13  ;;  %v3997_v6 = vrot.slane %v3995_v0, 1  ;;  %v6837_v0 = vld [vmem:[%s8290_s4 + $0x170] sm:$0xff]  }
 0x172   : > { %6372 = vmatpush3.bf16.msra.mxu0 %v6782_v1  ;;  %v2973_v57 = vsel %vm1434_vm4, %v2970_v39, %v2972_v55  ;;  %v2975_v38 = vsel %vm1434_vm4, %v2972_v55, %v2974_v23  ;;  %v6806_v1 = vld [vmem:[%s8290_s4 + $0x8] sm:$0xff]  }
 0x173   : > { %6410 = vmatmul.mubr.bf16.vlgmr.msra.gmra.mxu1 %v3370_v63  ;;  %6373 = vmatprep.subr.bf16.mxu0 %v6786_v11  ;;  %v6812_v63 = vld [vmem:[%s8290_s4 + $0xf8] sm:$0xff]  }
 0x174   : > { %6442 = vmatpush3.bf16.msra.mxu1 %v6783_v13  ;;  %6413 = vmatprep.mubr.bf16.mxu1 %v3378_v48  ;;  %v2976_v13 = vrot.slane %v7496_v19, 1  ;;  %v3648_v48 = vrot.slane %v7538_v12, 1 }
 0x175   : > { %6443 = vmatprep.subr.bf16.mxu1 %v6787_v32  ;;  %6326 = vmatmul.mubr.bf16.gmra.mxu0 %v6788_v17  ;;  %v6815_v17 = vld [vmem:[%s8290_s4 + $0x118] sm:$0xff]  }
 0x176   : > { %6374 = vmatpush3.bf16.msra.mxu0 %v6786_v11  ;;  %6377 = vmatprep.mubr.bf16.mxu0 %v2963_v61  ;;  %v2977_v19 = vsel %vm1434_vm4, %v2974_v23, %v2976_v13  ;;  %v3998_v11 = vor.u32 %v3997_v6, %v3993_v54  ;;  %v3649_v16 = vsel %vm1434_vm4, %v3646_v62, %v3648_v48  ;;  %v6821_v61 = vld [vmem:[%s8290_s4 + $0xd8] sm:$0xff]   ;;  %v6833_v62 = vld [vmem:[#allocation2 + $0x50] sm:$0xff]  }
 0x177   : > { %6375 = vmatprep.subr.bf16.mxu0 %v6790_v30  ;;  %v6838_v13 = vld [vmem:[%s8290_s4 + $0x198] sm:$0xff]  }
 0x178   : > { %6444 = vmatpush3.bf16.msra.mxu1 %v6787_v32  ;;  %v4002_v32 = vrot.slane %v4000_v7, 1 }
 0x179   : > { %6445 = vmatprep.subr.bf16.mxu1 %v6791_v18 }
 0x17a   : > { %6376 = vmatpush3.bf16.msra.mxu0 %v6790_v30  ;;  %v4003_v12 = vsel %vm1038_vm3, %v3998_v11, %v4002_v32  ;;  %v6817_v30 = vld [vmem:[%s8290_s4 + $0x110] sm:$0xff]  }
 0x17b   : > { %6414 = vmatmul.mubr.bf16.gmra.mxu1 %v3386_v27  ;;  %6417 = vmatprep.subr.bf16.mxu0 %v6794_v28  ;;  %v4004_v27 = vshrl.u32 %v7621_v41, 16 }
 0x17c   : > { %6446 = vmatpush3.bf16.msra.mxu1 %v6791_v18  ;;  %6457 = vmatprep.mubr.bf16.mxu1 %v3643_v33  ;;  %v7675_v18 = vld [vmem:[#allocation2 + $0x60] sm:$0xff]   ;;  %v6825_v33 = vld [vmem:[%s8290_s4 + $0x1b8] sm:$0xff]  }
 0x17d   : > { %6447 = vmatprep.subr.bf16.mxu1 %v6795_v42  ;;  %6378 = vmatmul.mubr.bf16.vlgmr.msra.gmra.mxu0 %v2965_v35  ;;  %v4006_v34 = vor.u32 %v4004_v27, %v4002_v32  ;;  %v4020_v9 = vshrl.u32 %v7675_v18, 16  ;;  %v4174_v32 = vrot.slane %v7621_v41, 1 }
 0x17e   : > { %6418 = vmatpush3.bf16.msra.mxu0 %v6794_v28  ;;  %6381 = vmatprep.mubr.bf16.mxu0 %v2967_v37  ;;  %v4016_v28 = vshll.u32 %v7675_v18, 16  ;;  %v6827_v37 = vld [vmem:[%s8290_s4 + $0xc8] sm:$0xff]  }
 0x17f   : > { %6419 = vmatprep.subr.bf16.mxu0 %v6796_v36 }
 0x180   : > { %6448 = vmatpush3.bf16.msra.mxu1 %v6795_v42  ;;  %v6823_v42 = vld [vmem:[%s8290_s4 + $0xd0] sm:$0xff]  }
 0x181   : > { %6449 = vmatprep.subr.bf16.mxu1 %v6797_v5 }
 0x182   : > { %6420 = vmatpush3.bf16.msra.mxu0 %v6796_v36  ;;  %v7693_v36 = vld [vmem:[#allocation2 + $0x68] ss:$0 sps:$4 sm:$0x11]  }
 0x183   : > { %6421 = vmatprep.subr.bf16.mxu0 %v6798_v15  ;;  %v4024_v39 = vshll.u32 %v7693_v36, 16 }
 0x184   : > { %6450 = vmatpush3.bf16.msra.mxu1 %v6797_v5  ;;  %v4018_v5 = vrot.slane %v4016_v28, 1  ;;  %v6846_v28 = vld [vmem:[%s8290_s4 + $0x180] sm:$0xff]  }
 0x185   : > { %6451 = vmatprep.subr.bf16.mxu1 %v6799_v60  ;;  %6382 = vmatmul.mubr.bf16.gmra.mxu0 %v2969_v46 }
 0x186   : > { %6422 = vmatpush3.bf16.msra.mxu0 %v6798_v15  ;;  %6385 = vmatprep.mubr.bf16.mxu0 %v2971_v47  ;;  %v6828_v15 = vld [vmem:[%s8290_s4 + $0x1b0] sm:$0xff]   ;;  %v4022_v51 = vor.u32 %v4020_v9, %v4018_v5 }
 0x187   : > { %6423 = vmatprep.subr.bf16.mxu0 %v6800_v44 }
 0x188   : > { %6452 = vmatpush3.bf16.msra.mxu1 %v6799_v60  ;;  %v4011_v60 = vsel %vm1038_vm3, %v4006_v34, %v4010_v31 }
 0x189   : > { %6453 = vmatprep.subr.bf16.mxu1 %v6801_v52 }
 0x18a   : > { %6424 = vmatpush3.bf16.msra.mxu0 %v6800_v44 }
 0x18b   : > { %6425 = vmatprep.subr.bf16.mxu0 %v6802_v29 }
 0x18c   : > { %6454 = vmatpush3.bf16.msra.mxu1 %v6801_v52  ;;  %v6829_v52 = vld [vmem:[%s8290_s4 + $0xc0] sm:$0xff]  }
 0x18d   : > { %6455 = vmatprep.subr.bf16.mxu1 %v6803_v50  ;;  %6386 = vmatmul.mubr.bf16.gmra.mxu0 %v2973_v57 }
 0x18e   : > { %6426 = vmatpush3.bf16.msra.mxu0 %v6802_v29  ;;  %6389 = vmatprep.mubr.bf16.mxu0 %v2975_v38  ;;  %v6831_v29 = vld [vmem:[%s8290_s4 + $0x1a8] sm:$0xff]  }
 0x18f   : > { %6427 = vmatprep.subr.bf16.mxu0 %v6804_v53 }
 0x190   : > { %6456 = vmatpush3.bf16.msra.mxu1 %v6803_v50  ;;  %v4026_v50 = vrot.slane %v4024_v39, 1 }
 0x191   : > { %6489 = vmatprep.subr.bf16.mxu1 %v6805_v58 }
 0x192   : > { %6428 = vmatpush3.bf16.msra.mxu0 %v6804_v53  ;;  %v6835_v53 = vld [vmem:[%s8290_s4 + $0x1a0] sm:$0xff]   ;;  %v4027_v57 = vsel %vm1038_vm3, %v4022_v51, %v4026_v50  ;;  %v6851_v51 = vld [vmem:[%s8290_s4 + $0x148] sm:$0xff]   ;;  %v6852_v50 = vld [vmem:[%s8290_s4 + $0x230] sm:$0xff]  }
 0x193   : > { %6458 = vmatmul.mubr.bf16.vlgmr.msra.gmra.mxu1 %v3645_v40  ;;  %6429 = vmatprep.subr.bf16.mxu0 %v6806_v1 }
 0x194   : > { %6461 = vmatprep.mubr.bf16.mxu1 %v3647_v4  ;;  %6490 = vmatpush3.bf16.msra.mxu1 %v6805_v58  ;;  %v6832_v58 = vld [vmem:[#allocation2 + $0x50] sm:$0xff]   ;;  %v5468_v4 = vcombine.low %v4153_v3, %v7603_v49 }
 0x195   : > { %6491 = vmatprep.subr.bf16.mxu1 %v6807_v26  ;;  %6390 = vmatmul.mubr.bf16.gmra.mxu0 %v2977_v19  ;;  %v6841_v49 = vld [vmem:[%s8290_s4 + $0x190] sm:$0xff]  }
 0x196   : > { %6430 = vmatpush3.bf16.msra.mxu0 %v6806_v1  ;;  %6433 = vmatprep.mubr.bf16.mxu0 %v7487_v10  ;;  %v6814_v10 = vld [vmem:[%s8290_s4 + $0xf0] sm:$0xff]   ;;  %v4173_v11 = vrot.slane %v5468_v4, 1 }
 0x197   : > { %6431 = vmatprep.subr.bf16.mxu0 %v6808_v8 }
 0x198   : > { %6492 = vmatpush3.bf16.msra.mxu1 %v6807_v26  ;;  %v6836_v26 = vld [vmem:[#allocation2 + $0x58] sm:$0xff]  }
 0x199   : > { %6493 = vmatprep.subr.bf16.mxu1 %v6809_v59 }
 0x19a   : > { %6432 = vmatpush3.bf16.msra.mxu0 %v6808_v8  ;;  %v6840_v8 = vld [vmem:[%s8290_s4 + $0x168] sm:$0xff]  }
 0x19b   : > { %6462 = vmatmul.mubr.bf16.gmra.mxu1 %v3649_v16  ;;  %6465 = vmatprep.subr.bf16.mxu0 %v6812_v63 }
 0x19c   : > { %6494 = vmatpush3.bf16.msra.mxu1 %v6809_v59  ;;  %6505 = vmatprep.mubr.bf16.mxu1 %v4003_v12  ;;  %v6839_v12 = vld [vmem:[#allocation2 + $0x60] sm:$0xff]  }
 0x19d   : > { %6495 = vmatprep.subr.bf16.mxu1 %v6813_v14  ;;  %6434 = vmatmul.mubr.bf16.vlgmr.msra.gmra.mxu0 %v7498_v24  ;;  %v6819_v24 = vld [vmem:[%s8290_s4 + $0xe0] sm:$0xff]  }
 0x19e   : > { %6466 = vmatpush3.bf16.msra.mxu0 %v6812_v63  ;;  %6437 = vmatprep.mubr.bf16.mxu0 %v7513_v45  ;;  %v6818_v45 = vld [vmem:[#allocation2 + $0x48] sm:$0xff]  }
 0x19f   : > { %6467 = vmatprep.subr.bf16.mxu0 %v6814_v10 }
 0x1a0   : > { %6496 = vmatpush3.bf16.msra.mxu1 %v6813_v14 }
 0x1a1   : > { %6497 = vmatprep.subr.bf16.mxu1 %v6815_v17 }
 0x1a2   : > { %6468 = vmatpush3.bf16.msra.mxu0 %v6814_v10  ;;  %v6843_v10 = vld [vmem:[%s8290_s4 + $0x160] sm:$0xff]  }
 0x1a3   : > { %6469 = vmatprep.subr.bf16.mxu0 %v6816_v22 }
 0x1a4   : > { %6498 = vmatpush3.bf16.msra.mxu1 %v6815_v17 }
 0x1a5   : > { %6499 = vmatprep.subr.bf16.mxu1 %v6817_v30  ;;  %6438 = vmatmul.mubr.bf16.gmra.mxu0 %v7521_v43  ;;  %v4012_v43 = vshrl.u32 %v7672_v21, 16 }
 0x1a6   : > { %6470 = vmatpush3.bf16.msra.mxu0 %v6816_v22  ;;  %6481 = vmatprep.mubr.bf16.mxu0 %v6818_v45  ;;  %v4175_v45 = vsel %vm1434_vm4, %v4173_v11, %v4174_v32 }
 0x1a7   : > { %6471 = vmatprep.subr.bf16.mxu0 %v6819_v24  ;;  %v4014_v35 = vor.u32 %v4012_v43, %v4010_v31 }
 0x1a8   : > { %6500 = vmatpush3.bf16.msra.mxu1 %v6817_v30  ;;  %v6844_v30 = vld [vmem:[%s8290_s4 + $0x188] sm:$0xff]  }
 0x1a9   : > { %6501 = vmatprep.subr.bf16.mxu1 %v6820_v20  ;;  %v4019_v46 = vsel %vm1038_vm3, %v4014_v35, %v4018_v5  ;;  %v6847_v35 = vld [vmem:[%s8290_s4 + $0x150] sm:$0xff]  }
 0x1aa   : > { %6472 = vmatpush3.bf16.msra.mxu0 %v6819_v24 }
 0x1ab   : > { %6473 = vmatprep.subr.bf16.mxu0 %v6821_v61 }
 0x1ac   : > { %6502 = vmatpush3.bf16.msra.mxu1 %v6820_v20 }
 0x1ad   : > { %6503 = vmatprep.subr.bf16.mxu1 %v6822_v25 }
 0x1ae   : > { %6474 = vmatpush3.bf16.msra.mxu0 %v6821_v61 }
 0x1af   : > { %6475 = vmatprep.subr.bf16.mxu0 %v6823_v42 }
 0x1b0   : > { %6504 = vmatpush3.bf16.msra.mxu1 %v6822_v25 }
 0x1b1   : > { %6537 = vmatprep.subr.bf16.mxu1 %v6825_v33 }
 0x1b2   : > { %6476 = vmatpush3.bf16.msra.mxu0 %v6823_v42 }
 0x1b3   : > { %6506 = vmatmul.mubr.bf16.vlgmr.msra.gmra.mxu1 %v4011_v60  ;;  %v6155_v44 = vpop.f32.mrf.mxu1  ;;  %6477 = vmatprep.subr.bf16.mxu0 %v6827_v37 }
 0x1b4   : > { %6509 = vmatprep.mubr.bf16.mxu1 %v4019_v46  ;;  %6538 = vmatpush3.bf16.msra.mxu1 %v6825_v33  ;;  %v4685_v46 = vld [vmem:[#allocation2 + $0x50] sm:$0xe] }
 0x1b5   : > { %v1350_v47 = vpop.f32.mrf.mxu1  ;;  %6539 = vmatprep.subr.bf16.mxu1 %v6828_v15 }
 0x1b6   : > { %6478 = vmatpush3.bf16.msra.mxu0 %v6827_v37 }
 0x1b7   : > { %v6156_v55 = vpop.f32.mrf.mxu1  ;;  %6479 = vmatprep.subr.bf16.mxu0 %v6829_v52 }
 0x1b8   : > { %6540 = vmatpush3.bf16.msra.mxu1 %v6828_v15  ;;  %v6849_v15 = vld [vmem:[%s8290_s4 + $0x238] sm:$0xff]  }
 0x1b9   : > { %v1353_v23 = vpop.f32.mrf.mxu1  ;;  %6541 = vmatprep.subr.bf16.mxu1 %v6831_v29 }
 0x1ba   : > { %6480 = vmatpush3.bf16.msra.mxu0 %v6829_v52 }
 0x1bb   : > { %6510 = vmatmul.mubr.bf16.gmra.mxu1 %v4027_v57  ;;  %v6159_v38 = vpop.f32.mrf.mxu1  ;;  %6513 = vmatprep.subr.bf16.mxu0 %v6834_v56 }
 0x1bc   : > { %6542 = vmatpush3.bf16.msra.mxu1 %v6831_v29  ;;  %6553 = vmatprep.mubr.bf16.mxu1 %v6832_v58  ;;  %v6848_v29 = vld [vmem:[#allocation2 + $0x58] sm:$0xff]   ;;  %v4476_v58 = vld [vmem:[#allocation2 + $0x50] sm:$0xf] }
 0x1bd   : > { %v1366_v1 = vpop.f32.mrf.mxu1  ;;  %6543 = vmatprep.subr.bf16.mxu1 %v6835_v53  ;;  %6482 = vmatmul.mubr.bf16.vlgmr.msra.gmra.mxu0 %v6833_v62  ;;  %v6123_v40 = vpop.f32.mrf.mxu0 }
 0x1be   : > { %v7725_v54 = vadd.f32 %v6155_v44, %v6123_v40  ;;  %6485 = vmatprep.mubr.bf16.mxu0 %v6836_v26  ;;  %6514 = vmatpush3.bf16.msra.mxu0 %v6834_v56  ;;  %v4477_v56 = vld [vmem:[#allocation2 + $0x54] sm:$0xf] }
 0x1bf   : > { %v6160_v6 = vpop.f32.mrf.mxu1  ;;  %v1197_v7 = vpop.f32.mrf.mxu0  ;;  %6515 = vmatprep.subr.bf16.mxu0 %v6837_v0  ;;  %v5550_v3 = vcombine.low %v4685_v46, %v4477_v56  ;;  %v5521_v4 = vcombine.low %v4476_v58, %v4477_v56 }
 0x1c0   : > { %6544 = vmatpush3.bf16.msra.mxu1 %v6835_v53  ;;  %v7730_v19 = vadd.f32 %v1350_v47, %v1197_v7 }
 0x1c1   : > { %v1369_v59 = vpop.f32.mrf.mxu1  ;;  %6545 = vmatprep.subr.bf16.mxu1 %v6838_v13  ;;  %v6124_v48 = vpop.f32.mrf.mxu0 }
 0x1c2   : > { %v7736_v63 = vadd.f32 %v6156_v55, %v6124_v48  ;;  %6516 = vmatpush3.bf16.msra.mxu0 %v6837_v0  ;;  %v6853_v0 = vld [vmem:[%s8290_s4 + $0x140] sm:$0xff]  }
 0x1c3   : > { %v6163_v14 = vpop.f32.mrf.mxu1  ;;  %v1200_v16 = vpop.f32.mrf.mxu0  ;;  %6517 = vmatprep.subr.bf16.mxu0 %v6840_v8 }
 0x1c4   : > { %6546 = vmatpush3.bf16.msra.mxu1 %v6838_v13  ;;  %v7741_v17 = vadd.f32 %v1353_v23, %v1200_v16  ;;  %v6850_v23 = vld [vmem:[#allocation2 + $0x60] sm:$0xff]   ;;  %v6855_v13 = vld [vmem:[%s8290_s4 + $0x228] sm:$0xff]   ;;  %v4176_v16 = vrot.slane %v7672_v21, 1 }
 0x1c5   : > { %v1382_v22 = vpop.f32.mrf.mxu1  ;;  %6547 = vmatprep.subr.bf16.mxu1 %v6841_v49  ;;  %6486 = vmatmul.mubr.bf16.gmra.mxu0 %v6839_v12  ;;  %v6127_v24 = vpop.f32.mrf.mxu0  ;;  %v6859_v12 = vld [vmem:[%s8290_s4 + $0x1f8] sm:$0xff]  }
 0x1c6   : > { %v7749_v20 = vadd.f32 %v6159_v38, %v6127_v24  ;;  %6518 = vmatpush3.bf16.msra.mxu0 %v6840_v8  ;;  %6529 = vmatprep.mubr.bf16.mxu0 %v4175_v45  ;;  %v7783_v38 = vld [vmem:[#allocation2 + $0x58] sm:$0xff]   ;;  %v4705_v8 = vrot.slane %v5550_v3, 1  ;;  %v4527_v24 = vshll.u32 %v5521_v4, 16 }
 0x1c7   : > { %v6164_v61 = vpop.f32.mrf.mxu1  ;;  %v1213_v25 = vpop.f32.mrf.mxu0  ;;  %6519 = vmatprep.subr.bf16.mxu0 %v6843_v10 }
 0x1c8   : > { %6548 = vmatpush3.bf16.msra.mxu1 %v6841_v49  ;;  %v7754_v27 = vadd.f32 %v1366_v1, %v1213_v25 }
 0x1c9   : > { %v1385_v43 = vpop.f32.mrf.mxu1  ;;  %6549 = vmatprep.subr.bf16.mxu1 %v6844_v30  ;;  %v6128_v42 = vpop.f32.mrf.mxu0 }
 0x1ca   : > { %v7759_v31 = vadd.f32 %v6160_v6, %v6128_v42  ;;  %6520 = vmatpush3.bf16.msra.mxu0 %v6843_v10  ;;  %v6860_v10 = vld [vmem:[%s8290_s4 + $0x220] sm:$0xff]   ;;  %v6862_v42 = vld [vmem:[%s8290_s4 + $0x218] sm:$0xff]  }
 0x1cb   : > { %v6167_v33 = vpop.f32.mrf.mxu1  ;;  %v1216_v34 = vpop.f32.mrf.mxu0  ;;  %6521 = vmatprep.subr.bf16.mxu0 %v6845_v2 }
 0x1cc   : > { %6550 = vmatpush3.bf16.msra.mxu1 %v6844_v30  ;;  %v7764_v5 = vadd.f32 %v1369_v59, %v1216_v34  ;;  %v4706_v59 = vrot.slane %v7783_v38, 1  ;;  %v4178_v30 = vrot.slane %v7675_v18, 1 }
 0x1cd   : > { %v1398_v37 = vpop.f32.mrf.mxu1  ;;  %6551 = vmatprep.subr.bf16.mxu1 %v6846_v28  ;;  %v6131_v60 = vpop.f32.mrf.mxu0 }
 0x1ce   : > { %v7769_v9 = vadd.f32 %v6163_v14, %v6131_v60  ;;  %6522 = vmatpush3.bf16.msra.mxu0 %v6845_v2  ;;  %v6854_v14 = vld [vmem:[#allocation2 + $0x68] sm:$0xff]   ;;  %v4707_v21 = vsel %vm1434_vm4, %v4705_v8, %v4706_v59  ;;  %v6861_v2 = vld [vmem:[%s8290_s4 + $0x1f0] sm:$0xff]   ;;  %v4179_v34 = vsel %vm1434_vm4, %v4176_v16, %v4178_v30 }
 0x1cf   : > { %v6168_v39 = vpop.f32.mrf.mxu1  ;;  %v1229_v44 = vpop.f32.mrf.mxu0  ;;  %6523 = vmatprep.subr.bf16.mxu0 %v6847_v35 }
 0x1d0   : > { %6552 = vmatpush3.bf16.msra.mxu1 %v6846_v28  ;;  %v7771_v52 = vadd.f32 %v1382_v22, %v1229_v44  ;;  %v4177_v28 = vsel %vm1434_vm4, %v4174_v32, %v4176_v16  ;;  %v6870_v16 = vld [vmem:[#allocation2 + $0x60] sm:$0xff]  }
 0x1d1   : > { %v1401_v47 = vpop.f32.mrf.mxu1  ;;  %6585 = vmatprep.subr.bf16.mxu1 %v6849_v15  ;;  %v6132_v55 = vpop.f32.mrf.mxu0 }
 0x1d2   : > { %v7779_v53 = vadd.f32 %v6164_v61, %v6132_v55  ;;  %6524 = vmatpush3.bf16.msra.mxu0 %v6847_v35  ;;  %v4525_v35 = vshrl.u32 %v5521_v4, 16  ;;  %v6867_v4 = vld [vmem:[%s8290_s4 + $0x1d8] sm:$0xff]  }
 0x1d3   : > { %6554 = vmatmul.mubr.bf16.vlgmr.msra.gmra.mxu1 %v6848_v29  ;;  %v7781_v57 = vpop.f32.mrf.mxu1  ;;  %v1232_v62 = vpop.f32.mrf.mxu0  ;;  %6525 = vmatprep.subr.bf16.mxu0 %v6851_v51 }
 0x1d4   : > { %6557 = vmatprep.mubr.bf16.mxu1 %v6850_v23  ;;  %6586 = vmatpush3.bf16.msra.mxu1 %v6849_v15  ;;  %v7788_v1 = vadd.f32 %v1385_v43, %v1232_v62  ;;  %v4532_v15 = vshll.u32 %v7783_v38, 16 }
 0x1d5   : > { %v7790_v26 = vpop.f32.mrf.mxu1  ;;  %6587 = vmatprep.subr.bf16.mxu1 %v6852_v50  ;;  %v6135_v40 = vpop.f32.mrf.mxu0 }
 0x1d6   : > { %v7795_v6 = vadd.f32 %v6167_v33, %v6135_v40  ;;  %6526 = vmatpush3.bf16.msra.mxu0 %v6851_v51 }
 0x1d7   : > { %v7797_v7 = vpop.f32.mrf.mxu1  ;;  %v1245_v49 = vpop.f32.mrf.mxu0  ;;  %6527 = vmatprep.subr.bf16.mxu0 %v6853_v0 }
 0x1d8   : > { %6588 = vmatpush3.bf16.msra.mxu1 %v6852_v50  ;;  %v7800_v48 = vadd.f32 %v1398_v37, %v1245_v49  ;;  %v4529_v37 = vrot.slane %v4527_v24, 1  ;;  %v7851_v50 = vrot.slane %v4532_v15, 1  ;;  %v6874_v15 = vld [vmem:[#allocation2 + $0x70] ss:$0 sps:$4 sm:$0x11]  }
 0x1d9   : > { %v7802_v11 = vpop.f32.mrf.mxu1  ;;  %6589 = vmatprep.subr.bf16.mxu1 %v6855_v13  ;;  %v6136_v22 = vpop.f32.mrf.mxu0 }
 0x1da   : > { %v7812_v45 = vadd.f32 %v6168_v39, %v6136_v22  ;;  %6528 = vmatpush3.bf16.msra.mxu0 %v6853_v0  ;;  %v6863_v39 = vld [vmem:[%s8290_s4 + $0x1e8] sm:$0xff]   ;;  %v4530_v51 = vor.u32 %v4529_v37, %v4525_v35 }
 0x1db   : > { %6558 = vmatmul.mubr.bf16.gmra.mxu1 %v6854_v14  ;;  %v7814_v61 = vpop.f32.mrf.mxu1  ;;  %v1248_v25 = vpop.f32.mrf.mxu0  ;;  %6561 = vmatprep.subr.bf16.mxu0 %v6859_v12  ;;  %v7893_v22 = vld [vmem:[#allocation2 + $0x68] sm:$0xff]  }
 0x1dc   : > { %6590 = vmatpush3.bf16.msra.mxu1 %v6855_v13  ;;  %6601 = vmatprep.mubr.bf16.mxu1 %v4707_v21  ;;  %v7822_v43 = vadd.f32 %v1401_v47, %v1248_v25  ;;  %v6864_v47 = vld [vmem:[%s8290_s4 + $0x210] sm:$0xff]   ;;  %v4535_v0 = vsel %vm1038_vm3, %v4530_v51, %v7851_v50  ;;  %v4708_v25 = vrot.slane %v6870_v16, 1 }
 0x1dd   : > { %v7824_v18 = vpop.f32.mrf.mxu1  ;;  %6591 = vmatprep.subr.bf16.mxu1 %v6860_v10  ;;  %6530 = vmatmul.mubr.bf16.vlgmr.msra.gmra.mxu0 %v4177_v28  ;;  %v6187_v33 = vpop.f32.mrf.mxu0 }
 0x1de   : > { %v7835_v60 = vadd.f32 %v6187_v33, %v7725_v54  ;;  %6533 = vmatprep.mubr.bf16.mxu0 %v4179_v34  ;;  %6562 = vmatpush3.bf16.msra.mxu0 %v6859_v12  ;;  %v4180_v54 = vrot.slane %v7693_v36, 1  ;;  %v6865_v36 = vld [vmem:[%s8290_s4 + $0x1e0] sm:$0xff]  }
 0x1df   : > { %v7837_v41 = vpop.f32.mrf.mxu1  ;;  %v1542_v32 = vpop.f32.mrf.mxu0  ;;  %6563 = vmatprep.subr.bf16.mxu0 %v6861_v2 }
 0x1e0   : > { %6592 = vmatpush3.bf16.msra.mxu1 %v6860_v10  ;;  %v7843_v44 = vadd.f32 %v1542_v32, %v7730_v19  ;;  %v4181_v3 = vsel %vm1434_vm4, %v4178_v30, %v4180_v54  ;;  %v6869_v30 = vld [vmem:[%s8290_s4 + $0x1d0] sm:$0xff]  }
 0x1e1   : > { %v7845_v46 = vpop.f32.mrf.mxu1  ;;  %6593 = vmatprep.subr.bf16.mxu1 %v6862_v42  ;;  %v6188_v29 = vpop.f32.mrf.mxu0 }
 0x1e2   : > { %v7854_v55 = vadd.f32 %v6188_v29, %v7736_v63  ;;  %6564 = vmatpush3.bf16.msra.mxu0 %v6861_v2  ;;  %v6866_v63 = vld [vmem:[%s8290_s4 + $0x208] sm:$0xff]   ;;  %v4540_v29 = vshll.u32 %v6870_v16, 16 }
 0x1e3   : > { %v7856_v23 = vpop.f32.mrf.mxu1  ;;  %v1545_v19 = vpop.f32.mrf.mxu0  ;;  %6565 = vmatprep.subr.bf16.mxu0 %v6863_v39 }
 0x1e4   : > { %6594 = vmatpush3.bf16.msra.mxu1 %v6862_v42  ;;  %v7862_v56 = vadd.f32 %v1545_v19, %v7741_v17  ;;  %v4710_v42 = vrot.slane %v7893_v22, 1 }
 0x1e5   : > { %v7864_v58 = vpop.f32.mrf.mxu1  ;;  %6595 = vmatprep.subr.bf16.mxu1 %v6864_v47  ;;  %6534 = vmatmul.mubr.bf16.gmra.mxu0 %v4181_v3  ;;  %v6191_v62 = vpop.f32.mrf.mxu0  ;;  %v4544_v3 = vshrl.u32 %v6870_v16, 16 }
 0x1e6   : > { %v7873_v13 = vadd.f32 %v6191_v62, %v7749_v20  ;;  %6566 = vmatpush3.bf16.msra.mxu0 %v6863_v39  ;;  %6577 = vmatprep.mubr.bf16.mxu0 %v4535_v0  ;;  %v6868_v20 = vld [vmem:[%s8290_s4 + $0x200] sm:$0xff]   ;;  %v4711_v54 = vsel %vm1434_vm4, %v4708_v25, %v4710_v42 }
 0x1e7   : > { %v7875_v40 = vpop.f32.mrf.mxu1  ;;  %v1558_v17 = vpop.f32.mrf.mxu0  ;;  %6567 = vmatprep.subr.bf16.mxu0 %v6865_v36 }
 0x1e8   : > { %6596 = vmatpush3.bf16.msra.mxu1 %v6864_v47  ;;  %v7881_v8 = vadd.f32 %v1558_v17, %v7754_v27  ;;  %v6873_v47 = vld [vmem:[%s8290_s4 + $0x1c0] sm:$0xff]  }
 0x1e9   : > { %v7883_v49 = vpop.f32.mrf.mxu1  ;;  %6597 = vmatprep.subr.bf16.mxu1 %v6866_v63  ;;  %v6192_v14 = vpop.f32.mrf.mxu0 }
 0x1ea   : > { %v7889_v12 = vadd.f32 %v6192_v14, %v7759_v31  ;;  %6568 = vmatpush3.bf16.msra.mxu0 %v6865_v36  ;;  %v4712_v36 = vrot.slane %v6874_v15, 1 }
 0x1eb   : > { %v7891_v10 = vpop.f32.mrf.mxu1  ;;  %v1561_v27 = vpop.f32.mrf.mxu0  ;;  %6569 = vmatprep.subr.bf16.mxu0 %v6867_v4 }
 0x1ec   : > { %6598 = vmatpush3.bf16.msra.mxu1 %v6866_v63  ;;  %v7899_v24 = vadd.f32 %v1561_v27, %v7764_v5  ;;  %v6872_v5 = vld [vmem:[%s8290_s4 + $0x1c8] sm:$0xff]   ;;  %v4548_v63 = vshll.u32 %v7893_v22, 16  ;;  %v4713_v14 = vsel %vm1434_vm4, %v4710_v42, %v4712_v36  ;;  %v4552_v42 = vshrl.u32 %v7893_v22, 16 }
 0x1ed   : > { %v7901_v21 = vpop.f32.mrf.mxu1  ;;  %6599 = vmatprep.subr.bf16.mxu1 %v6868_v20  ;;  %v6195_v31 = vpop.f32.mrf.mxu0 }
 0x1ee   : > { %v7904_v2 = vadd.f32 %v6195_v31, %v7769_v9  ;;  %6570 = vmatpush3.bf16.msra.mxu0 %v6867_v4  ;;  %v4709_v9 = vsel %vm1434_vm4, %v4706_v59, %v4708_v25  ;;  %v4536_v59 = vshrl.u32 %v7783_v38, 16  ;;  %v4542_v4 = vrot.slane %v4540_v29, 1 }
 0x1ef   : > { %v7906_v28 = vpop.f32.mrf.mxu1  ;;  %v1574_v33 = vpop.f32.mrf.mxu0  ;;  %6571 = vmatprep.subr.bf16.mxu0 %v6869_v30 }
 0x1f0   : > { %8294 = vst [vmem:[#allocation3_spill] sm:$0xff] %v7906_v28  ;;  %6600 = vmatpush3.bf16.msra.mxu1 %v6868_v20  ;;  %v7913_v34 = vadd.f32 %v1574_v33, %v7771_v52  ;;  %v4538_v38 = vor.u32 %v4536_v59, %v7851_v50  ;;  %v4546_v27 = vor.u32 %v4544_v3, %v4542_v4 }
 0x1f1   : > { %v7915_v35 = vpop.f32.mrf.mxu1  ;;  %v6196_v37 = vpop.f32.mrf.mxu0 }
 0x1f2   : > { %8295 = vst [vmem:[#allocation4_spill] sm:$0xff] %v7915_v35  ;;  %v7921_v32 = vadd.f32 %v6196_v37, %v7779_v53  ;;  %6572 = vmatpush3.bf16.msra.mxu0 %v6869_v30  ;;  %v4550_v30 = vrot.slane %v4548_v63, 1  ;;  %v4543_v33 = vsel %vm1038_vm3, %v4538_v38, %v4542_v4 }
 0x1f3   : > { %6602 = vmatmul.mubr.bf16.vlgmr.msra.gmra.mxu1 %v4709_v9  ;;  %v7923_v39 = vpop.f32.mrf.mxu1  ;;  %v1577_v52 = vpop.f32.mrf.mxu0  ;;  %6573 = vmatprep.subr.bf16.mxu0 %v6872_v5 }
 0x1f4   : > { %6605 = vmatprep.mubr.bf16.mxu1 %v4711_v54  ;;  %v7931_v51 = vadd.f32 %v1577_v52, %v7788_v1  ;;  %v4551_v37 = vsel %vm1038_vm3, %v4546_v27, %v4550_v30 }
 0x1f5   : > { %v7933_v53 = vpop.f32.mrf.mxu1  ;;  %v6199_v19 = vpop.f32.mrf.mxu0 }
 0x1f6   : > { %v7937_v62 = vadd.f32 %v6199_v19, %v7795_v6  ;;  %6574 = vmatpush3.bf16.msra.mxu0 %v6872_v5  ;;  %v4556_v5 = vshll.u32 %v6874_v15, 16 }
 0x1f7   : > { %v7939_v0 = vpop.f32.mrf.mxu1  ;;  %v1590_v17 = vpop.f32.mrf.mxu0  ;;  %6575 = vmatprep.subr.bf16.mxu0 %v6873_v47 }
 0x1f8   : > { %v7943_v1 = vadd.f32 %v1590_v17, %v7800_v48 }
 0x1f9   : > { %v7945_v20 = vpop.f32.mrf.mxu1  ;;  %v6200_v16 = vpop.f32.mrf.mxu0 }
 0x1fa   : > { %v7949_v6 = vadd.f32 %v6200_v16, %v7812_v45  ;;  %6576 = vmatpush3.bf16.msra.mxu0 %v6873_v47  ;;  %v4554_v47 = vor.u32 %v4552_v42, %v4550_v30 }
 0x1fb   : > { %6606 = vmatmul.mubr.bf16.gmra.mxu1 %v4713_v14  ;;  %v7951_v31 = vpop.f32.mrf.mxu1  ;;  %v1593_v25 = vpop.f32.mrf.mxu0 }
 0x1fc   : > { %v7954_v50 = vadd.f32 %v1593_v25, %v7822_v43  ;;  %v4558_v43 = vrot.slane %v4556_v5, 1 }
 0x1fd   : > { %v7956_v48 = vpop.f32.mrf.mxu1  ;;  %6578 = vmatmul.mubr.bf16.vlgmr.msra.gmra.mxu0 %v4543_v33  ;;  %v6251_v9 = vpop.f32.mrf.mxu0 }
 0x1fe   : > { %8296 = vst [vmem:[#allocation5_spill] sm:$0xff] %v7954_v50  ;;  %6581 = vmatprep.mubr.bf16.mxu0 %v4551_v37  ;;  %v4559_v22 = vsel %vm1038_vm3, %v4554_v47, %v4558_v43 }
 0x1ff   : > { %v7961_v45 = vpop.f32.mrf.mxu1  ;;  %v2098_v54 = vpop.f32.mrf.mxu0 }
 0x200   : > { %8297 = vst [vmem:[#allocation6_spill] sm:$0xff] %v7961_v45 }
 0x201   : > { %v7963_v52 = vpop.f32.mrf.mxu1  ;;  %v6252_v29 = vpop.f32.mrf.mxu0 }
 0x202   : > { %8298 = vst [vmem:[#allocation7_spill] sm:$0xff] %v7963_v52 }
 0x203   : > { %v7965_v59 = vpop.f32.mrf.mxu1  ;;  %v2101_v19 = vpop.f32.mrf.mxu0 }
 0x204   : > { %8299 = vst [vmem:[#allocation8_spill] sm:$0xff] %v7965_v59 }
 0x205   : > { %v7967_v36 = vpop.f32.mrf.mxu1  ;;  %6582 = vmatmul.mubr.bf16.gmra.mxu0 %v4559_v22  ;;  %v6255_v15 = vpop.f32.mrf.mxu0 }
 0x206   : > { %8300 = vst [vmem:[#allocation9_spill] sm:$0xff] %v7967_v36 }
 0x207   : > { %v7970_v3 = vpop.f32.mrf.mxu1  ;;  %v7972_v63 = vpop.f32.mrf.mxu0 }
 0x208   : > { %8301 = vst [vmem:[#allocation10_spill] sm:$0xff] %v7970_v3 }
 0x209   : > { %v7974_v17 = vpop.f32.mrf.mxu1  ;;  %v7976_v4 = vpop.f32.mrf.mxu0 }
 0x20a   : > { %8302 = vst [vmem:[#allocation11_spill] sm:$0xff] %v7974_v17 }
 0x20b   : > { %v7978_v38 = vpop.f32.mrf.mxu1  ;;  %v7980_v14 = vpop.f32.mrf.mxu0 }
 0x20c   : > { %8303 = vst [vmem:[#allocation12_spill] sm:$0xff] %v7978_v38 }
 0x20d   : > { %v7982_v16 = vpop.f32.mrf.mxu1  ;;  %v7984_v27 = vpop.f32.mrf.mxu0 }
 0x20e   : > { %8304 = vst [vmem:[#allocation13_spill] sm:$0xff] %v7982_v16 }
 0x20f   : > { %v7986_v30 = vpop.f32.mrf.mxu1  ;;  %v7988_v25 = vpop.f32.mrf.mxu0 }
 0x210   : > { %8305 = vst [vmem:[#allocation14_spill] sm:$0xff] %v7986_v30 }
 0x211   : > { %v7990_v33 = vpop.f32.mrf.mxu1  ;;  %v7992_v42 = vpop.f32.mrf.mxu0 }
 0x212   : > { %8306 = vst [vmem:[#allocation15_spill] sm:$0xff] %v7990_v33  ;;  %8307 = vst [vmem:[#allocation16_spill] sm:$0xff] %v7992_v42 }
 0x213   : > { %v6347_v5 = vpop.f32.mrf.mxu1  ;;  %v7994_v37 = vpop.f32.mrf.mxu0 }
 0x214   : > { %8308 = vst [vmem:[#allocation17_spill] sm:$0xff] %v7994_v37 }
 0x215   : > { %v7996_v47 = vpop.f32.mrf.mxu1  ;;  %v7998_v43 = vpop.f32.mrf.mxu0 }
 0x216   : > { %8309 = vst [vmem:[#allocation18_spill] sm:$0xff] %v7998_v43 }
 0x217   : > { %v8000_v22 = vpop.f32.mrf.mxu1  ;;  %v8002_v16 = vpop.f32.mrf.mxu0 }
 0x218   : > { %8310 = vst [vmem:[#allocation19_spill] sm:$0xff] %v8002_v16 }
 0x219   : > { %v8004_v38 = vpop.f32.mrf.mxu1  ;;  %v8006_v30 = vpop.f32.mrf.mxu0 }
 0x21a   : > { %8311 = vst [vmem:[#allocation20_spill] sm:$0xff] %v8004_v38  ;;  %8312 = vst [vmem:[#allocation21_spill] sm:$0xff] %v8006_v30 }
 0x21b   : > { %v8008_v17 = vpop.f32.mrf.mxu1  ;;  %v8010_v33 = vpop.f32.mrf.mxu0 }
 0x21c   : > { %8313 = vst [vmem:[#allocation22_spill] sm:$0xff] %v8008_v17  ;;  %8314 = vst [vmem:[#allocation23_spill] sm:$0xff] %v8010_v33 }
 0x21d   : > { %v8012_v3 = vpop.f32.mrf.mxu1  ;;  %v6315_v36 = vpop.f32.mrf.mxu0 }
 0x21e   : > { %8315 = vst [vmem:[#allocation24_spill] sm:$0xff] %v8012_v3 }
 0x21f   : > { %v8014_v37 = vpop.f32.mrf.mxu1  ;;  %v2547_v59 = vpop.f32.mrf.mxu0 }
 0x220   : > { %8316 = vst [vmem:[#allocation25_spill] sm:$0xff] %v8014_v37 }
 0x221   : > { %v8016_v52 = vpop.f32.mrf.mxu1  ;;  %v6316_v43 = vpop.f32.mrf.mxu0 }
 0x222   : > { %8317 = vst [vmem:[#allocation26_spill] sm:$0xff] %v8016_v52 }
 0x223   : > { %v8018_v45 = vpop.f32.mrf.mxu1  ;;  %v2550_v16 = vpop.f32.mrf.mxu0 }
 0x224   : > { %8318 = vst [vmem:[#allocation27_spill] sm:$0xff] %v8018_v45 }
 0x225   : > { %v8020_v42 = vpop.f32.mrf.mxu1  ;;  %v6319_v38 = vpop.f32.mrf.mxu0 }
 0x226   : > { %8319 = vst [vmem:[#allocation28_spill] sm:$0xff] %v8020_v42  ;;  %v1849_v42 = vadd.f32 %v7781_v57, %v7835_v60  ;;  %v1848_v57 = vadd.f32 %v7802_v11, %v7862_v56 }
 0x227   : > { %v8022_v30 = vpop.f32.mrf.mxu1  ;;  %v8024_v17 = vpop.f32.mrf.mxu0 }
 0x228   : > { %8320 = vst [vmem:[#allocation29_spill] sm:$0xff] %v8022_v30  ;;  %8321 = vst [vmem:[#allocation30_spill] sm:$0xff] %v8024_v17  ;;  %v2163_v17 = vadd.f32 %v6251_v9, %v1849_v42  ;;  %v2162_v42 = vadd.f32 %v2101_v19, %v1848_v57  ;;  %v1854_v19 = vadd.f32 %v7837_v41, %v7889_v12 }
 0x229   : > { %v8026_v33 = vpop.f32.mrf.mxu1  ;;  %v8028_v3 = vpop.f32.mrf.mxu0  ;;  %v1858_v41 = vadd.f32 %v7875_v40, %v7921_v32  ;;  %v1861_v12 = vadd.f32 %v7891_v10, %v7937_v62 }
 0x22a   : > { %8322 = vst [vmem:[#allocation31_spill] sm:$0xff] %v8026_v33  ;;  %8323 = vst [vmem:[#allocation32_spill] sm:$0xff] %v8028_v3  ;;  %v1847_v33 = vadd.f32 %v7790_v26, %v7843_v44  ;;  %v2370_v60 = vadd.f32 %v7923_v39, %v2163_v17  ;;  %v1853_v26 = vadd.f32 %v7814_v61, %v7873_v13 }
 0x22b   : > { %v8030_v35 = vpop.f32.mrf.mxu0  ;;  %v8032_v37 = vpop.f32.mrf.mxu1  ;;  %v1852_v61 = vadd.f32 %v7845_v46, %v7899_v24  ;;  %v1856_v46 = vadd.f32 %v7883_v49, %v7931_v51  ;;  %v2168_v40 = vadd.f32 %v7976_v4, %v1854_v19  ;;  %v1859_v17 = vadd.f32 %v7901_v21, %v7943_v1  ;;  %v8328_v4 = vld [vmem:[#allocation3_spill] sm:$0xff]  ;;  %v8333_v1 = vld [vmem:[#allocation16_spill] sm:$0xff]  ;;  %v8337_v19 = vld [vmem:[#allocation22_spill] sm:$0xff] }
 0x22c   : > { %8324 = vst [vmem:[#allocation33_spill] sm:$0xff] %v8030_v35  ;;  %8325 = vst [vmem:[#allocation34_spill] sm:$0xff] %v8032_v37  ;;  %v2161_v35 = vadd.f32 %v2098_v54, %v1847_v33  ;;  %v1850_v37 = vadd.f32 %v7797_v7, %v7854_v55  ;;  %v2612_v44 = vadd.f32 %v6315_v36, %v2370_v60 }
 0x22d   : > { %v8034_v52 = vpop.f32.mrf.mxu0  ;;  %v8040_v45 = vpop.f32.mrf.mxu1  ;;  %v1851_v55 = vadd.f32 %v7824_v18, %v7881_v8  ;;  %v2167_v33 = vadd.f32 %v6255_v15, %v1853_v26  ;;  %v2369_v8 = vadd.f32 %v7945_v20, %v2162_v42  ;;  %v2172_v57 = vadd.f32 %v8333_v1, %v1858_v41  ;;  %v8335_v42 = vld [vmem:[#allocation7_spill] sm:$0xff]  ;;  %v8348_v1 = vld [vmem:[#allocation26_spill] sm:$0xff] }
 0x22e   : > { %8326 = vst [vmem:[#allocation35_spill] sm:$0xff] %v8034_v52  ;;  %v2164_v28 = vadd.f32 %v6252_v29, %v1850_v37  ;;  %v2368_v54 = vadd.f32 %v7933_v53, %v2161_v35  ;;  %v1857_v35 = vadd.f32 %v7856_v23, %v7904_v2  ;;  %v8092_v23 = vld [vmem:[%s8291_s5] ss:$0 sm:$0xff] }
 0x22f   : > { %v8036_v50 = vpop.f32.mrf.mxu0  ;;  %v8050_v52 = vpop.f32.mrf.mxu1  ;;  %v2165_v39 = vadd.f32 %v7972_v63, %v1851_v55  ;;  %v2611_v2 = vadd.f32 %v2550_v16, %v2369_v8  ;;  %v8329_v16 = vld [vmem:[#allocation30_spill] sm:$0xff]  ;;  %v8331_v37 = vld [vmem:[#allocation4_spill] sm:$0xff] }
 0x230   : > { %8327 = vst [vmem:[#allocation36_spill] sm:$0xff] %v8036_v50  ;;  %v2610_v11 = vadd.f32 %v2547_v59, %v2368_v54  ;;  %v2371_v56 = vadd.f32 %v7939_v0, %v2164_v28  ;;  %v2926_v59 = vadd.f32 %v6347_v5, %v2612_v44  ;;  %v1855_v28 = vadd.f32 %v7864_v58, %v7913_v34  ;;  %v8330_v5 = vld [vmem:[#allocation5_spill] sm:$0xff]  ;;  %v8336_v44 = vld [vmem:[#allocation8_spill] sm:$0xff] }
 0x231   : > { %v8042_v30 = vpop.f32.mrf.mxu0  ;;  %v8062_v7 = vpop.f32.mrf.mxu1  ;;  %v2374_v0 = vadd.f32 %v7951_v31, %v2167_v33  ;;  %v2166_v34 = vadd.f32 %v7980_v14, %v1852_v61  ;;  %v2171_v49 = vadd.f32 %v7984_v27, %v1857_v35  ;;  %v2372_v10 = vadd.f32 %v7956_v48, %v2165_v39  ;;  %v8113_v48 = vld [vmem:[%s8292_s6] ss:$0 sm:$0xff] }
 0x232   : > { %v2613_v18 = vadd.f32 %v6316_v43, %v2371_v56  ;;  %v2924_v58 = vadd.f32 %v7996_v47, %v2610_v11  ;;  %v2169_v63 = vadd.f32 %v7988_v25, %v1855_v28  ;;  %v1862_v14 = vadd.f32 %v8328_v4, %v7949_v6  ;;  %v8334_v6 = vld [vmem:[#allocation6_spill] sm:$0xff]  ;;  %v8338_v35 = vld [vmem:[#allocation32_spill] sm:$0xff]  ;;  %v8340_v28 = vld [vmem:[#allocation9_spill] sm:$0xff] }
 0x233   : > { %v8046_v3 = vpop.f32.mrf.mxu0  ;;  %v8079_v53 = vpop.f32.mrf.mxu1  ;;  %v2616_v51 = vadd.f32 %v6319_v38, %v2374_v0  ;;  %v2614_v27 = vadd.f32 %v8329_v16, %v2372_v10  ;;  %v1860_v47 = vadd.f32 %v8331_v37, %v8330_v5  ;;  %v2375_v60 = vadd.f32 %v8334_v6, %v2168_v40  ;;  %v8339_v8 = vld [vmem:[#allocation33_spill] sm:$0xff] }
 0x234   : > { %v2927_v31 = vadd.f32 %v8000_v22, %v2613_v18  ;;  %v8332_v22 = vld [vmem:[#allocation20_spill] sm:$0xff]  ;;  %v2373_v26 = vadd.f32 %v8335_v42, %v2166_v34  ;;  %v2378_v54 = vadd.f32 %v8336_v44, %v2171_v49  ;;  %v2376_v41 = vadd.f32 %v8340_v28, %v2169_v63  ;;  %v8342_v49 = vld [vmem:[#allocation17_spill] sm:$0xff]  ;;  %v8352_v28 = vld [vmem:[#allocation27_spill] sm:$0xff] }
 0x235   : > { %v8052_v50 = vpop.f32.mrf.mxu0  ;;  %v8100_v62 = vpop.f32.mrf.mxu1  ;;  %v2925_v21 = vadd.f32 %v8332_v22, %v2611_v2  ;;  %v2930_v61 = vadd.f32 %v8337_v19, %v2616_v51  ;;  %v2617_v18 = vadd.f32 %v8338_v35, %v2375_v60  ;;  %v8341_v2 = vld [vmem:[#allocation24_spill] sm:$0xff]  ;;  %v2170_v10 = vadd.f32 %v8342_v49, %v1856_v46 }
 0x236   : > { %v2928_v0 = vadd.f32 %v8341_v2, %v2614_v27  ;;  %v8351_v35 = vld [vmem:[#allocation12_spill] sm:$0xff] }
 0x237   : > { %v8057_v9 = vpop.f32.mrf.mxu0  ;;  %v8123_v33 = vpop.f32.mrf.mxu1 }
 0x239   : > { %v8066_v29 = vpop.f32.mrf.mxu0  ;;  %v8140_v16 = vpop.f32.mrf.mxu1 }
 0x23b   : > { %v8074_v13 = vpop.f32.mrf.mxu0 }
 0x23d   : > { %v6379_v24 = vpop.f32.mrf.mxu0 }
 0x23e   : > { %v3133_v20 = vadd.f32 %v6379_v24, %v2926_v59  ;;  %v2615_v59 = vadd.f32 %v8339_v8, %v2373_v26  ;;  %v8152_v26 = vpop.f32.mrf.mxu1 }
 0x23f   : > { %v3068_v32 = vpop.f32.mrf.mxu0 }
 0x240   : > { %v3155_v36 = vmul.f32 %v8092_v23, %v3133_v20  ;;  %v3131_v15 = vadd.f32 %v3068_v32, %v2924_v58  ;;  %v8343_v32 = vld [vmem:[#allocation18_spill] sm:$0xff] }
 0x241   : > { %v6380_v38 = vpop.f32.mrf.mxu0  ;;  %v2175_v51 = vadd.f32 %v8343_v32, %v1861_v12  ;;  %v8347_v12 = vld [vmem:[#allocation25_spill] sm:$0xff]  ;;  %v8355_v32 = vld [vmem:[#allocation28_spill] sm:$0xff] }
 0x242   : > { %v3153_v43 = vmul.f32 %v8092_v23, %v3131_v15  ;;  %v3134_v25 = vadd.f32 %v6380_v38, %v2927_v31  ;;  %v3177_v11 = vadd.f32 %v8113_v48, %v3155_v36  ;;  %v8344_v36 = vld [vmem:[#allocation35_spill] sm:$0xff]  ;;  %v8345_v31 = vld [vmem:[#allocation10_spill] sm:$0xff]  ;;  %v2931_v22 = vadd.f32 %v8347_v12, %v2617_v18 }
 0x243   : > { %v3071_v55 = vpop.f32.mrf.mxu0  ;;  %v2620_v15 = vadd.f32 %v8344_v36, %v2378_v54  ;;  %v2379_v4 = vadd.f32 %v8345_v31, %v2172_v57  ;;  %v2929_v57 = vadd.f32 %v8348_v1, %v2615_v59  ;;  %v8349_v54 = vld [vmem:[#allocation19_spill] sm:$0xff]  ;;  %v2382_v18 = vadd.f32 %v8351_v35, %v2175_v51 }
 0x244   : > { %v3156_v56 = vmul.f32 %v8092_v23, %v3134_v25  ;;  %v3132_v39 = vadd.f32 %v3071_v55, %v2925_v21  ;;  %v3175_v20 = vadd.f32 %v8113_v48, %v3153_v43  ;;  %v3193_v38 = vmax.f32 %v3177_v11, 0.0  ;;  %v8346_v43 = vld [vmem:[#allocation36_spill] sm:$0xff]  ;;  %v8359_v12 = vld [vmem:[#allocation15_spill] sm:$0xff] }
 0x245   : > { %v6383_v24 = vpop.f32.mrf.mxu0  ;;  %v2618_v25 = vadd.f32 %v8346_v43, %v2376_v41  ;;  %v2173_v55 = vadd.f32 %v8349_v54, %v1859_v17  ;;  %v2621_v11 = vadd.f32 %v8042_v30, %v2379_v4  ;;  %v2934_v41 = vadd.f32 %v8352_v28, %v2620_v15  ;;  %v8357_v4 = vld [vmem:[#allocation29_spill] sm:$0xff]  ;;  %v8358_v43 = vld [vmem:[#allocation14_spill] sm:$0xff] }
 0x246   : > { %v3178_v58 = vadd.f32 %v8113_v48, %v3156_v56  ;;  %v3154_v40 = vmul.f32 %v8092_v23, %v3132_v39  ;;  %v3137_v34 = vadd.f32 %v6383_v24, %v2930_v61  ;;  %v3191_v6 = vmax.f32 %v3175_v20, 0.0  ;;  %v8350_v56 = vld [vmem:[#allocation11_spill] sm:$0xff]  ;;  %v8353_v24 = vld [vmem:[#allocation21_spill] sm:$0xff] }
 0x247   : > { %v3084_v63 = vpop.f32.mrf.mxu0  ;;  %v2377_v39 = vadd.f32 %v8350_v56, %v2170_v10  ;;  %v2176_v2 = vadd.f32 %v8353_v24, %v1862_v14  ;;  %v2932_v51 = vadd.f32 %v8355_v32, %v2618_v25  ;;  %v8356_v14 = vld [vmem:[#allocation13_spill] sm:$0xff] }
 0x248   : > { %v3194_v27 = vmax.f32 %v3178_v58, 0.0  ;;  %v3176_v5 = vadd.f32 %v8113_v48, %v3154_v40  ;;  %v3135_v37 = vadd.f32 %v3084_v63, %v2928_v0  ;;  %v3159_v46 = vmul.f32 %v8092_v23, %v3137_v34  ;;  %v8354_v0 = vld [vmem:[#allocation23_spill] sm:$0xff]  ;;  %v8167_v34 = vpop.f32.mrf.mxu1 }
 0x249   : > { %v6384_v21 = vpop.f32.mrf.mxu0  ;;  %v2174_v20 = vadd.f32 %v8354_v0, %v1860_v47  ;;  %v2619_v36 = vadd.f32 %v8046_v3, %v2377_v39  ;;  %v2380_v15 = vadd.f32 %v8356_v14, %v2173_v55  ;;  %v2935_v63 = vadd.f32 %v8357_v4, %v2621_v11  ;;  %v8360_v55 = vld [vmem:[#allocation31_spill] sm:$0xff] }
 0x24a   : > { %v5700_v60 = vpack.c.bf16 %v3194_v27, %v3193_v38  ;;  %v3192_v42 = vmax.f32 %v3176_v5, 0.0  ;;  %v3157_v44 = vmul.f32 %v8092_v23, %v3135_v37  ;;  %v3138_v19 = vadd.f32 %v6384_v21, %v2931_v22 }
 0x24b   : > { %v3087_v61 = vpop.f32.mrf.mxu0  ;;  %v3181_v58 = vadd.f32 %v8113_v48, %v3159_v46  ;;  %v2624_v38 = vadd.f32 %v8052_v50, %v2382_v18  ;;  %v2383_v46 = vadd.f32 %v8358_v43, %v2176_v2  ;;  %v2381_v25 = vadd.f32 %v8359_v12, %v2174_v20 }
 0x24c   : > { %5765 = vst [vmem:[%s8147_s15 + $0x8] sm:$0xff] %v5700_v60   ;;  %v5695_v8 = vpack.c.bf16 %v3192_v42, %v3191_v6  ;;  %v3136_v59 = vadd.f32 %v3087_v61, %v2929_v57  ;;  %v3160_v17 = vmul.f32 %v8092_v23, %v3138_v19  ;;  %v3179_v40 = vadd.f32 %v8113_v48, %v3157_v44  ;;  %v8181_v6 = vpop.f32.mrf.mxu1 }
 0x24d   : > { %v6387_v30 = vpop.f32.mrf.mxu0  ;;  %v3197_v22 = vmax.f32 %v3181_v58, 0.0  ;;  %v2622_v1 = vadd.f32 %v8057_v9, %v2380_v15  ;;  %v2625_v42 = vadd.f32 %v8066_v29, %v2383_v46  ;;  %v2933_v11 = vadd.f32 %v8360_v55, %v2619_v36  ;;  %v8361_v9 = vld [vmem:[#allocation34_spill] sm:$0xff] }
 0x24e   : > { %5696 = vst [vmem:[%s8147_s15] sm:$0xff] %v5695_v8   ;;  %v3158_v49 = vmul.f32 %v8092_v23, %v3136_v59  ;;  %v3141_v10 = vadd.f32 %v6387_v30, %v2934_v41  ;;  %v3182_v47 = vadd.f32 %v8113_v48, %v3160_v17  ;;  %v3195_v57 = vmax.f32 %v3179_v40, 0.0  ;;  %v8192_v29 = vpop.f32.mrf.mxu1 }
 0x24f   : > { %v3100_v31 = vpop.f32.mrf.mxu0  ;;  %v2938_v35 = vadd.f32 %v8361_v9, %v2624_v38  ;;  %v2623_v59 = vadd.f32 %v8074_v13, %v2381_v25  ;;  %v2936_v24 = vadd.f32 %v8040_v45, %v2622_v1  ;;  %v2939_v58 = vadd.f32 %v8050_v52, %v2625_v42 }
 0x250   : > { %v3180_v27 = vadd.f32 %v8113_v48, %v3158_v49  ;;  %v3163_v5 = vmul.f32 %v8092_v23, %v3141_v10  ;;  %v3139_v37 = vadd.f32 %v3100_v31, %v2932_v51  ;;  %v3198_v3 = vmax.f32 %v3182_v47, 0.0 }
 0x251   : > { %v6388_v21 = vpop.f32.mrf.mxu0  ;;  %v2937_v14 = vadd.f32 %v8062_v7, %v2623_v59 }
 0x252   : > { %v3196_v50 = vmax.f32 %v3180_v27, 0.0  ;;  %v3142_v60 = vadd.f32 %v6388_v21, %v2935_v63  ;;  %v5710_v44 = vpack.c.bf16 %v3198_v3, %v3197_v22  ;;  %v3161_v54 = vmul.f32 %v8092_v23, %v3139_v37 }
 0x253   : > { %v3103_v56 = vpop.f32.mrf.mxu0  ;;  %v3185_v19 = vadd.f32 %v8113_v48, %v3163_v5  ;;  %v8199_v30 = vpop.f32.mrf.mxu1 }
 0x254   : > { %v5705_v39 = vpack.c.bf16 %v3196_v50, %v3195_v57  ;;  %v3164_v61 = vmul.f32 %v8092_v23, %v3142_v60  ;;  %5767 = vst [vmem:[%s8147_s15 + $0x18] sm:$0xff] %v5710_v44   ;;  %v3140_v18 = vadd.f32 %v3103_v56, %v2933_v11  ;;  %v3183_v2 = vadd.f32 %v8113_v48, %v3161_v54 }
 0x255   : > { %v6391_v8 = vpop.f32.mrf.mxu0  ;;  %v3201_v17 = vmax.f32 %v3185_v19, 0.0  ;;  %v8206_v31 = vpop.f32.mrf.mxu1 }
 0x256   : > { %5766 = vst [vmem:[%s8147_s15 + $0x10] sm:$0xff] %v5705_v39   ;;  %v3186_v28 = vadd.f32 %v8113_v48, %v3164_v61  ;;  %v3145_v41 = vadd.f32 %v6391_v8, %v2938_v35  ;;  %v3162_v0 = vmul.f32 %v8092_v23, %v3140_v18  ;;  %v3199_v15 = vmax.f32 %v3183_v2, 0.0 }
 0x257   : > { %v3116_v20 = vpop.f32.mrf.mxu0  ;;  %v6460_v43 = vpop.f32.mrf.mxu1 }
 0x258   : > { %v3202_v13 = vmax.f32 %v3186_v28, 0.0  ;;  %v3167_v40 = vmul.f32 %v8092_v23, %v3145_v41  ;;  %v3143_v49 = vadd.f32 %v3116_v20, %v2936_v24  ;;  %v3184_v10 = vadd.f32 %v8113_v48, %v3162_v0 }
 0x259   : > { %v6392_v32 = vpop.f32.mrf.mxu0  ;;  %v3739_v57 = vpop.f32.mrf.mxu1 }
 0x25a   : > { %v5720_v51 = vpack.c.bf16 %v3202_v13, %v3201_v17  ;;  %v3165_v45 = vmul.f32 %v8092_v23, %v3143_v49  ;;  %v3146_v36 = vadd.f32 %v6392_v32, %v2939_v58  ;;  %v3200_v47 = vmax.f32 %v3184_v10, 0.0 }
 0x25b   : > { %v3119_v52 = vpop.f32.mrf.mxu0  ;;  %v3189_v4 = vadd.f32 %v8113_v48, %v3167_v40  ;;  %v6463_v42 = vpop.f32.mrf.mxu1 }
 0x25c   : > { %5769 = vst [vmem:[%s8147_s15 + $0x28] sm:$0xff] %v5720_v51   ;;  %v3168_v63 = vmul.f32 %v8092_v23, %v3146_v36  ;;  %v3144_v38 = vadd.f32 %v3119_v52, %v2937_v14  ;;  %v5715_v27 = vpack.c.bf16 %v3200_v47, %v3199_v15  ;;  %v3187_v5 = vadd.f32 %v8113_v48, %v3165_v45 }
 0x25d   : > { %v3205_v46 = vmax.f32 %v3189_v4, 0.0  ;;  %v6435_v1 = vpop.f32.mrf.mxu0  ;;  %v3752_v54 = vpop.f32.mrf.mxu1 }
 0x25e   : > { %v3190_v37 = vadd.f32 %v8113_v48, %v3168_v63  ;;  %v3166_v7 = vmul.f32 %v8092_v23, %v3144_v38  ;;  %5768 = vst [vmem:[%s8147_s15 + $0x20] sm:$0xff] %v5715_v27   ;;  %v3203_v22 = vmax.f32 %v3187_v5, 0.0  ;;  %v3599_v38 = vadd.f32 %v6435_v1, %v8079_v53 }
 0x25f   : > { %v3590_v60 = vpop.f32.mrf.mxu0  ;;  %v8217_v11 = vpop.f32.mrf.mxu1 }
 0x260   : > { %v3206_v12 = vmax.f32 %v3190_v37, 0.0  ;;  %v3188_v25 = vadd.f32 %v8113_v48, %v3166_v7  ;;  %v3591_v5 = vadd.f32 %v3590_v60, %v8100_v62 }
 0x261   : > { %v6436_v44 = vpop.f32.mrf.mxu0  ;;  %v8219_v39 = vpop.f32.mrf.mxu1 }
 0x262   : > { %v5730_v3 = vpack.c.bf16 %v3206_v12, %v3205_v46  ;;  %v3204_v21 = vmax.f32 %v3188_v25, 0.0  ;;  %v3602_v7 = vadd.f32 %v6436_v44, %v8123_v33  ;;  %v3769_v46 = vadd.f32 %v8199_v30, %v3599_v38 }
 0x263   : > { %v3593_v55 = vpop.f32.mrf.mxu0 }
 0x264   : > { %5771 = vst [vmem:[%s8147_s15 + $0x38] sm:$0xff] %v5730_v3   ;;  %v5725_v50 = vpack.c.bf16 %v3204_v21, %v3203_v22  ;;  %v3594_v25 = vadd.f32 %v3593_v55, %v8140_v16  ;;  %v3767_v3 = vadd.f32 %v8206_v31, %v3591_v5  ;;  %v3770_v53 = vadd.f32 %v6460_v43, %v3602_v7 }
 0x265   : > { %v6439_v56 = vpop.f32.mrf.mxu0 }
 0x266   : > { %5770 = vst [vmem:[%s8147_s15 + $0x30] sm:$0xff] %v5725_v50   ;;  %v3615_v1 = vadd.f32 %v6439_v56, %v8152_v26 }
 0x267   : > { %v3606_v61 = vpop.f32.mrf.mxu0 }
 0x268   : > { %v3607_v62 = vadd.f32 %v3606_v61, %v8167_v34 }
 0x269   : > { %v6440_v35 = vpop.f32.mrf.mxu0 }
 0x26a   : > { %v3618_v30 = vadd.f32 %v6440_v35, %v8181_v6  ;;  %v3771_v31 = vadd.f32 %v3752_v54, %v3607_v62 }
 0x26b   : > { %v3609_v8 = vpop.f32.mrf.mxu0 }
 0x26c   : > { %v3610_v43 = vadd.f32 %v3609_v8, %v8192_v29 }
 0x26e   : > { %v3772_v54 = vadd.f32 %v8219_v39, %v3610_v43 }
 0x273   : > { %v6507_v19 = vpop.f32.mrf.mxu1 }
 0x275   : > { %v4114_v9 = vpop.f32.mrf.mxu1 }
 0x277   : > { %v6508_v18 = vpop.f32.mrf.mxu1 }
 0x279   : > { %v4117_v28 = vpop.f32.mrf.mxu1 }
 0x27b   : > { %v8221_v24 = vpop.f32.mrf.mxu1 }
 0x27d   : > { %v6483_v59 = vpop.f32.mrf.mxu0  ;;  %v8223_v0 = vpop.f32.mrf.mxu1 }
 0x27e   : > { %v3938_v22 = vadd.f32 %v6483_v59, %v3769_v46  ;;  %v3773_v59 = vadd.f32 %v6463_v42, %v3615_v1 }
 0x27f   : > { %v3905_v41 = vpop.f32.mrf.mxu0  ;;  %v8225_v58 = vpop.f32.mrf.mxu1 }
 0x280   : > { %v4147_v33 = vadd.f32 %v6507_v19, %v3938_v22 }
 0x281   : > { %v6484_v2 = vpop.f32.mrf.mxu0  ;;  %v8227_v13 = vpop.f32.mrf.mxu1 }
 0x282   : > { %v3939_v60 = vadd.f32 %v6484_v2, %v3770_v53 }
 0x283   : > { %v3908_v20 = vpop.f32.mrf.mxu0 }
 0x284   : > { %v4148_v46 = vadd.f32 %v6508_v18, %v3939_v60 }
 0x285   : > { %v6487_v17 = vpop.f32.mrf.mxu0 }
 0x286   : > { %v3942_v26 = vadd.f32 %v6487_v17, %v3773_v59 }
 0x287   : > { %v3921_v49 = vpop.f32.mrf.mxu0 }
 0x288   : > { %v3940_v19 = vadd.f32 %v3921_v49, %v3771_v31  ;;  %v4151_v18 = vadd.f32 %v8221_v24, %v3942_v26 }
 0x289   : > { %v6488_v32 = vpop.f32.mrf.mxu0 }
 0x28a   : > { %v4149_v29 = vadd.f32 %v8223_v0, %v3940_v19 }
 0x28b   : > { %v3924_v45 = vpop.f32.mrf.mxu0 }
 0x28c   : > { %v3941_v17 = vadd.f32 %v3924_v45, %v3772_v54 }
 0x293   : > { %v6555_v40 = vpop.f32.mrf.mxu1 }
 0x295   : > { %v4437_v10 = vpop.f32.mrf.mxu1 }
 0x297   : > { %v6556_v51 = vpop.f32.mrf.mxu1 }
 0x299   : > { %v4440_v14 = vpop.f32.mrf.mxu1 }
 0x29b   : > { %v8229_v47 = vpop.f32.mrf.mxu1 }
 0x29d   : > { %v6531_v36 = vpop.f32.mrf.mxu0  ;;  %v8231_v4 = vpop.f32.mrf.mxu1 }
 0x29e   : > { %8362 = vst [vmem:[#allocation3_spill] sm:$0xff] %v8231_v4  ;;  %v3936_v4 = vadd.f32 %v3905_v41, %v3767_v3  ;;  %v4301_v16 = vadd.f32 %v6531_v36, %v4147_v33 }
 0x29f   : > { %v4268_v15 = vpop.f32.mrf.mxu0  ;;  %v8234_v27 = vpop.f32.mrf.mxu1 }
 0x2a0   : > { %8363 = vst [vmem:[#allocation30_spill] sm:$0xff] %v8234_v27  ;;  %v3768_v27 = vadd.f32 %v3739_v57, %v3594_v25  ;;  %v4145_v55 = vadd.f32 %v4114_v9, %v3936_v4  ;;  %v3774_v57 = vadd.f32 %v8217_v11, %v3618_v30  ;;  %v4470_v2 = vadd.f32 %v6555_v40, %v4301_v16 }
 0x2a1   : > { %v6532_v52 = vpop.f32.mrf.mxu0  ;;  %v8239_v12 = vpop.f32.mrf.mxu1 }
 0x2a2   : > { %8364 = vst [vmem:[#allocation5_spill] sm:$0xff] %v8239_v12  ;;  %v3937_v38 = vadd.f32 %v3908_v20, %v3768_v27  ;;  %v4299_v5 = vadd.f32 %v4268_v15, %v4145_v55  ;;  %v4302_v61 = vadd.f32 %v6532_v52, %v4148_v46  ;;  %v3943_v6 = vadd.f32 %v6488_v32, %v3774_v57 }
 0x2a3   : > { %v4271_v63 = vpop.f32.mrf.mxu0 }
 0x2a4   : > { %v4146_v34 = vadd.f32 %v4117_v28, %v3937_v38  ;;  %v4468_v42 = vadd.f32 %v4437_v10, %v4299_v5  ;;  %v4471_v28 = vadd.f32 %v6556_v51, %v4302_v61  ;;  %v4152_v40 = vadd.f32 %v8225_v58, %v3943_v6 }
 0x2a5   : > { %v6535_v37 = vpop.f32.mrf.mxu0  ;;  %v4150_v51 = vadd.f32 %v8227_v13, %v3941_v17 }
 0x2a6   : > { %v4300_v35 = vadd.f32 %v4271_v63, %v4146_v34  ;;  %v4305_v49 = vadd.f32 %v6535_v37, %v4151_v18 }
 0x2a7   : > { %v4284_v50 = vpop.f32.mrf.mxu0  ;;  %v8366_v60 = vld [vmem:[#allocation30_spill] sm:$0xff] }
 0x2a8   : > { %v4469_v52 = vadd.f32 %v4440_v14, %v4300_v35  ;;  %v4303_v4 = vadd.f32 %v4284_v50, %v4149_v29  ;;  %v4474_v58 = vadd.f32 %v8229_v47, %v4305_v49  ;;  %v8365_v50 = vld [vmem:[#allocation3_spill] sm:$0xff] }
 0x2a9   : > { %v6536_v12 = vpop.f32.mrf.mxu0  ;;  %v8367_v26 = vld [vmem:[#allocation5_spill] sm:$0xff] }
 0x2aa   : > { %v4306_v7 = vadd.f32 %v6536_v12, %v4152_v40  ;;  %v4472_v53 = vadd.f32 %v8365_v50, %v4303_v4 }
 0x2ab   : > { %v4287_v56 = vpop.f32.mrf.mxu0 }
 0x2ac   : > { %v4304_v1 = vadd.f32 %v4287_v56, %v4150_v51  ;;  %v4475_v33 = vadd.f32 %v8366_v60, %v4306_v7 }
 0x2ae   : > { %v4473_v57 = vadd.f32 %v8367_v26, %v4304_v1 }
 0x2b3   : > { %v6603_v21 = vpop.f32.mrf.mxu1 }
 0x2b5   : > { %v4800_v44 = vpop.f32.mrf.mxu1 }
 0x2b7   : > { %v6604_v41 = vpop.f32.mrf.mxu1 }
 0x2b9   : > { %v4803_v36 = vpop.f32.mrf.mxu1 }
 0x2bb   : > { %v6607_v63 = vpop.f32.mrf.mxu1 }
 0x2bd   : > { %v6579_v20 = vpop.f32.mrf.mxu0  ;;  %v4816_v14 = vpop.f32.mrf.mxu1 }
 0x2be   : > { %v4679_v9 = vadd.f32 %v6579_v20, %v4470_v2 }
 0x2bf   : > { %v4646_v15 = vpop.f32.mrf.mxu0  ;;  %v6608_v59 = vpop.f32.mrf.mxu1 }
 0x2c0   : > { %v4833_v8 = vadd.f32 %v6603_v21, %v4679_v9  ;;  %v4677_v11 = vadd.f32 %v4646_v15, %v4468_v42 }
 0x2c1   : > { %v6580_v32 = vpop.f32.mrf.mxu0  ;;  %v4819_v20 = vpop.f32.mrf.mxu1 }
 0x2c2   : > { %v4841_v10 = vmul.f32 %v8092_v23, %v4833_v8  ;;  %v4831_v27 = vadd.f32 %v4800_v44, %v4677_v11  ;;  %v4680_v39 = vadd.f32 %v6580_v32, %v4471_v28 }
 0x2c3   : > { %v4649_v24 = vpop.f32.mrf.mxu0 }
 0x2c4   : > { %v4839_v25 = vmul.f32 %v8092_v23, %v4831_v27  ;;  %v4834_v0 = vadd.f32 %v6604_v41, %v4680_v39  ;;  %v4678_v22 = vadd.f32 %v4649_v24, %v4469_v52  ;;  %v4849_v45 = vadd.f32 %v8113_v48, %v4841_v10 }
 0x2c5   : > { %v6583_v37 = vpop.f32.mrf.mxu0 }
 0x2c6   : > { %v4842_v3 = vmul.f32 %v8092_v23, %v4834_v0  ;;  %v4832_v21 = vadd.f32 %v4803_v36, %v4678_v22  ;;  %v4683_v12 = vadd.f32 %v6583_v37, %v4474_v58  ;;  %v4847_v44 = vadd.f32 %v8113_v48, %v4839_v25 }
 0x2c7   : > { %v4662_v62 = vpop.f32.mrf.mxu0  ;;  %v4857_v47 = vmax.f32 %v4849_v45, 0.0 }
 0x2c8   : > { %v4850_v13 = vadd.f32 %v8113_v48, %v4842_v3  ;;  %v4840_v30 = vmul.f32 %v8092_v23, %v4832_v21  ;;  %v4681_v38 = vadd.f32 %v4662_v62, %v4472_v53  ;;  %v4837_v16 = vadd.f32 %v6607_v63, %v4683_v12 }
 0x2c9   : > { %v6584_v55 = vpop.f32.mrf.mxu0  ;;  %v4855_v56 = vmax.f32 %v4847_v44, 0.0 }
 0x2ca   : > { %v4858_v31 = vmax.f32 %v4850_v13, 0.0  ;;  %v4848_v5 = vadd.f32 %v8113_v48, %v4840_v30  ;;  %v4835_v46 = vadd.f32 %v4816_v14, %v4681_v38  ;;  %v4684_v41 = vadd.f32 %v6584_v55, %v4475_v33 }
 0x2cb   : > { %v4845_v43 = vmul.f32 %v8092_v23, %v4837_v16  ;;  %v4665_v34 = vpop.f32.mrf.mxu0 }
 0x2cc   : > { %v5740_v19 = vpack.c.bf16 %v4858_v31, %v4857_v47  ;;  %v4856_v61 = vmax.f32 %v4848_v5, 0.0  ;;  %v4838_v2 = vadd.f32 %v6608_v59, %v4684_v41  ;;  %v4843_v6 = vmul.f32 %v8092_v23, %v4835_v46 }
 0x2cd   : > { %v4682_v35 = vadd.f32 %v4665_v34, %v4473_v57  ;;  %v4853_v9 = vadd.f32 %v8113_v48, %v4845_v43 }
 0x2ce   : > { %5773 = vst [vmem:[%s8147_s15 + $0x48] sm:$0xff] %v5740_v19   ;;  %v5735_v36 = vpack.c.bf16 %v4856_v61, %v4855_v56  ;;  %v4846_v42 = vmul.f32 %v8092_v23, %v4838_v2  ;;  %v4851_v15 = vadd.f32 %v8113_v48, %v4843_v6 }
 0x2cf   : > { %v4836_v54 = vadd.f32 %v4819_v20, %v4682_v35  ;;  %v4861_v8 = vmax.f32 %v4853_v9, 0.0 }
 0x2d0   : > { %5772 = vst [vmem:[%s8147_s15 + $0x40] sm:$0xff] %v5735_v36   ;;  %v4854_v18 = vadd.f32 %v8113_v48, %v4846_v42  ;;  %v4859_v49 = vmax.f32 %v4851_v15, 0.0 }
 0x2d1   : > { %v4844_v29 = vmul.f32 %v8092_v23, %v4836_v54 }
 0x2d2   : > { %v4862_v11 = vmax.f32 %v4854_v18, 0.0 }
 0x2d3   : > { %v4852_v28 = vadd.f32 %v8113_v48, %v4844_v29 }
 0x2d4   : > { %v5750_v17 = vpack.c.bf16 %v4862_v11, %v4861_v8 }
 0x2d5   : > { %v4860_v40 = vmax.f32 %v4852_v28, 0.0 }
 0x2d6   : > { %5775 = vst [vmem:[%s8147_s15 + $0x58] sm:$0xff] %v5750_v17  }
 0x2d7   : > { %v5745_v32 = vpack.c.bf16 %v4860_v40, %v4859_v49 }
 0x2d9   : > { %5774 = vst [vmem:[%s8147_s15 + $0x50] sm:$0xff] %v5745_v32  }
 0x2da PF: > { %s17_s26 = sadd.s32 1, %s6897_s26   ;;  %s8368_s24 = smov %s6893_s25 }
 0x2db   : > { %p14_p5 = scmp.ge.s32.totalorder %s17_s26, 4   ;;  %s8369_s25 = smov %s8371_s27 }
 0x2dd   :  { %16 = sbr.rel (!%p14_p5) target bundleno = 2 (0x2), region = 86 }

</bundles_post_ra>
